<compile_context>
chip_gen: v7x
topology: tpu7x:2x2x1
jax: 0.10.0
libtpu: 0.0.40
codegen_flags: <defaults>
</compile_context>

<pallas_src>
import jax
import jax.numpy as jnp
from jax import lax
from jax.experimental import pallas as pl
from jax.experimental.pallas import tpu as pltpu

# Hyperparameters implied by the module's __init__ (kept small).
VOCAB_SIZE = 32
EMBEDDING_DIM = 16
HIDDEN_SIZE = 32          # 4*H = 128 per direction -> 8*H = 256 fused gate lanes
TARGET_SIZE = 8
WORD_PAD_ID = 0


# ----------------------------------------------------------------------------
# Fused kernel: bidirectional LSTM recurrence + Linear + CRF Viterbi decode
# ----------------------------------------------------------------------------
def _bilstm_crf_kernel(xg_ref,      # (T, Bp, 8H)  precomputed input-gate contribs (+bias)
                       whh_ref,     # (2H, 8H)     block-placed recurrent weights
                       wl_ref,      # (2H, K)      linear weight (rows 0:H fwd, H:2H bwd)
                       bl_ref,      # (1, K)
                       trans_ref,   # (K, K)       CRF transitions (prev -> next)
                       start_ref,   # (1, K)
                       end_ref,     # (1, K)
                       se_ref,      # (Bp, 1) int32 seq_end = len-1 (-1 for padded rows)
                       tags_ref,    # out: (Bp, T) int32, -1 past each sequence end
                       hsf_ref,     # scratch (T*Bp, H) fwd hidden states
                       hsb_ref):    # scratch (T*Bp, H) bwd hidden states (time-aligned)
    T, Bp, _ = xg_ref.shape
    H = whh_ref.shape[0] // 2
    K = trans_ref.shape[0]

    # ---- hoisted, loop-invariant loads (loops below are fully unrolled) -----
    whh = whh_ref[...]
    wl = wl_ref[...]
    bl = bl_ref[...]
    trans = trans_ref[...]
    se = se_ref[...]                                          # (Bp, 1) int32

    # ---- fused fwd+bwd LSTM: one (Bp,2H)x(2H,8H) matmul per step ------------
    h = jnp.zeros((Bp, 2 * H), jnp.float32)                   # [h_f | h_b]
    c = jnp.zeros((Bp, 2 * H), jnp.float32)                   # [c_f | c_b]
    for t in range(T):                                        # static, fully unrolled
        gates = xg_ref[t] + jnp.dot(h, whh, preferred_element_type=jnp.float32)
        sig = jax.nn.sigmoid(gates[:, :6 * H])                # [i_f,i_b,f_f,f_b,o_f,o_b]
        g_g = jnp.tanh(gates[:, 6 * H:])                      # [g_f,g_b]
        i_g = sig[:, :2 * H]
        f_g = sig[:, 2 * H:4 * H]
        o_g = sig[:, 4 * H:]
        c = f_g * c + i_g * g_g
        h = o_g * jnp.tanh(c)
        rt = T - 1 - t                                        # bwd direction's original time
        hsf_ref[t * Bp:(t + 1) * Bp, :] = h[:, :H]
        hsb_ref[rt * Bp:(rt + 1) * Bp, :] = h[:, H:]

    # ---- Linear projection: one flattened matmul per direction --------------
    em_flat = (jnp.dot(hsf_ref[...], wl[:H, :], preferred_element_type=jnp.float32)
               + jnp.dot(hsb_ref[...], wl[H:, :], preferred_element_type=jnp.float32)
               + bl)                                          # (T*Bp, K)
    em = [em_flat[t * Bp:(t + 1) * Bp, :] for t in range(T)]  # static (Bp, K) slices

    # ---- CRF Viterbi forward DP (torchcrf semantics, masked, unrolled) ------
    score = start_ref[...] + em[0]                            # (Bp, K)
    iota_prev = lax.broadcasted_iota(jnp.int32, (Bp, K, K), 1)
    hist = [None] * T
    for t in range(1, T):
        # cand[b, prev, nxt] = score[b, prev] + trans[prev, nxt] + em_t[b, nxt]
        cand = score[:, :, None] + trans[None, :, :] + em[t][:, None, :]
        best = jnp.max(cand, axis=1)                          # (Bp, K)
        bp = jnp.min(jnp.where(cand == best[:, None, :], iota_prev, K), axis=1)
        score = jnp.where(t <= se, best, score)               # only advance inside mask
        hist[t] = bp                                          # int32 (Bp, K)

    final = score + end_ref[...]                              # (Bp, K)

    # ---- Viterbi backtrack (vectorized over batch, unrolled over time) ------
    lane_k = lax.broadcasted_iota(jnp.int32, (Bp, K), 1)
    fbest = jnp.max(final, axis=1, keepdims=True)
    cur = jnp.min(jnp.where(final == fbest, lane_k.astype(jnp.float32), float(K)),
                  axis=1, keepdims=True).astype(jnp.int32)    # (Bp, 1) best last tag
    lane_t = lax.broadcasted_iota(jnp.int32, (Bp, T), 1)
    tags = jnp.full((Bp, T), -1, jnp.int32)
    for t in range(T - 1, -1, -1):
        if t < T - 1:
            sel = jnp.where(lane_k == cur, hist[t + 1].astype(jnp.float32), 0.0)
            prev = jnp.sum(sel, axis=1, keepdims=True).astype(jnp.int32)  # hist[t+1][b, cur]
            cur = jnp.where(t < se, prev, cur)
        tags = jnp.where((lane_t == t) & (t <= se), cur, tags)
    tags_ref[...] = tags


# ----------------------------------------------------------------------------
# Parameters in PyTorch layout (synthetic deterministic init), plus the
# transform into the fused-kernel layout.
# ----------------------------------------------------------------------------
def init_params(key):
    H, E, K = HIDDEN_SIZE, EMBEDDING_DIM, TARGET_SIZE
    ks = jax.random.split(key, 14)
    s_h = 1.0 / jnp.sqrt(H)
    s_l = 1.0 / jnp.sqrt(2 * H)

    def u(k, shape, s):
        return jax.random.uniform(k, shape, jnp.float32, -s, s)

    emb = jax.random.normal(ks[0], (VOCAB_SIZE, E), jnp.float32)
    emb = emb.at[WORD_PAD_ID].set(0.0)                        # padding_idx row = 0
    return dict(
        emb=emb,
        w_ih_f=u(ks[1], (4 * H, E), s_h), w_hh_f=u(ks[2], (4 * H, H), s_h),
        b_ih_f=u(ks[3], (4 * H,), s_h), b_hh_f=u(ks[4], (4 * H,), s_h),
        w_ih_b=u(ks[5], (4 * H, E), s_h), w_hh_b=u(ks[6], (4 * H, H), s_h),
        b_ih_b=u(ks[7], (4 * H,), s_h), b_hh_b=u(ks[8], (4 * H,), s_h),
        lin_w=u(ks[9], (K, 2 * H), s_l), lin_b=u(ks[10], (K,), s_l),
        trans=u(ks[11], (K, K), 0.1),
        start=u(ks[12], (K,), 0.1), end=u(ks[13], (K,), 0.1),
    )


def prepare_kernel_params(p):
    """PyTorch layout -> fused-kernel layout (done once, outside the hot path)."""
    H, K = HIDDEN_SIZE, TARGET_SIZE

    def gate_cols(mT):  # mT: (X, 4H) with columns in PyTorch gate order i,f,g,o
        return mT[:, :H], mT[:, H:2 * H], mT[:, 2 * H:3 * H], mT[:, 3 * H:4 * H]

    def interleave(fwd, bwd):
        # combined gate layout: [i_f, i_b, f_f, f_b, o_f, o_b, g_f, g_b]
        i_f, f_f, g_f, o_f = fwd
        i_b, f_b, g_b, o_b = bwd
        return jnp.concatenate([i_f, i_b, f_f, f_b, o_f, o_b, g_f, g_b], axis=1)

    zH = (jnp.zeros((H, H), jnp.float32),) * 4
    top = interleave(gate_cols(p['w_hh_f'].T), zH)            # rows for h_f
    bot = interleave(zH, gate_cols(p['w_hh_b'].T))            # rows for h_b
    whh_comb = jnp.concatenate([top, bot], axis=0)            # (2H, 8H)

    zV = (jnp.zeros((VOCAB_SIZE, H), jnp.float32),) * 4
    G_f = interleave(gate_cols(p['emb'] @ p['w_ih_f'].T), zV)  # (V, 8H) embedding fused in
    G_b = interleave(zV, gate_cols(p['emb'] @ p['w_ih_b'].T))  # (V, 8H)

    bf = (p['b_ih_f'] + p['b_hh_f']).reshape(1, 4 * H)
    bb = (p['b_ih_b'] + p['b_hh_b']).reshape(1, 4 * H)
    b_comb = interleave(gate_cols(bf), gate_cols(bb))          # (1, 8H)

    return dict(
        G_f=G_f, G_b=G_b, b_comb=b_comb, whh_comb=whh_comb,
        wl=p['lin_w'].T,                                       # (2H, K): rows 0:H fwd, H:2H bwd
        bl=p['lin_b'].reshape(1, K),
        trans=p['trans'],
        start=p['start'].reshape(1, K),
        end=p['end'].reshape(1, K),
    )


# ----------------------------------------------------------------------------
# Forward pass == Model.forward(input, mask) -> CRF-decoded tag sequences
# (returned as a (B, T) int32 array padded with -1 past each sequence end).
# ----------------------------------------------------------------------------
def model_forward(tokens, mask, kp):
    B, T = tokens.shape
    Bp = ((max(B, 8) + 7) // 8) * 8                            # pad batch to sublane width
    pad = Bp - B
    tok_p = jnp.pad(tokens, ((0, pad), (0, 0)), constant_values=WORD_PAD_ID)
    mask_p = jnp.pad(mask, ((0, pad), (0, 0)), constant_values=False)

    tok_tm = tok_p.T                                           # (T, Bp) time-major
    # Precomputed per-token input-gate contributions (embedding + W_ih + bias fused):
    xg_all = kp['G_f'][tok_tm] + kp['G_b'][tok_tm[::-1]] + kp['b_comb']   # (T, Bp, 8H)
    seq_end = (mask_p.astype(jnp.int32).sum(axis=1) - 1).reshape(Bp, 1)   # (Bp, 1)

    vmem = pl.BlockSpec(memory_space=pltpu.MemorySpace.VMEM)
    tags_p = pl.pallas_call(
        _bilstm_crf_kernel,
        out_shape=jax.ShapeDtypeStruct((Bp, T), jnp.int32),
        in_specs=[vmem] * 8,
        out_specs=vmem,
        scratch_shapes=[pltpu.VMEM((T * Bp, HIDDEN_SIZE), jnp.float32),
                        pltpu.VMEM((T * Bp, HIDDEN_SIZE), jnp.float32)],
    )(xg_all, kp['whh_comb'], kp['wl'], kp['bl'], kp['trans'],
      kp['start'], kp['end'], seq_end)

    return tags_p[:B]


if __name__ == "__main__":
    key = jax.random.PRNGKey(0)
    pkey, tkey = jax.random.split(key)
    params = init_params(pkey)
    kparams = prepare_kernel_params(params)

    B, T = 2, 8
    lengths = jnp.array([T, 5], jnp.int32)
    mask = jnp.arange(T)[None, :] < lengths[:, None]           # (B, T) bool
    tokens = jax.random.randint(tkey, (B, T), 1, VOCAB_SIZE, jnp.int32)
    tokens = jnp.where(mask, tokens, WORD_PAD_ID)

    fwd = jax.jit(model_forward)
    tags = fwd(tokens, mask, kparams)
    jax.block_until_ready(tags)
    print("KERNEL_OK")
</pallas_src>

<mosaic_0001>
module attributes {stable_mosaic.version = 11 : i64} {
  func.func @_bilstm_crf_kernel(%arg0: memref<8x8x256xf32, #tpu.memory_space<vmem>>, %arg1: memref<64x256xf32, #tpu.memory_space<vmem>>, %arg2: memref<64x8xf32, #tpu.memory_space<vmem>>, %arg3: memref<1x8xf32, #tpu.memory_space<vmem>>, %arg4: memref<8x8xf32, #tpu.memory_space<vmem>>, %arg5: memref<1x8xf32, #tpu.memory_space<vmem>>, %arg6: memref<1x8xf32, #tpu.memory_space<vmem>>, %arg7: memref<8x1xi32, #tpu.memory_space<vmem>>, %arg8: memref<8x8xi32, #tpu.memory_space<vmem>>, %arg9: memref<64x32xf32, #tpu.memory_space<vmem>>, %arg10: memref<64x32xf32, #tpu.memory_space<vmem>>) attributes {dimension_semantics = [], scalar_prefetch = 0 : i64, scratch_operands = 2 : i64, tpu.core_type = #tpu.core_type<tc>} {
    %c0 = arith.constant 0 : index
    %c0_0 = arith.constant 0 : index
    %0 = vector.load %arg1[%c0, %c0_0] : memref<64x256xf32, #tpu.memory_space<vmem>>, vector<64x256xf32>
    %c0_1 = arith.constant 0 : index
    %c0_2 = arith.constant 0 : index
    %1 = vector.load %arg2[%c0_1, %c0_2] : memref<64x8xf32, #tpu.memory_space<vmem>>, vector<64x8xf32>
    %c0_3 = arith.constant 0 : index
    %c0_4 = arith.constant 0 : index
    %2 = vector.load %arg3[%c0_3, %c0_4] : memref<1x8xf32, #tpu.memory_space<vmem>>, vector<1x8xf32>
    %c0_5 = arith.constant 0 : index
    %c0_6 = arith.constant 0 : index
    %3 = vector.load %arg4[%c0_5, %c0_6] : memref<8x8xf32, #tpu.memory_space<vmem>>, vector<8x8xf32>
    %c0_7 = arith.constant 0 : index
    %c0_8 = arith.constant 0 : index
    %4 = vector.load %arg7[%c0_7, %c0_8] : memref<8x1xi32, #tpu.memory_space<vmem>>, vector<8x1xi32>
    %cst = arith.constant 0.000000e+00 : f32
    %5 = vector.broadcast %cst : f32 to vector<8x64xf32>
    %cst_9 = arith.constant 0.000000e+00 : f32
    %6 = vector.broadcast %cst_9 : f32 to vector<8x64xf32>
    %c0_10 = arith.constant 0 : index
    %c0_11 = arith.constant 0 : index
    %c0_12 = arith.constant 0 : index
    %7 = vector.load %arg0[%c0_10, %c0_11, %c0_12] : memref<8x8x256xf32, #tpu.memory_space<vmem>>, vector<1x8x256xf32>
    %8 = vector.shape_cast %7 : vector<1x8x256xf32> to vector<8x256xf32>
    %cst_13 = arith.constant dense<0.000000e+00> : vector<8x256xf32>
    %9 = tpu.matmul %5, %0, %cst_13 {dimension_numbers = #tpu.dot_dimension_numbers<[1], [0], [0], [1], [0, 0, 1, 1], [], []>} : vector<8x64xf32>, vector<64x256xf32>, vector<8x256xf32> -> vector<8x256xf32>
    %10 = arith.addf %8, %9 : vector<8x256xf32>
    %11 = vector.extract_strided_slice %10 {offsets = [0, 0], sizes = [8, 192], strides = [1, 1]} : vector<8x256xf32> to vector<8x192xf32>
    %12 = arith.negf %11 : vector<8x192xf32>
    %13 = math.exp %12 : vector<8x192xf32>
    %cst_14 = arith.constant 1.000000e+00 : f32
    %14 = vector.broadcast %cst_14 : f32 to vector<8x192xf32>
    %15 = arith.addf %14, %13 : vector<8x192xf32>
    %16 = arith.divf %14, %15 : vector<8x192xf32>
    %17 = vector.extract_strided_slice %10 {offsets = [0, 192], sizes = [8, 64], strides = [1, 1]} : vector<8x256xf32> to vector<8x64xf32>
    %18 = math.tanh %17 : vector<8x64xf32>
    %19 = vector.extract_strided_slice %16 {offsets = [0, 0], sizes = [8, 64], strides = [1, 1]} : vector<8x192xf32> to vector<8x64xf32>
    %20 = vector.extract_strided_slice %16 {offsets = [0, 64], sizes = [8, 64], strides = [1, 1]} : vector<8x192xf32> to vector<8x64xf32>
    %21 = vector.extract_strided_slice %16 {offsets = [0, 128], sizes = [8, 64], strides = [1, 1]} : vector<8x192xf32> to vector<8x64xf32>
    %22 = arith.mulf %20, %6 : vector<8x64xf32>
    %23 = arith.mulf %19, %18 : vector<8x64xf32>
    %24 = arith.addf %22, %23 : vector<8x64xf32>
    %25 = math.tanh %24 : vector<8x64xf32>
    %26 = arith.mulf %21, %25 : vector<8x64xf32>
    %27 = vector.extract_strided_slice %26 {offsets = [0, 0], sizes = [8, 32], strides = [1, 1]} : vector<8x64xf32> to vector<8x32xf32>
    %c0_15 = arith.constant 0 : index
    %c0_16 = arith.constant 0 : index
    %28 = vector.load %arg9[%c0_15, %c0_16] : memref<64x32xf32, #tpu.memory_space<vmem>>, vector<8x32xf32>
    tpu.vector_store %arg9[%c0_15, %c0_16], %27 {strides = array<i32>} : memref<64x32xf32, #tpu.memory_space<vmem>>, vector<8x32xf32>,
    %29 = vector.extract_strided_slice %26 {offsets = [0, 32], sizes = [8, 32], strides = [1, 1]} : vector<8x64xf32> to vector<8x32xf32>
    %c56 = arith.constant 56 : index
    %c0_17 = arith.constant 0 : index
    %30 = vector.load %arg10[%c56, %c0_17] : memref<64x32xf32, #tpu.memory_space<vmem>>, vector<8x32xf32>
    tpu.vector_store %arg10[%c56, %c0_17], %29 {strides = array<i32>} : memref<64x32xf32, #tpu.memory_space<vmem>>, vector<8x32xf32>,
    %c1 = arith.constant 1 : index
    %c0_18 = arith.constant 0 : index
    %c0_19 = arith.constant 0 : index
    %31 = vector.load %arg0[%c1, %c0_18, %c0_19] : memref<8x8x256xf32, #tpu.memory_space<vmem>>, vector<1x8x256xf32>
    %32 = vector.shape_cast %31 : vector<1x8x256xf32> to vector<8x256xf32>
    %cst_20 = arith.constant dense<0.000000e+00> : vector<8x256xf32>
    %33 = tpu.matmul %26, %0, %cst_20 {dimension_numbers = #tpu.dot_dimension_numbers<[1], [0], [0], [1], [0, 0, 1, 1], [], []>} : vector<8x64xf32>, vector<64x256xf32>, vector<8x256xf32> -> vector<8x256xf32>
    %34 = arith.addf %32, %33 : vector<8x256xf32>
    %35 = vector.extract_strided_slice %34 {offsets = [0, 0], sizes = [8, 192], strides = [1, 1]} : vector<8x256xf32> to vector<8x192xf32>
    %36 = arith.negf %35 : vector<8x192xf32>
    %37 = math.exp %36 : vector<8x192xf32>
    %cst_21 = arith.constant 1.000000e+00 : f32
    %38 = vector.broadcast %cst_21 : f32 to vector<8x192xf32>
    %39 = arith.addf %38, %37 : vector<8x192xf32>
    %40 = arith.divf %38, %39 : vector<8x192xf32>
    %41 = vector.extract_strided_slice %34 {offsets = [0, 192], sizes = [8, 64], strides = [1, 1]} : vector<8x256xf32> to vector<8x64xf32>
    %42 = math.tanh %41 : vector<8x64xf32>
    %43 = vector.extract_strided_slice %40 {offsets = [0, 0], sizes = [8, 64], strides = [1, 1]} : vector<8x192xf32> to vector<8x64xf32>
    %44 = vector.extract_strided_slice %40 {offsets = [0, 64], sizes = [8, 64], strides = [1, 1]} : vector<8x192xf32> to vector<8x64xf32>
    %45 = vector.extract_strided_slice %40 {offsets = [0, 128], sizes = [8, 64], strides = [1, 1]} : vector<8x192xf32> to vector<8x64xf32>
    %46 = arith.mulf %44, %24 : vector<8x64xf32>
    %47 = arith.mulf %43, %42 : vector<8x64xf32>
    %48 = arith.addf %46, %47 : vector<8x64xf32>
    %49 = math.tanh %48 : vector<8x64xf32>
    %50 = arith.mulf %45, %49 : vector<8x64xf32>
    %51 = vector.extract_strided_slice %50 {offsets = [0, 0], sizes = [8, 32], strides = [1, 1]} : vector<8x64xf32> to vector<8x32xf32>
    %c8 = arith.constant 8 : index
    %c0_22 = arith.constant 0 : index
    %52 = vector.load %arg9[%c8, %c0_22] : memref<64x32xf32, #tpu.memory_space<vmem>>, vector<8x32xf32>
    tpu.vector_store %arg9[%c8, %c0_22], %51 {strides = array<i32>} : memref<64x32xf32, #tpu.memory_space<vmem>>, vector<8x32xf32>,
    %53 = vector.extract_strided_slice %50 {offsets = [0, 32], sizes = [8, 32], strides = [1, 1]} : vector<8x64xf32> to vector<8x32xf32>
    %c48 = arith.constant 48 : index
    %c0_23 = arith.constant 0 : index
    %54 = vector.load %arg10[%c48, %c0_23] : memref<64x32xf32, #tpu.memory_space<vmem>>, vector<8x32xf32>
    tpu.vector_store %arg10[%c48, %c0_23], %53 {strides = array<i32>} : memref<64x32xf32, #tpu.memory_space<vmem>>, vector<8x32xf32>,
    %c2 = arith.constant 2 : index
    %c0_24 = arith.constant 0 : index
    %c0_25 = arith.constant 0 : index
    %55 = vector.load %arg0[%c2, %c0_24, %c0_25] : memref<8x8x256xf32, #tpu.memory_space<vmem>>, vector<1x8x256xf32>
    %56 = vector.shape_cast %55 : vector<1x8x256xf32> to vector<8x256xf32>
    %cst_26 = arith.constant dense<0.000000e+00> : vector<8x256xf32>
    %57 = tpu.matmul %50, %0, %cst_26 {dimension_numbers = #tpu.dot_dimension_numbers<[1], [0], [0], [1], [0, 0, 1, 1], [], []>} : vector<8x64xf32>, vector<64x256xf32>, vector<8x256xf32> -> vector<8x256xf32>
    %58 = arith.addf %56, %57 : vector<8x256xf32>
    %59 = vector.extract_strided_slice %58 {offsets = [0, 0], sizes = [8, 192], strides = [1, 1]} : vector<8x256xf32> to vector<8x192xf32>
    %60 = arith.negf %59 : vector<8x192xf32>
    %61 = math.exp %60 : vector<8x192xf32>
    %cst_27 = arith.constant 1.000000e+00 : f32
    %62 = vector.broadcast %cst_27 : f32 to vector<8x192xf32>
    %63 = arith.addf %62, %61 : vector<8x192xf32>
    %64 = arith.divf %62, %63 : vector<8x192xf32>
    %65 = vector.extract_strided_slice %58 {offsets = [0, 192], sizes = [8, 64], strides = [1, 1]} : vector<8x256xf32> to vector<8x64xf32>
    %66 = math.tanh %65 : vector<8x64xf32>
    %67 = vector.extract_strided_slice %64 {offsets = [0, 0], sizes = [8, 64], strides = [1, 1]} : vector<8x192xf32> to vector<8x64xf32>
    %68 = vector.extract_strided_slice %64 {offsets = [0, 64], sizes = [8, 64], strides = [1, 1]} : vector<8x192xf32> to vector<8x64xf32>
    %69 = vector.extract_strided_slice %64 {offsets = [0, 128], sizes = [8, 64], strides = [1, 1]} : vector<8x192xf32> to vector<8x64xf32>
    %70 = arith.mulf %68, %48 : vector<8x64xf32>
    %71 = arith.mulf %67, %66 : vector<8x64xf32>
    %72 = arith.addf %70, %71 : vector<8x64xf32>
    %73 = math.tanh %72 : vector<8x64xf32>
    %74 = arith.mulf %69, %73 : vector<8x64xf32>
    %75 = vector.extract_strided_slice %74 {offsets = [0, 0], sizes = [8, 32], strides = [1, 1]} : vector<8x64xf32> to vector<8x32xf32>
    %c16 = arith.constant 16 : index
    %c0_28 = arith.constant 0 : index
    %76 = vector.load %arg9[%c16, %c0_28] : memref<64x32xf32, #tpu.memory_space<vmem>>, vector<8x32xf32>
    tpu.vector_store %arg9[%c16, %c0_28], %75 {strides = array<i32>} : memref<64x32xf32, #tpu.memory_space<vmem>>, vector<8x32xf32>,
    %77 = vector.extract_strided_slice %74 {offsets = [0, 32], sizes = [8, 32], strides = [1, 1]} : vector<8x64xf32> to vector<8x32xf32>
    %c40 = arith.constant 40 : index
    %c0_29 = arith.constant 0 : index
    %78 = vector.load %arg10[%c40, %c0_29] : memref<64x32xf32, #tpu.memory_space<vmem>>, vector<8x32xf32>
    tpu.vector_store %arg10[%c40, %c0_29], %77 {strides = array<i32>} : memref<64x32xf32, #tpu.memory_space<vmem>>, vector<8x32xf32>,
    %c3 = arith.constant 3 : index
    %c0_30 = arith.constant 0 : index
    %c0_31 = arith.constant 0 : index
    %79 = vector.load %arg0[%c3, %c0_30, %c0_31] : memref<8x8x256xf32, #tpu.memory_space<vmem>>, vector<1x8x256xf32>
    %80 = vector.shape_cast %79 : vector<1x8x256xf32> to vector<8x256xf32>
    %cst_32 = arith.constant dense<0.000000e+00> : vector<8x256xf32>
    %81 = tpu.matmul %74, %0, %cst_32 {dimension_numbers = #tpu.dot_dimension_numbers<[1], [0], [0], [1], [0, 0, 1, 1], [], []>} : vector<8x64xf32>, vector<64x256xf32>, vector<8x256xf32> -> vector<8x256xf32>
    %82 = arith.addf %80, %81 : vector<8x256xf32>
    %83 = vector.extract_strided_slice %82 {offsets = [0, 0], sizes = [8, 192], strides = [1, 1]} : vector<8x256xf32> to vector<8x192xf32>
    %84 = arith.negf %83 : vector<8x192xf32>
    %85 = math.exp %84 : vector<8x192xf32>
    %cst_33 = arith.constant 1.000000e+00 : f32
    %86 = vector.broadcast %cst_33 : f32 to vector<8x192xf32>
    %87 = arith.addf %86, %85 : vector<8x192xf32>
    %88 = arith.divf %86, %87 : vector<8x192xf32>
    %89 = vector.extract_strided_slice %82 {offsets = [0, 192], sizes = [8, 64], strides = [1, 1]} : vector<8x256xf32> to vector<8x64xf32>
    %90 = math.tanh %89 : vector<8x64xf32>
    %91 = vector.extract_strided_slice %88 {offsets = [0, 0], sizes = [8, 64], strides = [1, 1]} : vector<8x192xf32> to vector<8x64xf32>
    %92 = vector.extract_strided_slice %88 {offsets = [0, 64], sizes = [8, 64], strides = [1, 1]} : vector<8x192xf32> to vector<8x64xf32>
    %93 = vector.extract_strided_slice %88 {offsets = [0, 128], sizes = [8, 64], strides = [1, 1]} : vector<8x192xf32> to vector<8x64xf32>
    %94 = arith.mulf %92, %72 : vector<8x64xf32>
    %95 = arith.mulf %91, %90 : vector<8x64xf32>
    %96 = arith.addf %94, %95 : vector<8x64xf32>
    %97 = math.tanh %96 : vector<8x64xf32>
    %98 = arith.mulf %93, %97 : vector<8x64xf32>
    %99 = vector.extract_strided_slice %98 {offsets = [0, 0], sizes = [8, 32], strides = [1, 1]} : vector<8x64xf32> to vector<8x32xf32>
    %c24 = arith.constant 24 : index
    %c0_34 = arith.constant 0 : index
    %100 = vector.load %arg9[%c24, %c0_34] : memref<64x32xf32, #tpu.memory_space<vmem>>, vector<8x32xf32>
    tpu.vector_store %arg9[%c24, %c0_34], %99 {strides = array<i32>} : memref<64x32xf32, #tpu.memory_space<vmem>>, vector<8x32xf32>,
    %101 = vector.extract_strided_slice %98 {offsets = [0, 32], sizes = [8, 32], strides = [1, 1]} : vector<8x64xf32> to vector<8x32xf32>
    %c32 = arith.constant 32 : index
    %c0_35 = arith.constant 0 : index
    %102 = vector.load %arg10[%c32, %c0_35] : memref<64x32xf32, #tpu.memory_space<vmem>>, vector<8x32xf32>
    tpu.vector_store %arg10[%c32, %c0_35], %101 {strides = array<i32>} : memref<64x32xf32, #tpu.memory_space<vmem>>, vector<8x32xf32>,
    %c4 = arith.constant 4 : index
    %c0_36 = arith.constant 0 : index
    %c0_37 = arith.constant 0 : index
    %103 = vector.load %arg0[%c4, %c0_36, %c0_37] : memref<8x8x256xf32, #tpu.memory_space<vmem>>, vector<1x8x256xf32>
    %104 = vector.shape_cast %103 : vector<1x8x256xf32> to vector<8x256xf32>
    %cst_38 = arith.constant dense<0.000000e+00> : vector<8x256xf32>
    %105 = tpu.matmul %98, %0, %cst_38 {dimension_numbers = #tpu.dot_dimension_numbers<[1], [0], [0], [1], [0, 0, 1, 1], [], []>} : vector<8x64xf32>, vector<64x256xf32>, vector<8x256xf32> -> vector<8x256xf32>
    %106 = arith.addf %104, %105 : vector<8x256xf32>
    %107 = vector.extract_strided_slice %106 {offsets = [0, 0], sizes = [8, 192], strides = [1, 1]} : vector<8x256xf32> to vector<8x192xf32>
    %108 = arith.negf %107 : vector<8x192xf32>
    %109 = math.exp %108 : vector<8x192xf32>
    %cst_39 = arith.constant 1.000000e+00 : f32
    %110 = vector.broadcast %cst_39 : f32 to vector<8x192xf32>
    %111 = arith.addf %110, %109 : vector<8x192xf32>
    %112 = arith.divf %110, %111 : vector<8x192xf32>
    %113 = vector.extract_strided_slice %106 {offsets = [0, 192], sizes = [8, 64], strides = [1, 1]} : vector<8x256xf32> to vector<8x64xf32>
    %114 = math.tanh %113 : vector<8x64xf32>
    %115 = vector.extract_strided_slice %112 {offsets = [0, 0], sizes = [8, 64], strides = [1, 1]} : vector<8x192xf32> to vector<8x64xf32>
    %116 = vector.extract_strided_slice %112 {offsets = [0, 64], sizes = [8, 64], strides = [1, 1]} : vector<8x192xf32> to vector<8x64xf32>
    %117 = vector.extract_strided_slice %112 {offsets = [0, 128], sizes = [8, 64], strides = [1, 1]} : vector<8x192xf32> to vector<8x64xf32>
    %118 = arith.mulf %116, %96 : vector<8x64xf32>
    %119 = arith.mulf %115, %114 : vector<8x64xf32>
    %120 = arith.addf %118, %119 : vector<8x64xf32>
    %121 = math.tanh %120 : vector<8x64xf32>
    %122 = arith.mulf %117, %121 : vector<8x64xf32>
    %123 = vector.extract_strided_slice %122 {offsets = [0, 0], sizes = [8, 32], strides = [1, 1]} : vector<8x64xf32> to vector<8x32xf32>
    %c32_40 = arith.constant 32 : index
    %c0_41 = arith.constant 0 : index
    %124 = vector.load %arg9[%c32_40, %c0_41] : memref<64x32xf32, #tpu.memory_space<vmem>>, vector<8x32xf32>
    tpu.vector_store %arg9[%c32_40, %c0_41], %123 {strides = array<i32>} : memref<64x32xf32, #tpu.memory_space<vmem>>, vector<8x32xf32>,
    %125 = vector.extract_strided_slice %122 {offsets = [0, 32], sizes = [8, 32], strides = [1, 1]} : vector<8x64xf32> to vector<8x32xf32>
    %c24_42 = arith.constant 24 : index
    %c0_43 = arith.constant 0 : index
    %126 = vector.load %arg10[%c24_42, %c0_43] : memref<64x32xf32, #tpu.memory_space<vmem>>, vector<8x32xf32>
    tpu.vector_store %arg10[%c24_42, %c0_43], %125 {strides = array<i32>} : memref<64x32xf32, #tpu.memory_space<vmem>>, vector<8x32xf32>,
    %c5 = arith.constant 5 : index
    %c0_44 = arith.constant 0 : index
    %c0_45 = arith.constant 0 : index
    %127 = vector.load %arg0[%c5, %c0_44, %c0_45] : memref<8x8x256xf32, #tpu.memory_space<vmem>>, vector<1x8x256xf32>
    %128 = vector.shape_cast %127 : vector<1x8x256xf32> to vector<8x256xf32>
    %cst_46 = arith.constant dense<0.000000e+00> : vector<8x256xf32>
    %129 = tpu.matmul %122, %0, %cst_46 {dimension_numbers = #tpu.dot_dimension_numbers<[1], [0], [0], [1], [0, 0, 1, 1], [], []>} : vector<8x64xf32>, vector<64x256xf32>, vector<8x256xf32> -> vector<8x256xf32>
    %130 = arith.addf %128, %129 : vector<8x256xf32>
    %131 = vector.extract_strided_slice %130 {offsets = [0, 0], sizes = [8, 192], strides = [1, 1]} : vector<8x256xf32> to vector<8x192xf32>
    %132 = arith.negf %131 : vector<8x192xf32>
    %133 = math.exp %132 : vector<8x192xf32>
    %cst_47 = arith.constant 1.000000e+00 : f32
    %134 = vector.broadcast %cst_47 : f32 to vector<8x192xf32>
    %135 = arith.addf %134, %133 : vector<8x192xf32>
    %136 = arith.divf %134, %135 : vector<8x192xf32>
    %137 = vector.extract_strided_slice %130 {offsets = [0, 192], sizes = [8, 64], strides = [1, 1]} : vector<8x256xf32> to vector<8x64xf32>
    %138 = math.tanh %137 : vector<8x64xf32>
    %139 = vector.extract_strided_slice %136 {offsets = [0, 0], sizes = [8, 64], strides = [1, 1]} : vector<8x192xf32> to vector<8x64xf32>
    %140 = vector.extract_strided_slice %136 {offsets = [0, 64], sizes = [8, 64], strides = [1, 1]} : vector<8x192xf32> to vector<8x64xf32>
    %141 = vector.extract_strided_slice %136 {offsets = [0, 128], sizes = [8, 64], strides = [1, 1]} : vector<8x192xf32> to vector<8x64xf32>
    %142 = arith.mulf %140, %120 : vector<8x64xf32>
    %143 = arith.mulf %139, %138 : vector<8x64xf32>
    %144 = arith.addf %142, %143 : vector<8x64xf32>
    %145 = math.tanh %144 : vector<8x64xf32>
    %146 = arith.mulf %141, %145 : vector<8x64xf32>
    %147 = vector.extract_strided_slice %146 {offsets = [0, 0], sizes = [8, 32], strides = [1, 1]} : vector<8x64xf32> to vector<8x32xf32>
    %c40_48 = arith.constant 40 : index
    %c0_49 = arith.constant 0 : index
    %148 = vector.load %arg9[%c40_48, %c0_49] : memref<64x32xf32, #tpu.memory_space<vmem>>, vector<8x32xf32>
    tpu.vector_store %arg9[%c40_48, %c0_49], %147 {strides = array<i32>} : memref<64x32xf32, #tpu.memory_space<vmem>>, vector<8x32xf32>,
    %149 = vector.extract_strided_slice %146 {offsets = [0, 32], sizes = [8, 32], strides = [1, 1]} : vector<8x64xf32> to vector<8x32xf32>
    %c16_50 = arith.constant 16 : index
    %c0_51 = arith.constant 0 : index
    %150 = vector.load %arg10[%c16_50, %c0_51] : memref<64x32xf32, #tpu.memory_space<vmem>>, vector<8x32xf32>
    tpu.vector_store %arg10[%c16_50, %c0_51], %149 {strides = array<i32>} : memref<64x32xf32, #tpu.memory_space<vmem>>, vector<8x32xf32>,
    %c6 = arith.constant 6 : index
    %c0_52 = arith.constant 0 : index
    %c0_53 = arith.constant 0 : index
    %151 = vector.load %arg0[%c6, %c0_52, %c0_53] : memref<8x8x256xf32, #tpu.memory_space<vmem>>, vector<1x8x256xf32>
    %152 = vector.shape_cast %151 : vector<1x8x256xf32> to vector<8x256xf32>
    %cst_54 = arith.constant dense<0.000000e+00> : vector<8x256xf32>
    %153 = tpu.matmul %146, %0, %cst_54 {dimension_numbers = #tpu.dot_dimension_numbers<[1], [0], [0], [1], [0, 0, 1, 1], [], []>} : vector<8x64xf32>, vector<64x256xf32>, vector<8x256xf32> -> vector<8x256xf32>
    %154 = arith.addf %152, %153 : vector<8x256xf32>
    %155 = vector.extract_strided_slice %154 {offsets = [0, 0], sizes = [8, 192], strides = [1, 1]} : vector<8x256xf32> to vector<8x192xf32>
    %156 = arith.negf %155 : vector<8x192xf32>
    %157 = math.exp %156 : vector<8x192xf32>
    %cst_55 = arith.constant 1.000000e+00 : f32
    %158 = vector.broadcast %cst_55 : f32 to vector<8x192xf32>
    %159 = arith.addf %158, %157 : vector<8x192xf32>
    %160 = arith.divf %158, %159 : vector<8x192xf32>
    %161 = vector.extract_strided_slice %154 {offsets = [0, 192], sizes = [8, 64], strides = [1, 1]} : vector<8x256xf32> to vector<8x64xf32>
    %162 = math.tanh %161 : vector<8x64xf32>
    %163 = vector.extract_strided_slice %160 {offsets = [0, 0], sizes = [8, 64], strides = [1, 1]} : vector<8x192xf32> to vector<8x64xf32>
    %164 = vector.extract_strided_slice %160 {offsets = [0, 64], sizes = [8, 64], strides = [1, 1]} : vector<8x192xf32> to vector<8x64xf32>
    %165 = vector.extract_strided_slice %160 {offsets = [0, 128], sizes = [8, 64], strides = [1, 1]} : vector<8x192xf32> to vector<8x64xf32>
    %166 = arith.mulf %164, %144 : vector<8x64xf32>
    %167 = arith.mulf %163, %162 : vector<8x64xf32>
    %168 = arith.addf %166, %167 : vector<8x64xf32>
    %169 = math.tanh %168 : vector<8x64xf32>
    %170 = arith.mulf %165, %169 : vector<8x64xf32>
    %171 = vector.extract_strided_slice %170 {offsets = [0, 0], sizes = [8, 32], strides = [1, 1]} : vector<8x64xf32> to vector<8x32xf32>
    %c48_56 = arith.constant 48 : index
    %c0_57 = arith.constant 0 : index
    %172 = vector.load %arg9[%c48_56, %c0_57] : memref<64x32xf32, #tpu.memory_space<vmem>>, vector<8x32xf32>
    tpu.vector_store %arg9[%c48_56, %c0_57], %171 {strides = array<i32>} : memref<64x32xf32, #tpu.memory_space<vmem>>, vector<8x32xf32>,
    %173 = vector.extract_strided_slice %170 {offsets = [0, 32], sizes = [8, 32], strides = [1, 1]} : vector<8x64xf32> to vector<8x32xf32>
    %c8_58 = arith.constant 8 : index
    %c0_59 = arith.constant 0 : index
    %174 = vector.load %arg10[%c8_58, %c0_59] : memref<64x32xf32, #tpu.memory_space<vmem>>, vector<8x32xf32>
    tpu.vector_store %arg10[%c8_58, %c0_59], %173 {strides = array<i32>} : memref<64x32xf32, #tpu.memory_space<vmem>>, vector<8x32xf32>,
    %c7 = arith.constant 7 : index
    %c0_60 = arith.constant 0 : index
    %c0_61 = arith.constant 0 : index
    %175 = vector.load %arg0[%c7, %c0_60, %c0_61] : memref<8x8x256xf32, #tpu.memory_space<vmem>>, vector<1x8x256xf32>
    %176 = vector.shape_cast %175 : vector<1x8x256xf32> to vector<8x256xf32>
    %cst_62 = arith.constant dense<0.000000e+00> : vector<8x256xf32>
    %177 = tpu.matmul %170, %0, %cst_62 {dimension_numbers = #tpu.dot_dimension_numbers<[1], [0], [0], [1], [0, 0, 1, 1], [], []>} : vector<8x64xf32>, vector<64x256xf32>, vector<8x256xf32> -> vector<8x256xf32>
    %178 = arith.addf %176, %177 : vector<8x256xf32>
    %179 = vector.extract_strided_slice %178 {offsets = [0, 0], sizes = [8, 192], strides = [1, 1]} : vector<8x256xf32> to vector<8x192xf32>
    %180 = arith.negf %179 : vector<8x192xf32>
    %181 = math.exp %180 : vector<8x192xf32>
    %cst_63 = arith.constant 1.000000e+00 : f32
    %182 = vector.broadcast %cst_63 : f32 to vector<8x192xf32>
    %183 = arith.addf %182, %181 : vector<8x192xf32>
    %184 = arith.divf %182, %183 : vector<8x192xf32>
    %185 = vector.extract_strided_slice %178 {offsets = [0, 192], sizes = [8, 64], strides = [1, 1]} : vector<8x256xf32> to vector<8x64xf32>
    %186 = math.tanh %185 : vector<8x64xf32>
    %187 = vector.extract_strided_slice %184 {offsets = [0, 0], sizes = [8, 64], strides = [1, 1]} : vector<8x192xf32> to vector<8x64xf32>
    %188 = vector.extract_strided_slice %184 {offsets = [0, 64], sizes = [8, 64], strides = [1, 1]} : vector<8x192xf32> to vector<8x64xf32>
    %189 = vector.extract_strided_slice %184 {offsets = [0, 128], sizes = [8, 64], strides = [1, 1]} : vector<8x192xf32> to vector<8x64xf32>
    %190 = arith.mulf %188, %168 : vector<8x64xf32>
    %191 = arith.mulf %187, %186 : vector<8x64xf32>
    %192 = arith.addf %190, %191 : vector<8x64xf32>
    %193 = math.tanh %192 : vector<8x64xf32>
    %194 = arith.mulf %189, %193 : vector<8x64xf32>
    %195 = vector.extract_strided_slice %194 {offsets = [0, 0], sizes = [8, 32], strides = [1, 1]} : vector<8x64xf32> to vector<8x32xf32>
    %c56_64 = arith.constant 56 : index
    %c0_65 = arith.constant 0 : index
    %196 = vector.load %arg9[%c56_64, %c0_65] : memref<64x32xf32, #tpu.memory_space<vmem>>, vector<8x32xf32>
    tpu.vector_store %arg9[%c56_64, %c0_65], %195 {strides = array<i32>} : memref<64x32xf32, #tpu.memory_space<vmem>>, vector<8x32xf32>,
    %197 = vector.extract_strided_slice %194 {offsets = [0, 32], sizes = [8, 32], strides = [1, 1]} : vector<8x64xf32> to vector<8x32xf32>
    %c0_66 = arith.constant 0 : index
    %c0_67 = arith.constant 0 : index
    %198 = vector.load %arg10[%c0_66, %c0_67] : memref<64x32xf32, #tpu.memory_space<vmem>>, vector<8x32xf32>
    tpu.vector_store %arg10[%c0_66, %c0_67], %197 {strides = array<i32>} : memref<64x32xf32, #tpu.memory_space<vmem>>, vector<8x32xf32>,
    %c0_68 = arith.constant 0 : index
    %c0_69 = arith.constant 0 : index
    %199 = vector.load %arg9[%c0_68, %c0_69] : memref<64x32xf32, #tpu.memory_space<vmem>>, vector<64x32xf32>
    %200 = vector.extract_strided_slice %1 {offsets = [0, 0], sizes = [32, 8], strides = [1, 1]} : vector<64x8xf32> to vector<32x8xf32>
    %cst_70 = arith.constant dense<0.000000e+00> : vector<64x8xf32>
    %201 = tpu.matmul %199, %200, %cst_70 {dimension_numbers = #tpu.dot_dimension_numbers<[1], [0], [0], [1], [0, 0, 1, 1], [], []>} : vector<64x32xf32>, vector<32x8xf32>, vector<64x8xf32> -> vector<64x8xf32>
    %c0_71 = arith.constant 0 : index
    %c0_72 = arith.constant 0 : index
    %202 = vector.load %arg10[%c0_71, %c0_72] : memref<64x32xf32, #tpu.memory_space<vmem>>, vector<64x32xf32>
    %203 = vector.extract_strided_slice %1 {offsets = [32, 0], sizes = [32, 8], strides = [1, 1]} : vector<64x8xf32> to vector<32x8xf32>
    %cst_73 = arith.constant dense<0.000000e+00> : vector<64x8xf32>
    %204 = tpu.matmul %202, %203, %cst_73 {dimension_numbers = #tpu.dot_dimension_numbers<[1], [0], [0], [1], [0, 0, 1, 1], [], []>} : vector<64x32xf32>, vector<32x8xf32>, vector<64x8xf32> -> vector<64x8xf32>
    %205 = arith.addf %201, %204 : vector<64x8xf32>
    %206 = vector.broadcast %2 : vector<1x8xf32> to vector<64x8xf32>
    %207 = arith.addf %205, %206 : vector<64x8xf32>
    %208 = vector.extract_strided_slice %207 {offsets = [0, 0], sizes = [8, 8], strides = [1, 1]} : vector<64x8xf32> to vector<8x8xf32>
    %209 = vector.extract_strided_slice %207 {offsets = [8, 0], sizes = [8, 8], strides = [1, 1]} : vector<64x8xf32> to vector<8x8xf32>
    %210 = vector.extract_strided_slice %207 {offsets = [16, 0], sizes = [8, 8], strides = [1, 1]} : vector<64x8xf32> to vector<8x8xf32>
    %211 = vector.extract_strided_slice %207 {offsets = [24, 0], sizes = [8, 8], strides = [1, 1]} : vector<64x8xf32> to vector<8x8xf32>
    %212 = vector.extract_strided_slice %207 {offsets = [32, 0], sizes = [8, 8], strides = [1, 1]} : vector<64x8xf32> to vector<8x8xf32>
    %213 = vector.extract_strided_slice %207 {offsets = [40, 0], sizes = [8, 8], strides = [1, 1]} : vector<64x8xf32> to vector<8x8xf32>
    %214 = vector.extract_strided_slice %207 {offsets = [48, 0], sizes = [8, 8], strides = [1, 1]} : vector<64x8xf32> to vector<8x8xf32>
    %215 = vector.extract_strided_slice %207 {offsets = [56, 0], sizes = [8, 8], strides = [1, 1]} : vector<64x8xf32> to vector<8x8xf32>
    %c0_74 = arith.constant 0 : index
    %c0_75 = arith.constant 0 : index
    %216 = vector.load %arg5[%c0_74, %c0_75] : memref<1x8xf32, #tpu.memory_space<vmem>>, vector<1x8xf32>
    %217 = vector.broadcast %216 : vector<1x8xf32> to vector<8x8xf32>
    %218 = arith.addf %217, %208 : vector<8x8xf32>
    %219 = tpu.iota {dimensions = array<i32: 1>} : vector<8x8x8xi32>
    %220 = vector.shape_cast %218 : vector<8x8xf32> to vector<8x8x1xf32>
    %221 = vector.shape_cast %3 : vector<8x8xf32> to vector<1x8x8xf32>
    %222 = vector.broadcast %220 : vector<8x8x1xf32> to vector<8x8x8xf32>
    %223 = vector.broadcast %221 : vector<1x8x8xf32> to vector<8x8x8xf32>
    %224 = arith.addf %222, %223 : vector<8x8x8xf32>
    %225 = vector.shape_cast %209 : vector<8x8xf32> to vector<8x1x8xf32>
    %226 = vector.broadcast %225 : vector<8x1x8xf32> to vector<8x8x8xf32>
    %227 = arith.addf %224, %226 : vector<8x8x8xf32>
    %cst_76 = arith.constant dense<0xFF800000> : vector<8x8xf32>
    %228 = vector.multi_reduction <maximumf>, %227, %cst_76 [1] : vector<8x8x8xf32> to vector<8x8xf32>
    %229 = vector.shape_cast %228 : vector<8x8xf32> to vector<8x1x8xf32>
    %230 = vector.broadcast %229 : vector<8x1x8xf32> to vector<8x8x8xf32>
    %231 = arith.cmpf oeq, %227, %230 : vector<8x8x8xf32>
    %c8_i32 = arith.constant 8 : i32
    %232 = vector.broadcast %c8_i32 : i32 to vector<8x8x8xi32>
    %233 = arith.select %231, %219, %232 : vector<8x8x8xi1>, vector<8x8x8xi32>
    %cst_77 = arith.constant dense<2147483647> : vector<8x8xi32>
    %234 = vector.multi_reduction <minsi>, %233, %cst_77 [1] : vector<8x8x8xi32> to vector<8x8xi32>
    %c1_i32 = arith.constant 1 : i32
    %235 = vector.broadcast %c1_i32 : i32 to vector<8x1xi32>
    %236 = arith.cmpi sge, %4, %235 : vector<8x1xi32>
    %237 = vector.shape_cast %236 : vector<8x1xi1> to vector<8x1xi1>
    %238 = vector.broadcast %237 : vector<8x1xi1> to vector<8x8xi1>
    %239 = arith.select %238, %228, %218 : vector<8x8xi1>, vector<8x8xf32>
    %240 = vector.shape_cast %239 : vector<8x8xf32> to vector<8x8x1xf32>
    %241 = vector.shape_cast %3 : vector<8x8xf32> to vector<1x8x8xf32>
    %242 = vector.broadcast %240 : vector<8x8x1xf32> to vector<8x8x8xf32>
    %243 = vector.broadcast %241 : vector<1x8x8xf32> to vector<8x8x8xf32>
    %244 = arith.addf %242, %243 : vector<8x8x8xf32>
    %245 = vector.shape_cast %210 : vector<8x8xf32> to vector<8x1x8xf32>
    %246 = vector.broadcast %245 : vector<8x1x8xf32> to vector<8x8x8xf32>
    %247 = arith.addf %244, %246 : vector<8x8x8xf32>
    %cst_78 = arith.constant dense<0xFF800000> : vector<8x8xf32>
    %248 = vector.multi_reduction <maximumf>, %247, %cst_78 [1] : vector<8x8x8xf32> to vector<8x8xf32>
    %249 = vector.shape_cast %248 : vector<8x8xf32> to vector<8x1x8xf32>
    %250 = vector.broadcast %249 : vector<8x1x8xf32> to vector<8x8x8xf32>
    %251 = arith.cmpf oeq, %247, %250 : vector<8x8x8xf32>
    %c8_i32_79 = arith.constant 8 : i32
    %252 = vector.broadcast %c8_i32_79 : i32 to vector<8x8x8xi32>
    %253 = arith.select %251, %219, %252 : vector<8x8x8xi1>, vector<8x8x8xi32>
    %cst_80 = arith.constant dense<2147483647> : vector<8x8xi32>
    %254 = vector.multi_reduction <minsi>, %253, %cst_80 [1] : vector<8x8x8xi32> to vector<8x8xi32>
    %c2_i32 = arith.constant 2 : i32
    %255 = vector.broadcast %c2_i32 : i32 to vector<8x1xi32>
    %256 = arith.cmpi sge, %4, %255 : vector<8x1xi32>
    %257 = vector.shape_cast %256 : vector<8x1xi1> to vector<8x1xi1>
    %258 = vector.broadcast %257 : vector<8x1xi1> to vector<8x8xi1>
    %259 = arith.select %258, %248, %239 : vector<8x8xi1>, vector<8x8xf32>
    %260 = vector.shape_cast %259 : vector<8x8xf32> to vector<8x8x1xf32>
    %261 = vector.shape_cast %3 : vector<8x8xf32> to vector<1x8x8xf32>
    %262 = vector.broadcast %260 : vector<8x8x1xf32> to vector<8x8x8xf32>
    %263 = vector.broadcast %261 : vector<1x8x8xf32> to vector<8x8x8xf32>
    %264 = arith.addf %262, %263 : vector<8x8x8xf32>
    %265 = vector.shape_cast %211 : vector<8x8xf32> to vector<8x1x8xf32>
    %266 = vector.broadcast %265 : vector<8x1x8xf32> to vector<8x8x8xf32>
    %267 = arith.addf %264, %266 : vector<8x8x8xf32>
    %cst_81 = arith.constant dense<0xFF800000> : vector<8x8xf32>
    %268 = vector.multi_reduction <maximumf>, %267, %cst_81 [1] : vector<8x8x8xf32> to vector<8x8xf32>
    %269 = vector.shape_cast %268 : vector<8x8xf32> to vector<8x1x8xf32>
    %270 = vector.broadcast %269 : vector<8x1x8xf32> to vector<8x8x8xf32>
    %271 = arith.cmpf oeq, %267, %270 : vector<8x8x8xf32>
    %c8_i32_82 = arith.constant 8 : i32
    %272 = vector.broadcast %c8_i32_82 : i32 to vector<8x8x8xi32>
    %273 = arith.select %271, %219, %272 : vector<8x8x8xi1>, vector<8x8x8xi32>
    %cst_83 = arith.constant dense<2147483647> : vector<8x8xi32>
    %274 = vector.multi_reduction <minsi>, %273, %cst_83 [1] : vector<8x8x8xi32> to vector<8x8xi32>
    %c3_i32 = arith.constant 3 : i32
    %275 = vector.broadcast %c3_i32 : i32 to vector<8x1xi32>
    %276 = arith.cmpi sge, %4, %275 : vector<8x1xi32>
    %277 = vector.shape_cast %276 : vector<8x1xi1> to vector<8x1xi1>
    %278 = vector.broadcast %277 : vector<8x1xi1> to vector<8x8xi1>
    %279 = arith.select %278, %268, %259 : vector<8x8xi1>, vector<8x8xf32>
    %280 = vector.shape_cast %279 : vector<8x8xf32> to vector<8x8x1xf32>
    %281 = vector.shape_cast %3 : vector<8x8xf32> to vector<1x8x8xf32>
    %282 = vector.broadcast %280 : vector<8x8x1xf32> to vector<8x8x8xf32>
    %283 = vector.broadcast %281 : vector<1x8x8xf32> to vector<8x8x8xf32>
    %284 = arith.addf %282, %283 : vector<8x8x8xf32>
    %285 = vector.shape_cast %212 : vector<8x8xf32> to vector<8x1x8xf32>
    %286 = vector.broadcast %285 : vector<8x1x8xf32> to vector<8x8x8xf32>
    %287 = arith.addf %284, %286 : vector<8x8x8xf32>
    %cst_84 = arith.constant dense<0xFF800000> : vector<8x8xf32>
    %288 = vector.multi_reduction <maximumf>, %287, %cst_84 [1] : vector<8x8x8xf32> to vector<8x8xf32>
    %289 = vector.shape_cast %288 : vector<8x8xf32> to vector<8x1x8xf32>
    %290 = vector.broadcast %289 : vector<8x1x8xf32> to vector<8x8x8xf32>
    %291 = arith.cmpf oeq, %287, %290 : vector<8x8x8xf32>
    %c8_i32_85 = arith.constant 8 : i32
    %292 = vector.broadcast %c8_i32_85 : i32 to vector<8x8x8xi32>
    %293 = arith.select %291, %219, %292 : vector<8x8x8xi1>, vector<8x8x8xi32>
    %cst_86 = arith.constant dense<2147483647> : vector<8x8xi32>
    %294 = vector.multi_reduction <minsi>, %293, %cst_86 [1] : vector<8x8x8xi32> to vector<8x8xi32>
    %c4_i32 = arith.constant 4 : i32
    %295 = vector.broadcast %c4_i32 : i32 to vector<8x1xi32>
    %296 = arith.cmpi sge, %4, %295 : vector<8x1xi32>
    %297 = vector.shape_cast %296 : vector<8x1xi1> to vector<8x1xi1>
    %298 = vector.broadcast %297 : vector<8x1xi1> to vector<8x8xi1>
    %299 = arith.select %298, %288, %279 : vector<8x8xi1>, vector<8x8xf32>
    %300 = vector.shape_cast %299 : vector<8x8xf32> to vector<8x8x1xf32>
    %301 = vector.shape_cast %3 : vector<8x8xf32> to vector<1x8x8xf32>
    %302 = vector.broadcast %300 : vector<8x8x1xf32> to vector<8x8x8xf32>
    %303 = vector.broadcast %301 : vector<1x8x8xf32> to vector<8x8x8xf32>
    %304 = arith.addf %302, %303 : vector<8x8x8xf32>
    %305 = vector.shape_cast %213 : vector<8x8xf32> to vector<8x1x8xf32>
    %306 = vector.broadcast %305 : vector<8x1x8xf32> to vector<8x8x8xf32>
    %307 = arith.addf %304, %306 : vector<8x8x8xf32>
    %cst_87 = arith.constant dense<0xFF800000> : vector<8x8xf32>
    %308 = vector.multi_reduction <maximumf>, %307, %cst_87 [1] : vector<8x8x8xf32> to vector<8x8xf32>
    %309 = vector.shape_cast %308 : vector<8x8xf32> to vector<8x1x8xf32>
    %310 = vector.broadcast %309 : vector<8x1x8xf32> to vector<8x8x8xf32>
    %311 = arith.cmpf oeq, %307, %310 : vector<8x8x8xf32>
    %c8_i32_88 = arith.constant 8 : i32
    %312 = vector.broadcast %c8_i32_88 : i32 to vector<8x8x8xi32>
    %313 = arith.select %311, %219, %312 : vector<8x8x8xi1>, vector<8x8x8xi32>
    %cst_89 = arith.constant dense<2147483647> : vector<8x8xi32>
    %314 = vector.multi_reduction <minsi>, %313, %cst_89 [1] : vector<8x8x8xi32> to vector<8x8xi32>
    %c5_i32 = arith.constant 5 : i32
    %315 = vector.broadcast %c5_i32 : i32 to vector<8x1xi32>
    %316 = arith.cmpi sge, %4, %315 : vector<8x1xi32>
    %317 = vector.shape_cast %316 : vector<8x1xi1> to vector<8x1xi1>
    %318 = vector.broadcast %317 : vector<8x1xi1> to vector<8x8xi1>
    %319 = arith.select %318, %308, %299 : vector<8x8xi1>, vector<8x8xf32>
    %320 = vector.shape_cast %319 : vector<8x8xf32> to vector<8x8x1xf32>
    %321 = vector.shape_cast %3 : vector<8x8xf32> to vector<1x8x8xf32>
    %322 = vector.broadcast %320 : vector<8x8x1xf32> to vector<8x8x8xf32>
    %323 = vector.broadcast %321 : vector<1x8x8xf32> to vector<8x8x8xf32>
    %324 = arith.addf %322, %323 : vector<8x8x8xf32>
    %325 = vector.shape_cast %214 : vector<8x8xf32> to vector<8x1x8xf32>
    %326 = vector.broadcast %325 : vector<8x1x8xf32> to vector<8x8x8xf32>
    %327 = arith.addf %324, %326 : vector<8x8x8xf32>
    %cst_90 = arith.constant dense<0xFF800000> : vector<8x8xf32>
    %328 = vector.multi_reduction <maximumf>, %327, %cst_90 [1] : vector<8x8x8xf32> to vector<8x8xf32>
    %329 = vector.shape_cast %328 : vector<8x8xf32> to vector<8x1x8xf32>
    %330 = vector.broadcast %329 : vector<8x1x8xf32> to vector<8x8x8xf32>
    %331 = arith.cmpf oeq, %327, %330 : vector<8x8x8xf32>
    %c8_i32_91 = arith.constant 8 : i32
    %332 = vector.broadcast %c8_i32_91 : i32 to vector<8x8x8xi32>
    %333 = arith.select %331, %219, %332 : vector<8x8x8xi1>, vector<8x8x8xi32>
    %cst_92 = arith.constant dense<2147483647> : vector<8x8xi32>
    %334 = vector.multi_reduction <minsi>, %333, %cst_92 [1] : vector<8x8x8xi32> to vector<8x8xi32>
    %c6_i32 = arith.constant 6 : i32
    %335 = vector.broadcast %c6_i32 : i32 to vector<8x1xi32>
    %336 = arith.cmpi sge, %4, %335 : vector<8x1xi32>
    %337 = vector.shape_cast %336 : vector<8x1xi1> to vector<8x1xi1>
    %338 = vector.broadcast %337 : vector<8x1xi1> to vector<8x8xi1>
    %339 = arith.select %338, %328, %319 : vector<8x8xi1>, vector<8x8xf32>
    %340 = vector.shape_cast %339 : vector<8x8xf32> to vector<8x8x1xf32>
    %341 = vector.shape_cast %3 : vector<8x8xf32> to vector<1x8x8xf32>
    %342 = vector.broadcast %340 : vector<8x8x1xf32> to vector<8x8x8xf32>
    %343 = vector.broadcast %341 : vector<1x8x8xf32> to vector<8x8x8xf32>
    %344 = arith.addf %342, %343 : vector<8x8x8xf32>
    %345 = vector.shape_cast %215 : vector<8x8xf32> to vector<8x1x8xf32>
    %346 = vector.broadcast %345 : vector<8x1x8xf32> to vector<8x8x8xf32>
    %347 = arith.addf %344, %346 : vector<8x8x8xf32>
    %cst_93 = arith.constant dense<0xFF800000> : vector<8x8xf32>
    %348 = vector.multi_reduction <maximumf>, %347, %cst_93 [1] : vector<8x8x8xf32> to vector<8x8xf32>
    %349 = vector.shape_cast %348 : vector<8x8xf32> to vector<8x1x8xf32>
    %350 = vector.broadcast %349 : vector<8x1x8xf32> to vector<8x8x8xf32>
    %351 = arith.cmpf oeq, %347, %350 : vector<8x8x8xf32>
    %c8_i32_94 = arith.constant 8 : i32
    %352 = vector.broadcast %c8_i32_94 : i32 to vector<8x8x8xi32>
    %353 = arith.select %351, %219, %352 : vector<8x8x8xi1>, vector<8x8x8xi32>
    %cst_95 = arith.constant dense<2147483647> : vector<8x8xi32>
    %354 = vector.multi_reduction <minsi>, %353, %cst_95 [1] : vector<8x8x8xi32> to vector<8x8xi32>
    %c7_i32 = arith.constant 7 : i32
    %355 = vector.broadcast %c7_i32 : i32 to vector<8x1xi32>
    %356 = arith.cmpi sge, %4, %355 : vector<8x1xi32>
    %357 = vector.shape_cast %356 : vector<8x1xi1> to vector<8x1xi1>
    %358 = vector.broadcast %357 : vector<8x1xi1> to vector<8x8xi1>
    %359 = arith.select %358, %348, %339 : vector<8x8xi1>, vector<8x8xf32>
    %c0_96 = arith.constant 0 : index
    %c0_97 = arith.constant 0 : index
    %360 = vector.load %arg6[%c0_96, %c0_97] : memref<1x8xf32, #tpu.memory_space<vmem>>, vector<1x8xf32>
    %361 = vector.broadcast %360 : vector<1x8xf32> to vector<8x8xf32>
    %362 = arith.addf %359, %361 : vector<8x8xf32>
    %363 = tpu.iota {dimensions = array<i32: 1>} : vector<8x8xi32>
    %cst_98 = arith.constant dense<0xFF800000> : vector<8xf32>
    %364 = vector.multi_reduction <maximumf>, %362, %cst_98 [1] : vector<8x8xf32> to vector<8xf32>
    %365 = vector.shape_cast %364 : vector<8xf32> to vector<8x1xf32>
    %366 = vector.broadcast %365 : vector<8x1xf32> to vector<8x8xf32>
    %367 = arith.cmpf oeq, %362, %366 : vector<8x8xf32>
    %368 = arith.sitofp %363 : vector<8x8xi32> to vector<8x8xf32>
    %cst_99 = arith.constant 8.000000e+00 : f32
    %369 = vector.broadcast %cst_99 : f32 to vector<8x8xf32>
    %370 = arith.select %367, %368, %369 : vector<8x8xi1>, vector<8x8xf32>
    %cst_100 = arith.constant dense<0x7F800000> : vector<8xf32>
    %371 = vector.multi_reduction <minimumf>, %370, %cst_100 [1] : vector<8x8xf32> to vector<8xf32>
    %372 = vector.shape_cast %371 : vector<8xf32> to vector<8x1xf32>
    %373 = arith.fptosi %372 : vector<8x1xf32> to vector<8x1xi32>
    %374 = tpu.iota {dimensions = array<i32: 1>} : vector<8x8xi32>
    %c-1_i32 = arith.constant -1 : i32
    %375 = vector.broadcast %c-1_i32 : i32 to vector<8x8xi32>
    %c7_i32_101 = arith.constant 7 : i32
    %376 = vector.broadcast %c7_i32_101 : i32 to vector<8x8xi32>
    %377 = arith.cmpi eq, %374, %376 : vector<8x8xi32>
    %c7_i32_102 = arith.constant 7 : i32
    %378 = vector.broadcast %c7_i32_102 : i32 to vector<8x1xi32>
    %379 = arith.cmpi sge, %4, %378 : vector<8x1xi32>
    %380 = vector.broadcast %379 : vector<8x1xi1> to vector<8x8xi1>
    %381 = arith.andi %377, %380 : vector<8x8xi1>
    %382 = vector.shape_cast %373 : vector<8x1xi32> to vector<8x1xi32>
    %383 = vector.broadcast %382 : vector<8x1xi32> to vector<8x8xi32>
    %384 = arith.select %381, %383, %375 : vector<8x8xi1>, vector<8x8xi32>
    %385 = vector.broadcast %373 : vector<8x1xi32> to vector<8x8xi32>
    %386 = arith.cmpi eq, %363, %385 : vector<8x8xi32>
    %387 = arith.sitofp %354 : vector<8x8xi32> to vector<8x8xf32>
    %cst_103 = arith.constant 0.000000e+00 : f32
    %388 = vector.broadcast %cst_103 : f32 to vector<8x8xf32>
    %389 = arith.select %386, %387, %388 : vector<8x8xi1>, vector<8x8xf32>
    %cst_104 = arith.constant dense<0.000000e+00> : vector<8xf32>
    %390 = vector.multi_reduction <add>, %389, %cst_104 [1] : vector<8x8xf32> to vector<8xf32>
    %391 = vector.shape_cast %390 : vector<8xf32> to vector<8x1xf32>
    %392 = arith.fptosi %391 : vector<8x1xf32> to vector<8x1xi32>
    %c6_i32_105 = arith.constant 6 : i32
    %393 = vector.broadcast %c6_i32_105 : i32 to vector<8x1xi32>
    %394 = arith.cmpi sgt, %4, %393 : vector<8x1xi32>
    %395 = arith.select %394, %392, %373 : vector<8x1xi1>, vector<8x1xi32>
    %c6_i32_106 = arith.constant 6 : i32
    %396 = vector.broadcast %c6_i32_106 : i32 to vector<8x8xi32>
    %397 = arith.cmpi eq, %374, %396 : vector<8x8xi32>
    %c6_i32_107 = arith.constant 6 : i32
    %398 = vector.broadcast %c6_i32_107 : i32 to vector<8x1xi32>
    %399 = arith.cmpi sge, %4, %398 : vector<8x1xi32>
    %400 = vector.broadcast %399 : vector<8x1xi1> to vector<8x8xi1>
    %401 = arith.andi %397, %400 : vector<8x8xi1>
    %402 = vector.shape_cast %395 : vector<8x1xi32> to vector<8x1xi32>
    %403 = vector.broadcast %402 : vector<8x1xi32> to vector<8x8xi32>
    %404 = arith.select %401, %403, %384 : vector<8x8xi1>, vector<8x8xi32>
    %405 = vector.broadcast %395 : vector<8x1xi32> to vector<8x8xi32>
    %406 = arith.cmpi eq, %363, %405 : vector<8x8xi32>
    %407 = arith.sitofp %334 : vector<8x8xi32> to vector<8x8xf32>
    %cst_108 = arith.constant 0.000000e+00 : f32
    %408 = vector.broadcast %cst_108 : f32 to vector<8x8xf32>
    %409 = arith.select %406, %407, %408 : vector<8x8xi1>, vector<8x8xf32>
    %cst_109 = arith.constant dense<0.000000e+00> : vector<8xf32>
    %410 = vector.multi_reduction <add>, %409, %cst_109 [1] : vector<8x8xf32> to vector<8xf32>
    %411 = vector.shape_cast %410 : vector<8xf32> to vector<8x1xf32>
    %412 = arith.fptosi %411 : vector<8x1xf32> to vector<8x1xi32>
    %c5_i32_110 = arith.constant 5 : i32
    %413 = vector.broadcast %c5_i32_110 : i32 to vector<8x1xi32>
    %414 = arith.cmpi sgt, %4, %413 : vector<8x1xi32>
    %415 = arith.select %414, %412, %395 : vector<8x1xi1>, vector<8x1xi32>
    %c5_i32_111 = arith.constant 5 : i32
    %416 = vector.broadcast %c5_i32_111 : i32 to vector<8x8xi32>
    %417 = arith.cmpi eq, %374, %416 : vector<8x8xi32>
    %c5_i32_112 = arith.constant 5 : i32
    %418 = vector.broadcast %c5_i32_112 : i32 to vector<8x1xi32>
    %419 = arith.cmpi sge, %4, %418 : vector<8x1xi32>
    %420 = vector.broadcast %419 : vector<8x1xi1> to vector<8x8xi1>
    %421 = arith.andi %417, %420 : vector<8x8xi1>
    %422 = vector.shape_cast %415 : vector<8x1xi32> to vector<8x1xi32>
    %423 = vector.broadcast %422 : vector<8x1xi32> to vector<8x8xi32>
    %424 = arith.select %421, %423, %404 : vector<8x8xi1>, vector<8x8xi32>
    %425 = vector.broadcast %415 : vector<8x1xi32> to vector<8x8xi32>
    %426 = arith.cmpi eq, %363, %425 : vector<8x8xi32>
    %427 = arith.sitofp %314 : vector<8x8xi32> to vector<8x8xf32>
    %cst_113 = arith.constant 0.000000e+00 : f32
    %428 = vector.broadcast %cst_113 : f32 to vector<8x8xf32>
    %429 = arith.select %426, %427, %428 : vector<8x8xi1>, vector<8x8xf32>
    %cst_114 = arith.constant dense<0.000000e+00> : vector<8xf32>
    %430 = vector.multi_reduction <add>, %429, %cst_114 [1] : vector<8x8xf32> to vector<8xf32>
    %431 = vector.shape_cast %430 : vector<8xf32> to vector<8x1xf32>
    %432 = arith.fptosi %431 : vector<8x1xf32> to vector<8x1xi32>
    %c4_i32_115 = arith.constant 4 : i32
    %433 = vector.broadcast %c4_i32_115 : i32 to vector<8x1xi32>
    %434 = arith.cmpi sgt, %4, %433 : vector<8x1xi32>
    %435 = arith.select %434, %432, %415 : vector<8x1xi1>, vector<8x1xi32>
    %c4_i32_116 = arith.constant 4 : i32
    %436 = vector.broadcast %c4_i32_116 : i32 to vector<8x8xi32>
    %437 = arith.cmpi eq, %374, %436 : vector<8x8xi32>
    %c4_i32_117 = arith.constant 4 : i32
    %438 = vector.broadcast %c4_i32_117 : i32 to vector<8x1xi32>
    %439 = arith.cmpi sge, %4, %438 : vector<8x1xi32>
    %440 = vector.broadcast %439 : vector<8x1xi1> to vector<8x8xi1>
    %441 = arith.andi %437, %440 : vector<8x8xi1>
    %442 = vector.shape_cast %435 : vector<8x1xi32> to vector<8x1xi32>
    %443 = vector.broadcast %442 : vector<8x1xi32> to vector<8x8xi32>
    %444 = arith.select %441, %443, %424 : vector<8x8xi1>, vector<8x8xi32>
    %445 = vector.broadcast %435 : vector<8x1xi32> to vector<8x8xi32>
    %446 = arith.cmpi eq, %363, %445 : vector<8x8xi32>
    %447 = arith.sitofp %294 : vector<8x8xi32> to vector<8x8xf32>
    %cst_118 = arith.constant 0.000000e+00 : f32
    %448 = vector.broadcast %cst_118 : f32 to vector<8x8xf32>
    %449 = arith.select %446, %447, %448 : vector<8x8xi1>, vector<8x8xf32>
    %cst_119 = arith.constant dense<0.000000e+00> : vector<8xf32>
    %450 = vector.multi_reduction <add>, %449, %cst_119 [1] : vector<8x8xf32> to vector<8xf32>
    %451 = vector.shape_cast %450 : vector<8xf32> to vector<8x1xf32>
    %452 = arith.fptosi %451 : vector<8x1xf32> to vector<8x1xi32>
    %c3_i32_120 = arith.constant 3 : i32
    %453 = vector.broadcast %c3_i32_120 : i32 to vector<8x1xi32>
    %454 = arith.cmpi sgt, %4, %453 : vector<8x1xi32>
    %455 = arith.select %454, %452, %435 : vector<8x1xi1>, vector<8x1xi32>
    %c3_i32_121 = arith.constant 3 : i32
    %456 = vector.broadcast %c3_i32_121 : i32 to vector<8x8xi32>
    %457 = arith.cmpi eq, %374, %456 : vector<8x8xi32>
    %c3_i32_122 = arith.constant 3 : i32
    %458 = vector.broadcast %c3_i32_122 : i32 to vector<8x1xi32>
    %459 = arith.cmpi sge, %4, %458 : vector<8x1xi32>
    %460 = vector.broadcast %459 : vector<8x1xi1> to vector<8x8xi1>
    %461 = arith.andi %457, %460 : vector<8x8xi1>
    %462 = vector.shape_cast %455 : vector<8x1xi32> to vector<8x1xi32>
    %463 = vector.broadcast %462 : vector<8x1xi32> to vector<8x8xi32>
    %464 = arith.select %461, %463, %444 : vector<8x8xi1>, vector<8x8xi32>
    %465 = vector.broadcast %455 : vector<8x1xi32> to vector<8x8xi32>
    %466 = arith.cmpi eq, %363, %465 : vector<8x8xi32>
    %467 = arith.sitofp %274 : vector<8x8xi32> to vector<8x8xf32>
    %cst_123 = arith.constant 0.000000e+00 : f32
    %468 = vector.broadcast %cst_123 : f32 to vector<8x8xf32>
    %469 = arith.select %466, %467, %468 : vector<8x8xi1>, vector<8x8xf32>
    %cst_124 = arith.constant dense<0.000000e+00> : vector<8xf32>
    %470 = vector.multi_reduction <add>, %469, %cst_124 [1] : vector<8x8xf32> to vector<8xf32>
    %471 = vector.shape_cast %470 : vector<8xf32> to vector<8x1xf32>
    %472 = arith.fptosi %471 : vector<8x1xf32> to vector<8x1xi32>
    %c2_i32_125 = arith.constant 2 : i32
    %473 = vector.broadcast %c2_i32_125 : i32 to vector<8x1xi32>
    %474 = arith.cmpi sgt, %4, %473 : vector<8x1xi32>
    %475 = arith.select %474, %472, %455 : vector<8x1xi1>, vector<8x1xi32>
    %c2_i32_126 = arith.constant 2 : i32
    %476 = vector.broadcast %c2_i32_126 : i32 to vector<8x8xi32>
    %477 = arith.cmpi eq, %374, %476 : vector<8x8xi32>
    %c2_i32_127 = arith.constant 2 : i32
    %478 = vector.broadcast %c2_i32_127 : i32 to vector<8x1xi32>
    %479 = arith.cmpi sge, %4, %478 : vector<8x1xi32>
    %480 = vector.broadcast %479 : vector<8x1xi1> to vector<8x8xi1>
    %481 = arith.andi %477, %480 : vector<8x8xi1>
    %482 = vector.shape_cast %475 : vector<8x1xi32> to vector<8x1xi32>
    %483 = vector.broadcast %482 : vector<8x1xi32> to vector<8x8xi32>
    %484 = arith.select %481, %483, %464 : vector<8x8xi1>, vector<8x8xi32>
    %485 = vector.broadcast %475 : vector<8x1xi32> to vector<8x8xi32>
    %486 = arith.cmpi eq, %363, %485 : vector<8x8xi32>
    %487 = arith.sitofp %254 : vector<8x8xi32> to vector<8x8xf32>
    %cst_128 = arith.constant 0.000000e+00 : f32
    %488 = vector.broadcast %cst_128 : f32 to vector<8x8xf32>
    %489 = arith.select %486, %487, %488 : vector<8x8xi1>, vector<8x8xf32>
    %cst_129 = arith.constant dense<0.000000e+00> : vector<8xf32>
    %490 = vector.multi_reduction <add>, %489, %cst_129 [1] : vector<8x8xf32> to vector<8xf32>
    %491 = vector.shape_cast %490 : vector<8xf32> to vector<8x1xf32>
    %492 = arith.fptosi %491 : vector<8x1xf32> to vector<8x1xi32>
    %c1_i32_130 = arith.constant 1 : i32
    %493 = vector.broadcast %c1_i32_130 : i32 to vector<8x1xi32>
    %494 = arith.cmpi sgt, %4, %493 : vector<8x1xi32>
    %495 = arith.select %494, %492, %475 : vector<8x1xi1>, vector<8x1xi32>
    %c1_i32_131 = arith.constant 1 : i32
    %496 = vector.broadcast %c1_i32_131 : i32 to vector<8x8xi32>
    %497 = arith.cmpi eq, %374, %496 : vector<8x8xi32>
    %c1_i32_132 = arith.constant 1 : i32
    %498 = vector.broadcast %c1_i32_132 : i32 to vector<8x1xi32>
    %499 = arith.cmpi sge, %4, %498 : vector<8x1xi32>
    %500 = vector.broadcast %499 : vector<8x1xi1> to vector<8x8xi1>
    %501 = arith.andi %497, %500 : vector<8x8xi1>
    %502 = vector.shape_cast %495 : vector<8x1xi32> to vector<8x1xi32>
    %503 = vector.broadcast %502 : vector<8x1xi32> to vector<8x8xi32>
    %504 = arith.select %501, %503, %484 : vector<8x8xi1>, vector<8x8xi32>
    %505 = vector.broadcast %495 : vector<8x1xi32> to vector<8x8xi32>
    %506 = arith.cmpi eq, %363, %505 : vector<8x8xi32>
    %507 = arith.sitofp %234 : vector<8x8xi32> to vector<8x8xf32>
    %cst_133 = arith.constant 0.000000e+00 : f32
    %508 = vector.broadcast %cst_133 : f32 to vector<8x8xf32>
    %509 = arith.select %506, %507, %508 : vector<8x8xi1>, vector<8x8xf32>
    %cst_134 = arith.constant dense<0.000000e+00> : vector<8xf32>
    %510 = vector.multi_reduction <add>, %509, %cst_134 [1] : vector<8x8xf32> to vector<8xf32>
    %511 = vector.shape_cast %510 : vector<8xf32> to vector<8x1xf32>
    %512 = arith.fptosi %511 : vector<8x1xf32> to vector<8x1xi32>
    %c0_i32 = arith.constant 0 : i32
    %513 = vector.broadcast %c0_i32 : i32 to vector<8x1xi32>
    %514 = arith.cmpi sgt, %4, %513 : vector<8x1xi32>
    %515 = arith.select %514, %512, %495 : vector<8x1xi1>, vector<8x1xi32>
    %c0_i32_135 = arith.constant 0 : i32
    %516 = vector.broadcast %c0_i32_135 : i32 to vector<8x8xi32>
    %517 = arith.cmpi eq, %374, %516 : vector<8x8xi32>
    %c0_i32_136 = arith.constant 0 : i32
    %518 = vector.broadcast %c0_i32_136 : i32 to vector<8x1xi32>
    %519 = arith.cmpi sge, %4, %518 : vector<8x1xi32>
    %520 = vector.broadcast %519 : vector<8x1xi1> to vector<8x8xi1>
    %521 = arith.andi %517, %520 : vector<8x8xi1>
    %522 = vector.shape_cast %515 : vector<8x1xi32> to vector<8x1xi32>
    %523 = vector.broadcast %522 : vector<8x1xi32> to vector<8x8xi32>
    %524 = arith.select %521, %523, %504 : vector<8x8xi1>, vector<8x8xi32>
    %c0_137 = arith.constant 0 : index
    %c0_138 = arith.constant 0 : index
    %525 = vector.load %arg8[%c0_137, %c0_138] : memref<8x8xi32, #tpu.memory_space<vmem>>, vector<8x8xi32>
    tpu.vector_store %arg8[%c0_137, %c0_138], %524 {strides = array<i32>} : memref<8x8xi32, #tpu.memory_space<vmem>>, vector<8x8xi32>,
    return
  }
}

</mosaic_0001>

<bundles_post_ra>
// kernel: model_forward.1
= control target key start
LH: loop header
LB: loop body
LE: loop exit
PB: predicated region body
PF: predicated region fallthrough
CT: control target
= control target key end

     0   :  { %v4331_v3 = vmov 0.0   ;;  %s4332_s16 = smov 64   ;;  %vm165_vm0 = vcmask 261120   ;;  %vm58_vm1 = vcmask 523264   ;;  %s4333_s25 = smov 96   ;;  %vm1430_vm3 = vcmask 64512   ;;  %s5832_s1 = inlined_call_operand.vmem [shape: f32[64,256], index: 1, kind: input, shape index: {}]   ;;  %s5833_s0 = inlined_call_operand.vmem [shape: f32[8,8,256], index: 0, kind: input, shape index: {}]   ;;  %s5834_s2 = inlined_call_operand.vmem [shape: f32[64,8], index: 2, kind: input, shape index: {}]   ;;  %s5835_s3 = inlined_call_operand.vmem [shape: f32[1,8], index: 3, kind: input, shape index: {}]   ;;  %s5836_s5 = inlined_call_operand.vmem [shape: f32[1,8], index: 5, kind: input, shape index: {}]   ;;  %s5837_s7 = inlined_call_operand.vmem [shape: s32[8,1], index: 7, kind: input, shape index: {}]   ;;  %s5838_s4 = inlined_call_operand.vmem [shape: f32[8,8], index: 4, kind: input, shape index: {}]   ;;  %s5839_s6 = inlined_call_operand.vmem [shape: f32[1,8], index: 6, kind: input, shape index: {}]   ;;  %s5840_s8 = inlined_call_operand.vmem [shape: s32[8,8], index: 8, kind: output, shape index: {}]  }
   0x1   :  { %v30_v0 = vld [vmem:[%s5832_s1 + $0x8] sm:$0xff]  ;;  %v32_v1 = vld [vmem:[%s5832_s1 + $0x18] sm:$0xff]  ;;  %v29_v2 = vld [vmem:[%s5832_s1] sm:$0xff]  ;;  %126 = vmatprep.mubr.f32.mxu1 %v4331_v3  ;;  %355 = vmatprep.mubr.f32.mxu0 %v4331_v3  ;;  %vm1597_vm6 = vcmask 1041409   ;;  %vm1599_vm11 = vcmask 1042434  }
   0x2   :  { %v4392_v4 = vpack.c.bf16 %v32_v1, %v30_v0  ;;  %v31_v5 = vld [vmem:[%s5832_s1 + $0x10] sm:$0xff]  ;;  %v34_v6 = vld [vmem:[%s5832_s1 + $0x28] sm:$0xff]  ;;  %v36_v7 = vld [vmem:[%s5832_s1 + $0x38] sm:$0xff] }
   0x3   :  { %v4403_v8 = vpack.c.bf16 %v31_v5, %v29_v2  ;;  %v4405_v9 = vpack.c.bf16 %v36_v7, %v34_v6  ;;  %v33_v10 = vld [vmem:[%s5832_s1 + $0x20] sm:$0xff]  ;;  %v35_v11 = vld [vmem:[%s5832_s1 + $0x30] sm:$0xff]  ;;  %v38_v12 = vld [vmem:[%s5832_s1 + $0x48] sm:$0xff] }
   0x4   :  { %4056 = vmatprep.subr.bf16.mxu1 %v4392_v4  ;;  %v40_v13 = vld [vmem:[%s5832_s1 + $0x58] sm:$0xff]  ;;  %4088 = vmatprep.subr.bf16.mxu0 %v4392_v4  ;;  %v4422_v14 = vpack.c.bf16 %v35_v11, %v33_v10  ;;  %v37_v16 = vld [vmem:[%s5832_s1 + $0x40] sm:$0xff]  ;;  %v39_v17 = vld [vmem:[%s5832_s1 + $0x50] sm:$0xff] }
   0x5   :  { %4058 = vmatpush1.bf16.msra.mxu1 %v4403_v8  ;;  %4090 = vmatpush1.bf16.msra.mxu0 %v4403_v8  ;;  %v4426_v15 = vpack.c.bf16 %v40_v13, %v38_v12  ;;  %v42_v18 = vld [vmem:[%s5832_s1 + $0x68] sm:$0xff]  ;;  %v44_v19 = vld [vmem:[%s5832_s1 + $0x78] sm:$0xff]  ;;  %v4442_v20 = vpack.c.bf16 %v39_v17, %v37_v16  ;;  %v41_v22 = vld [vmem:[%s5832_s1 + $0x60] sm:$0xff] }
   0x6   :  { %4060 = vmatprep.subr.bf16.mxu1 %v4405_v9  ;;  %4092 = vmatprep.subr.bf16.mxu0 %v4405_v9  ;;  %v4446_v21 = vpack.c.bf16 %v44_v19, %v42_v18  ;;  %v43_v23 = vld [vmem:[%s5832_s1 + $0x70] sm:$0xff]  ;;  %v57_v25 = vld [vmem:[%s5833_s0 + $0x8] sm:$0xff]  ;;  %v56_v30 = vld [vmem:[%s5833_s0] sm:$0xff] }
   0x7   :  { %v4456_v24 = vpack.c.bf16 %v43_v23, %v41_v22  ;;  %v3938_v48 = vld [vmem:[%s5833_s0 + $0x18] sm:$0xff]  ;;  %v3937_v53 = vld [vmem:[%s5833_s0 + $0x10] sm:$0xff]  ;;  %v3943_v11 = vld [vmem:[%s5833_s0 + $0x28] sm:$0xff] }
   0x8   :  { %v3942_v18 = vld [vmem:[%s5833_s0 + $0x20] sm:$0xff] }
   0x9   :  { %4062 = vmatpush1.bf16.msra.mxu1 %v4422_v14  ;;  %4094 = vmatpush1.bf16.msra.mxu0 %v4422_v14 }
   0xa   :  { %4064 = vmatprep.subr.bf16.mxu1 %v4426_v15  ;;  %4096 = vmatprep.subr.bf16.mxu0 %v4426_v15 }
   0xd   :  { %4066 = vmatpush1.bf16.msra.mxu1 %v4442_v20  ;;  %4098 = vmatpush1.bf16.msra.mxu0 %v4442_v20 }
   0xe   :  { %4068 = vmatprep.subr.bf16.mxu1 %v4446_v21  ;;  %4100 = vmatprep.subr.bf16.mxu0 %v4446_v21 }
  0x11   :  { %4070 = vmatpush1.bf16.msra.mxu1 %v4456_v24  ;;  %4102 = vmatpush1.bf16.msra.mxu0 %v4456_v24 }
  0x12   :  { %4072 = vmatprep.subr.bf16.mxu1 %v4392_v4  ;;  %4120 = vmatprep.subr.bf16.mxu0 %v4392_v4 }
  0x14   :  { %127 = vmatmul.mubr.f32.vlgmr.msra.gmra.mrb[0].mxu1 %v4331_v3 }
  0x15   :  { %4074 = vmatpush1.bf16.msra.mxu1 %v4403_v8  ;;  %241 = vmatprep.mubr.f32.mxu1 %v4331_v3 }
  0x16   :  { %4076 = vmatprep.subr.bf16.mxu1 %v4405_v9 }
  0x19   :  { %4078 = vmatpush1.bf16.msra.mxu1 %v4422_v14 }
  0x1a   :  { %4080 = vmatprep.subr.bf16.mxu1 %v4426_v15 }
  0x1d   :  { %4082 = vmatpush1.bf16.msra.mxu1 %v4442_v20 }
  0x1e   :  { %4084 = vmatprep.subr.bf16.mxu1 %v4446_v21 }
  0x21   :  { %4086 = vmatpush1.bf16.msra.mxu1 %v4456_v24 }
  0x22   :  { %4104 = vmatprep.subr.bf16.mxu1 %v4392_v4 }
  0xe7   :  { %v128_v26 = vpop.f32.mrb[0].mxu1 }
  0xe8   :  { %v130_v27 = vpop.f32.mrb[1].mxu1  ;;  %v133_v31 = vadd.f32 %v128_v26, %v56_v30 }
  0xe9   :  { %v134_v28 = vadd.f32 %v130_v27, %v57_v25 }
  0xea   :  { %v3935_v32 = vmul.f32 -1.442695, %v133_v31 }
  0xeb   :  { %4230 = vtanh.f32 %v134_v28  ;;  %v3936_v42 = vmul.f32 -1.442695, %v134_v28 }
  0xec   :  { %4232 = vpow2.f32 %v3935_v32 }
  0xf5   :  { %v4231_v29 = vpop.eup %4230 }
  0xf6   :  { %150 = vrot.lane.b32.xlu0 %v4231_v29, %s4332_s16  ;;  %v4233_v33 = vpop.eup %4232 }
  0xf7   :  { %v141_v34 = vadd.f32 1.0, %v4233_v33 }
  0xf9   :  { %4234 = vrcp.f32 %v141_v34 }
 0x103   :  { %v4235_v35 = vpop.eup %4234 }
 0x104   :  { %v148_v38 = vmul.f32 0.0, %v4235_v35 }
 0x168   :  { %v151_v36 = vpop.permute.xlu0 %150 }
 0x169   :  { %v153_v37 = vmul.f32 %v4235_v35, %v151_v36 }
 0x16b   :  { %155 = vrot.lane.b32.xlu0 %v153_v37, %s4332_s16 }
 0x1dd   :  { %v156_v39 = vpop.permute.xlu0 %155 }
 0x1de   :  { %v158_v40 = vadd.f32 %v156_v39, %v148_v38  ;;  %v3948_v39 = vld [vmem:[%s5833_s0 + $0x38] sm:$0xff] }
 0x1e0   :  { %4236 = vtanh.f32 %v158_v40 }
 0x1e1   :  { %4238 = vpow2.f32 %v3936_v42 }
 0x1ea   :  { %v4237_v41 = vpop.eup %4236 }
 0x1eb   :  { %161 = vrot.lane.b32.xlu1 %v4237_v41, %s4332_s16  ;;  %v4239_v43 = vpop.eup %4238 }
 0x1ec   :  { %v142_v44 = vadd.f32 1.0, %v4239_v43 }
 0x1ee   :  { %4240 = vrcp.f32 %v142_v44  ;;  %v3947_v44 = vld [vmem:[%s5833_s0 + $0x30] sm:$0xff] }
 0x1f8   :  { %v4241_v45 = vpop.eup %4240 }
 0x25d   :  { %v162_v46 = vpop.permute.xlu1 %161 }
 0x25e   :  { %v4484_v47 = vmul.f32 %v4241_v45, %v162_v46 }
 0x260   :  { %166 = vst.msk [vmem:[#allocation2] sm:$0xff] %vm165_vm0, %v4484_v47  ;;  %3939 = vmatmul.mubr.msk.f32.vlgmr.msra.gmra.mrb[2].mxu1 %vm58_vm1, %v4484_v47 }
 0x261   :  { %4106 = vmatpush1.bf16.msra.mxu1 %v4403_v8  ;;  %469 = vmatprep.mubr.f32.mxu1 %v4331_v3 }
 0x262   :  { %4108 = vmatprep.subr.bf16.mxu1 %v4405_v9 }
 0x265   :  { %4110 = vmatpush1.bf16.msra.mxu1 %v4422_v14 }
 0x266   :  { %4112 = vmatprep.subr.bf16.mxu1 %v4426_v15 }
 0x269   :  { %4114 = vmatpush1.bf16.msra.mxu1 %v4442_v20 }
 0x26a   :  { %4116 = vmatprep.subr.bf16.mxu1 %v4446_v21 }
 0x26d   :  { %4118 = vmatpush1.bf16.msra.mxu1 %v4456_v24 }
 0x26e   :  { %4136 = vmatprep.subr.bf16.mxu1 %v4392_v4 }
 0x333   :  { %v243_v49 = vpop.f32.mrb[2].mxu1 }
 0x334   :  { %v245_v50 = vpop.f32.mrb[3].mxu1  ;;  %v248_v54 = vadd.f32 %v3937_v53, %v243_v49 }
 0x335   :  { %v249_v51 = vadd.f32 %v3938_v48, %v245_v50 }
 0x336   :  { %v3940_v55 = vmul.f32 -1.442695, %v248_v54 }
 0x337   :  { %4242 = vtanh.f32 %v249_v51  ;;  %v3941_v1 = vmul.f32 -1.442695, %v249_v51 }
 0x338   :  { %4244 = vpow2.f32 %v3940_v55 }
 0x341   :  { %v4243_v52 = vpop.eup %4242 }
 0x342   :  { %265 = vrot.lane.b32.xlu1 %v4243_v52, %s4332_s16  ;;  %v4245_v56 = vpop.eup %4244 }
 0x343   :  { %v256_v57 = vadd.f32 1.0, %v4245_v56 }
 0x345   :  { %4246 = vrcp.f32 %v256_v57 }
 0x34f   :  { %v4247_v58 = vpop.eup %4246 }
 0x350   :  { %v263_v61 = vmul.f32 %v4247_v58, %v158_v40 }
 0x3b4   :  { %v266_v59 = vpop.permute.xlu1 %265 }
 0x3b5   :  { %v268_v60 = vmul.f32 %v4247_v58, %v266_v59 }
 0x3b7   :  { %270 = vrot.lane.b32.xlu0 %v268_v60, %s4332_s16 }
 0x429   :  { %v271_v62 = vpop.permute.xlu0 %270 }
 0x42a   :  { %v273_v63 = vadd.f32 %v271_v62, %v263_v61  ;;  %v3953_v62 = vld [vmem:[%s5833_s0 + $0x48] sm:$0xff] }
 0x42c   :  { %4248 = vtanh.f32 %v273_v63 }
 0x42d   :  { %4250 = vpow2.f32 %v3941_v1 }
 0x436   :  { %v4249_v0 = vpop.eup %4248 }
 0x437   :  { %276 = vrot.lane.b32.xlu1 %v4249_v0, %s4332_s16  ;;  %v4251_v2 = vpop.eup %4250 }
 0x438   :  { %v257_v5 = vadd.f32 1.0, %v4251_v2 }
 0x43a   :  { %4252 = vrcp.f32 %v257_v5  ;;  %v3952_v5 = vld [vmem:[%s5833_s0 + $0x40] sm:$0xff] }
 0x444   :  { %v4253_v6 = vpop.eup %4252 }
 0x4a9   :  { %v277_v7 = vpop.permute.xlu1 %276 }
 0x4aa   :  { %v4508_v10 = vmul.f32 %v4253_v6, %v277_v7 }
 0x4ac   :  { %280 = vst.msk [vmem:[#allocation2 + $0x8] sm:$0xff] %vm165_vm0, %v4508_v10  ;;  %3944 = vmatmul.mubr.msk.f32.vlgmr.msra.gmra.mrb[0].mxu0 %vm58_vm1, %v4508_v10 }
 0x4ad   :  { %4122 = vmatpush1.bf16.msra.mxu0 %v4403_v8  ;;  %583 = vmatprep.mubr.f32.mxu0 %v4331_v3 }
 0x4ae   :  { %4124 = vmatprep.subr.bf16.mxu0 %v4405_v9 }
 0x4b1   :  { %4126 = vmatpush1.bf16.msra.mxu0 %v4422_v14 }
 0x4b2   :  { %4128 = vmatprep.subr.bf16.mxu0 %v4426_v15 }
 0x4b5   :  { %4130 = vmatpush1.bf16.msra.mxu0 %v4442_v20 }
 0x4b6   :  { %4132 = vmatprep.subr.bf16.mxu0 %v4446_v21 }
 0x4b9   :  { %4134 = vmatpush1.bf16.msra.mxu0 %v4456_v24 }
 0x4ba   :  { %4152 = vmatprep.subr.bf16.mxu0 %v4392_v4 }
 0x57f   :  { %v357_v12 = vpop.f32.mrb[0].mxu0 }
 0x580   :  { %v359_v13 = vpop.f32.mrb[1].mxu0  ;;  %v362_v19 = vadd.f32 %v3942_v18, %v357_v12 }
 0x581   :  { %v363_v16 = vadd.f32 %v3943_v11, %v359_v13 }
 0x582   :  { %v3945_v22 = vmul.f32 -1.442695, %v362_v19 }
 0x583   :  { %4254 = vtanh.f32 %v363_v16  ;;  %v3946_v33 = vmul.f32 -1.442695, %v363_v16 }
 0x584   :  { %4256 = vpow2.f32 %v3945_v22 }
 0x58d   :  { %v4255_v17 = vpop.eup %4254 }
 0x58e   :  { %379 = vrot.lane.b32.xlu0 %v4255_v17, %s4332_s16  ;;  %v4257_v23 = vpop.eup %4256 }
 0x58f   :  { %v370_v25 = vadd.f32 1.0, %v4257_v23 }
 0x591   :  { %4258 = vrcp.f32 %v370_v25 }
 0x59b   :  { %v4259_v26 = vpop.eup %4258 }
 0x59c   :  { %v377_v29 = vmul.f32 %v4259_v26, %v273_v63 }
 0x600   :  { %v380_v27 = vpop.permute.xlu0 %379 }
 0x601   :  { %v382_v28 = vmul.f32 %v4259_v26, %v380_v27 }
 0x603   :  { %384 = vrot.lane.b32.xlu1 %v382_v28, %s4332_s16 }
 0x675   :  { %v385_v30 = vpop.permute.xlu1 %384 }
 0x676   :  { %v387_v31 = vadd.f32 %v385_v30, %v377_v29 }
 0x678   :  { %4260 = vtanh.f32 %v387_v31 }
 0x679   :  { %4262 = vpow2.f32 %v3946_v33 }
 0x682   :  { %v4261_v32 = vpop.eup %4260 }
 0x683   :  { %390 = vrot.lane.b32.xlu0 %v4261_v32, %s4332_s16  ;;  %v4263_v34 = vpop.eup %4262 }
 0x684   :  { %v371_v35 = vadd.f32 1.0, %v4263_v34 }
 0x686   :  { %4264 = vrcp.f32 %v371_v35 }
 0x690   :  { %v4265_v36 = vpop.eup %4264 }
 0x6f5   :  { %v391_v37 = vpop.permute.xlu0 %390 }
 0x6f6   :  { %v4532_v38 = vmul.f32 %v4265_v36, %v391_v37 }
 0x6f8   :  { %394 = vst.msk [vmem:[#allocation2 + $0x10] sm:$0xff] %vm165_vm0, %v4532_v38  ;;  %3949 = vmatmul.mubr.msk.f32.vlgmr.msra.gmra.mrb[4].mxu1 %vm58_vm1, %v4532_v38 }
 0x6f9   :  { %4138 = vmatpush1.bf16.msra.mxu1 %v4403_v8  ;;  %697 = vmatprep.mubr.f32.mxu1 %v4331_v3 }
 0x6fa   :  { %4140 = vmatprep.subr.bf16.mxu1 %v4405_v9 }
 0x6fd   :  { %4142 = vmatpush1.bf16.msra.mxu1 %v4422_v14 }
 0x6fe   :  { %4144 = vmatprep.subr.bf16.mxu1 %v4426_v15 }
 0x701   :  { %4146 = vmatpush1.bf16.msra.mxu1 %v4442_v20 }
 0x702   :  { %4148 = vmatprep.subr.bf16.mxu1 %v4446_v21 }
 0x705   :  { %4150 = vmatpush1.bf16.msra.mxu1 %v4456_v24 }
 0x706   :  { %4168 = vmatprep.subr.bf16.mxu1 %v4392_v4 }
 0x7cb   :  { %v471_v40 = vpop.f32.mrb[4].mxu1 }
 0x7cc   :  { %v473_v41 = vpop.f32.mrb[5].mxu1  ;;  %v476_v45 = vadd.f32 %v3947_v44, %v471_v40 }
 0x7cd   :  { %v477_v42 = vadd.f32 %v3948_v39, %v473_v41 }
 0x7ce   :  { %v3950_v46 = vmul.f32 -1.442695, %v476_v45 }
 0x7cf   :  { %4266 = vtanh.f32 %v477_v42  ;;  %v3951_v56 = vmul.f32 -1.442695, %v477_v42 }
 0x7d0   :  { %4268 = vpow2.f32 %v3950_v46 }
 0x7d9   :  { %v4267_v43 = vpop.eup %4266 }
 0x7da   :  { %493 = vrot.lane.b32.xlu1 %v4267_v43, %s4332_s16  ;;  %v4269_v48 = vpop.eup %4268 }
 0x7db   :  { %v484_v4 = vadd.f32 1.0, %v4269_v48  ;;  %v3963_v48 = vld [vmem:[%s5833_s0 + $0x68] sm:$0xff] }
 0x7dd   :  { %4270 = vrcp.f32 %v484_v4 }
 0x7e7   :  { %v4271_v49 = vpop.eup %4270 }
 0x7e8   :  { %v491_v52 = vmul.f32 %v4271_v49, %v387_v31  ;;  %v3958_v31 = vld [vmem:[%s5833_s0 + $0x58] sm:$0xff] }
 0x84c   :  { %v494_v50 = vpop.permute.xlu1 %493 }
 0x84d   :  { %v496_v51 = vmul.f32 %v4271_v49, %v494_v50 }
 0x84f   :  { %498 = vrot.lane.b32.xlu0 %v496_v51, %s4332_s16 }
 0x8c1   :  { %v499_v53 = vpop.permute.xlu0 %498 }
 0x8c2   :  { %v501_v54 = vadd.f32 %v499_v53, %v491_v52  ;;  %v3962_v52 = vld [vmem:[%s5833_s0 + $0x60] sm:$0xff] }
 0x8c4   :  { %4272 = vtanh.f32 %v501_v54 }
 0x8c5   :  { %4274 = vpow2.f32 %v3951_v56 }
 0x8ce   :  { %v4273_v55 = vpop.eup %4272 }
 0x8cf   :  { %504 = vrot.lane.b32.xlu1 %v4273_v55, %s4332_s16  ;;  %v4275_v57 = vpop.eup %4274 }
 0x8d0   :  { %v485_v58 = vadd.f32 1.0, %v4275_v57 }
 0x8d2   :  { %4276 = vrcp.f32 %v485_v58 }
 0x8dc   :  { %v4277_v59 = vpop.eup %4276 }
 0x941   :  { %v505_v60 = vpop.permute.xlu1 %504 }
 0x942   :  { %v4556_v61 = vmul.f32 %v4277_v59, %v505_v60 }
 0x944   :  { %508 = vst.msk [vmem:[#allocation2 + $0x18] sm:$0xff] %vm165_vm0, %v4556_v61  ;;  %3954 = vmatmul.mubr.msk.f32.vlgmr.msra.gmra.mrb[2].mxu0 %vm58_vm1, %v4556_v61 }
 0x945   :  { %4154 = vmatpush1.bf16.msra.mxu0 %v4403_v8  ;;  %811 = vmatprep.mubr.f32.mxu0 %v4331_v3 }
 0x946   :  { %4156 = vmatprep.subr.bf16.mxu0 %v4405_v9 }
 0x949   :  { %4158 = vmatpush1.bf16.msra.mxu0 %v4422_v14 }
 0x94a   :  { %4160 = vmatprep.subr.bf16.mxu0 %v4426_v15 }
 0x94d   :  { %4162 = vmatpush1.bf16.msra.mxu0 %v4442_v20 }
 0x94e   :  { %4164 = vmatprep.subr.bf16.mxu0 %v4446_v21 }
 0x951   :  { %4166 = vmatpush1.bf16.msra.mxu0 %v4456_v24 }
 0xa17   :  { %v585_v63 = vpop.f32.mrb[2].mxu0 }
 0xa18   :  { %v587_v0 = vpop.f32.mrb[3].mxu0  ;;  %v590_v6 = vadd.f32 %v3952_v5, %v585_v63 }
 0xa19   :  { %v591_v1 = vadd.f32 %v3953_v62, %v587_v0 }
 0xa1a   :  { %v3955_v7 = vmul.f32 -1.442695, %v590_v6 }
 0xa1b   :  { %4278 = vtanh.f32 %v591_v1  ;;  %v3956_v25 = vmul.f32 -1.442695, %v591_v1 }
 0xa1c   :  { %4280 = vpow2.f32 %v3955_v7 }
 0xa25   :  { %v4279_v2 = vpop.eup %4278 }
 0xa26   :  { %607 = vrot.lane.b32.xlu0 %v4279_v2, %s4332_s16  ;;  %v4281_v11 = vpop.eup %4280 }
 0xa27   :  { %v598_v12 = vadd.f32 1.0, %v4281_v11 }
 0xa29   :  { %4282 = vrcp.f32 %v598_v12  ;;  %v3968_v12 = vld [vmem:[%s5833_s0 + $0x78] sm:$0xff] }
 0xa33   :  { %v4283_v13 = vpop.eup %4282 }
 0xa34   :  { %v605_v18 = vmul.f32 %v4283_v13, %v501_v54 }
 0xa98   :  { %v608_v16 = vpop.permute.xlu0 %607 }
 0xa99   :  { %v610_v17 = vmul.f32 %v4283_v13, %v608_v16 }
 0xa9b   :  { %612 = vrot.lane.b32.xlu1 %v610_v17, %s4332_s16 }
 0xb0d   :  { %v613_v19 = vpop.permute.xlu1 %612 }
 0xb0e   :  { %v615_v22 = vadd.f32 %v613_v19, %v605_v18  ;;  %v3967_v19 = vld [vmem:[%s5833_s0 + $0x70] sm:$0xff] }
 0xb10   :  { %4284 = vtanh.f32 %v615_v22 }
 0xb11   :  { %4286 = vpow2.f32 %v3956_v25 }
 0xb1a   :  { %v4285_v23 = vpop.eup %4284 }
 0xb1b   :  { %618 = vrot.lane.b32.xlu0 %v4285_v23, %s4332_s16  ;;  %v4287_v26 = vpop.eup %4286 }
 0xb1c   :  { %v599_v27 = vadd.f32 1.0, %v4287_v26 }
 0xb1e   :  { %4288 = vrcp.f32 %v599_v27 }
 0xb28   :  { %v4289_v28 = vpop.eup %4288 }
 0xb8d   :  { %v619_v29 = vpop.permute.xlu0 %618 }
 0xb8e   :  { %v4579_v30 = vmul.f32 %v4289_v28, %v619_v29 }
 0xb90   :  { %622 = vst.msk [vmem:[#allocation2 + $0x20] sm:$0xff] %vm165_vm0, %v4579_v30  ;;  %3959 = vmatmul.mubr.msk.f32.vlgmr.msra.gmra.mrb[6].mxu1 %vm58_vm1, %v4579_v30 }
 0xb91   :  { %4170 = vmatpush1.bf16.msra.mxu1 %v4403_v8  ;;  %925 = vmatprep.mubr.f32.mxu1 %v4331_v3 }
 0xb92   :  { %4172 = vmatprep.subr.bf16.mxu1 %v4405_v9  ;;  %v3957_v9 = vld [vmem:[%s5833_s0 + $0x50] sm:$0xff] }
 0xb95   :  { %4174 = vmatpush1.bf16.msra.mxu1 %v4422_v14 }
 0xb96   :  { %4176 = vmatprep.subr.bf16.mxu1 %v4426_v15 }
 0xb99   :  { %4178 = vmatpush1.bf16.msra.mxu1 %v4442_v20 }
 0xb9a   :  { %4180 = vmatprep.subr.bf16.mxu1 %v4446_v21 }
 0xb9d   :  { %4182 = vmatpush1.bf16.msra.mxu1 %v4456_v24 }
 0xc63   :  { %v699_v32 = vpop.f32.mrb[6].mxu1 }
 0xc64   :  { %v701_v8 = vpop.f32.mrb[7].mxu1  ;;  %v704_v14 = vadd.f32 %v3957_v9, %v699_v32 }
 0xc65   :  { %v705_v33 = vadd.f32 %v3958_v31, %v701_v8 }
 0xc66   :  { %v3960_v15 = vmul.f32 -1.442695, %v704_v14 }
 0xc67   :  { %4290 = vtanh.f32 %v705_v33  ;;  %v3961_v41 = vmul.f32 -1.442695, %v705_v33 }
 0xc68   :  { %4292 = vpow2.f32 %v3960_v15  ;;  %v49_v15 = vld [vmem:[%s5834_s2 + $0x20] sm:$0xff] }
 0xc71   :  { %v4291_v3 = vpop.eup %4290 }
 0xc72   :  { %721 = vrot.lane.b32.xlu1 %v4291_v3, %s4332_s16  ;;  %v4293_v20 = vpop.eup %4292 }
 0xc73   :  { %v712_v21 = vadd.f32 1.0, %v4293_v20  ;;  %v50_v20 = vld [vmem:[%s5834_s2 + $0x28] sm:$0xff] }
 0xc75   :  { %4294 = vrcp.f32 %v712_v21  ;;  %v4183_v21 = vpack.c.bf16 %v50_v20, %v49_v15 }
 0xc77   :  { %4184 = vmatprep.subr.bf16.mxu0 %v4183_v21 }
 0xc7f   :  { %v4295_v24 = vpop.eup %4294 }
 0xc80   :  { %v719_v36 = vmul.f32 %v4295_v24, %v615_v22 }
 0xce4   :  { %v722_v34 = vpop.permute.xlu1 %721 }
 0xce5   :  { %v724_v35 = vmul.f32 %v4295_v24, %v722_v34  ;;  %v45_v24 = vld [vmem:[%s5834_s2] sm:$0xff]  ;;  %v46_v34 = vld [vmem:[%s5834_s2 + $0x8] sm:$0xff] }
 0xce7   :  { %726 = vrot.lane.b32.xlu0 %v724_v35, %s4332_s16  ;;  %v4191_v35 = vpack.c.bf16 %v46_v34, %v45_v24 }
 0xd59   :  { %v727_v37 = vpop.permute.xlu0 %726 }
 0xd5a   :  { %v729_v39 = vadd.f32 %v727_v37, %v719_v36 }
 0xd5c   :  { %4296 = vtanh.f32 %v729_v39 }
 0xd5d   :  { %4298 = vpow2.f32 %v3961_v41 }
 0xd66   :  { %v4297_v40 = vpop.eup %4296 }
 0xd67   :  { %732 = vrot.lane.b32.xlu1 %v4297_v40, %s4332_s16  ;;  %v4299_v42 = vpop.eup %4298 }
 0xd68   :  { %v713_v43 = vadd.f32 1.0, %v4299_v42 }
 0xd6a   :  { %4300 = vrcp.f32 %v713_v43 }
 0xd74   :  { %v4301_v44 = vpop.eup %4300 }
 0xdd9   :  { %v733_v45 = vpop.permute.xlu1 %732 }
 0xdda   :  { %v4602_v46 = vmul.f32 %v4301_v44, %v733_v45 }
 0xddc   :  { %736 = vst.msk [vmem:[#allocation2 + $0x28] sm:$0xff] %vm165_vm0, %v4602_v46  ;;  %3964 = vmatmul.mubr.msk.f32.vlgmr.msra.gmra.mrb[4].mxu0 %vm58_vm1, %v4602_v46 }
 0xddd   :  { %4186 = vmatpush3.bf16.msra.mxu0 %v4183_v21 }
 0xeaf   :  { %v813_v4 = vpop.f32.mrb[4].mxu0 }
 0xeb0   :  { %v815_v49 = vpop.f32.mrb[5].mxu0  ;;  %v818_v53 = vadd.f32 %v3962_v52, %v813_v4 }
 0xeb1   :  { %v819_v50 = vadd.f32 %v3963_v48, %v815_v49 }
 0xeb2   :  { %v3965_v54 = vmul.f32 -1.442695, %v818_v53 }
 0xeb3   :  { %4302 = vtanh.f32 %v819_v50  ;;  %v3966_v1 = vmul.f32 -1.442695, %v819_v50 }
 0xeb4   :  { %4304 = vpow2.f32 %v3965_v54 }
 0xebd   :  { %v4303_v51 = vpop.eup %4302 }
 0xebe   :  { %835 = vrot.lane.b32.xlu0 %v4303_v51, %s4332_s16  ;;  %v4305_v55 = vpop.eup %4304 }
 0xebf   :  { %v826_v56 = vadd.f32 1.0, %v4305_v55 }
 0xec1   :  { %4306 = vrcp.f32 %v826_v56 }
 0xecb   :  { %v4307_v57 = vpop.eup %4306 }
 0xecc   :  { %v833_v60 = vmul.f32 %v4307_v57, %v729_v39 }
 0xf30   :  { %v836_v58 = vpop.permute.xlu0 %835 }
 0xf31   :  { %v838_v59 = vmul.f32 %v4307_v57, %v836_v58  ;;  %v970_v57 = vld [vmem:[#allocation2] sm:$0xff]  ;;  %v971_v58 = vld [vmem:[#allocation2 + $0x8] sm:$0xff] }
 0xf33   :  { %840 = vrot.lane.b32.xlu1 %v838_v59, %s4332_s16  ;;  %v972_v59 = vld [vmem:[#allocation2 + $0x10] sm:$0xff] }
 0xfa5   :  { %v841_v62 = vpop.permute.xlu1 %840 }
 0xfa6   :  { %v843_v63 = vadd.f32 %v841_v62, %v833_v60  ;;  %v973_v60 = vld [vmem:[#allocation2 + $0x18] sm:$0xff]  ;;  %v974_v62 = vld [vmem:[#allocation2 + $0x20] sm:$0xff] }
 0xfa8   :  { %4308 = vtanh.f32 %v843_v63 }
 0xfa9   :  { %4310 = vpow2.f32 %v3966_v1 }
 0xfb2   :  { %v4309_v0 = vpop.eup %4308 }
 0xfb3   :  { %846 = vrot.lane.b32.xlu0 %v4309_v0, %s4332_s16  ;;  %v4311_v2 = vpop.eup %4310 }
 0xfb4   :  { %v827_v5 = vadd.f32 1.0, %v4311_v2  ;;  %v5842_v2 = vmov 0  }
 0xfb5   :  { %4228 = vset.pattern.permute.xlu0 %v5842_v2  ;;  %4229 = vset.pattern.permute.xlu1 %v5842_v2 }
 0xfb6   :  { %4312 = vrcp.f32 %v827_v5  ;;  %v5841_v5 = vlaneseq }
 0xfc0   :  { %v4313_v6 = vpop.eup %4312 }
0x1025   :  { %v847_v7 = vpop.permute.xlu0 %846 }
0x1026   :  { %v849_v11 = vmul.f32 %v4313_v6, %v847_v7  ;;  %v4335_v6 = vmov 1966171168  }
0x1027   :  { %v1335_v7 = vunpack.c.l.s4 %v4335_v6 }
0x1028   :  { %850 = vst.msk [vmem:[#allocation2 + $0x30] sm:$0xff] %vm165_vm0, %v849_v11  ;;  %3969 = vmatmul.mubr.msk.f32.vlgmr.msra.gmra.mrb[8].mxu1 %vm58_vm1, %v849_v11 }
0x102f   :  { %v976_v0 = vld [vmem:[#allocation2 + $0x30] sm:$0xff] }
0x10fb   :  { %v927_v13 = vpop.f32.mrb[8].mxu1 }
0x10fc   :  { %v929_v16 = vpop.f32.mrb[9].mxu1  ;;  %v932_v22 = vadd.f32 %v3967_v19, %v927_v13  ;;  %v4697_v13 = vshrl.u32 %v5841_v5, 7  ;;  %v3989_v19 = vld [vmem:[%s5836_s5] ss:$0 sm:$0xff] }
0x10fd   :  { %v933_v17 = vadd.f32 %v3968_v12, %v929_v16 }
0x10fe   :  { %v3970_v23 = vmul.f32 -1.442695, %v932_v22 }
0x10ff   :  { %4314 = vtanh.f32 %v933_v17  ;;  %v3971_v3 = vmul.f32 -1.442695, %v933_v17  ;;  %v1336_v17 = vunpack.c.0.s8 %v1335_v7 }
0x1100   :  { %4316 = vpow2.f32 %v3970_v23  ;;  %v4705_v23 = vsub.s32 1, %v4697_v13 }
0x1109   :  { %v4315_v18 = vpop.eup %4314 }
0x110a   :  { %949 = vrot.lane.b32.xlu1 %v4315_v18, %s4332_s16  ;;  %v4317_v25 = vpop.eup %4316 }
0x110b   :  { %v940_v26 = vadd.f32 1.0, %v4317_v25  ;;  %v4708_v25 = vsub.s32 0, %v4697_v13 }
0x110d   :  { %4318 = vrcp.f32 %v940_v26 }
0x1117   :  { %v4319_v27 = vpop.eup %4318 }
0x1118   :  { %v947_v31 = vmul.f32 %v4319_v27, %v843_v63  ;;  %v975_v63 = vld [vmem:[#allocation2 + $0x28] sm:$0xff] }
0x117c   :  { %v950_v28 = vpop.permute.xlu1 %949 }
0x117d   :  { %v952_v29 = vmul.f32 %v4319_v27, %v950_v28  ;;  %v4713_v28 = vsub.s32 %v1336_v17, %v4697_v13 }
0x117f   :  { %954 = vrot.lane.b32.xlu0 %v952_v29, %s4332_s16 }
0x11f1   :  { %v955_v32 = vpop.permute.xlu0 %954 }
0x11f2   :  { %v957_v8 = vadd.f32 %v955_v32, %v947_v31  ;;  %v4716_v32 = vsub.s32 3, %v4697_v13 }
0x11f4   :  { %4320 = vtanh.f32 %v957_v8 }
0x11f5   :  { %4322 = vpow2.f32 %v3971_v3 }
0x11fe   :  { %v4321_v33 = vpop.eup %4320 }
0x11ff   :  { %960 = vrot.lane.b32.xlu1 %v4321_v33, %s4332_s16  ;;  %v4323_v9 = vpop.eup %4322 }
0x1200   :  { %v941_v14 = vadd.f32 1.0, %v4323_v9  ;;  %v4723_v9 = vsub.s32 2, %v4697_v13 }
0x1202   :  { %4324 = vrcp.f32 %v941_v14 }
0x1203   :  { %852 = vrot.lane.b32.xlu1 %v849_v11, %s4333_s25  ;;  %v3988_v11 = vld [vmem:[%s5835_s3] ss:$0 sm:$0xff] }
0x1207   :  { %624 = vrot.lane.b32.xlu1 %v4579_v30, %s4333_s25 }
0x120b   :  { %396 = vrot.lane.b32.xlu1 %v4532_v38, %s4333_s25  ;;  %v52_v38 = vld [vmem:[%s5834_s2 + $0x38] sm:$0xff] }
0x120c   :  { %v4325_v36 = vpop.eup %4324 }
0x120f   :  { %168 = vrot.lane.b32.xlu1 %v4484_v47, %s4333_s25  ;;  %v51_v47 = vld [vmem:[%s5834_s2 + $0x30] sm:$0xff] }
0x1210   :  { %v4187_v30 = vpack.c.bf16 %v52_v38, %v51_v47  ;;  %v4730_v38 = vsub.s32 5, %v4697_v13 }
0x1212   :  { %4188 = vmatprep.subr.bf16.mxu0 %v4187_v30 }
0x1213   :  { %4190 = vmatpush3.bf16.msra.mxu0 %v4187_v30  ;;  %v4733_v30 = vsub.s32 4, %v4697_v13 }
0x1214   :  { %4192 = vmatprep.subr.bf16.mxu0 %v4191_v35 }
0x1271   :  { %v961_v37 = vpop.permute.xlu1 %960 }
0x1272   :  { %v963_v39 = vmul.f32 %v4325_v36, %v961_v37 }
0x1274   :  { %964 = vst.msk [vmem:[#allocation2 + $0x38] sm:$0xff] %vm165_vm0, %v963_v39  ;;  %966 = vrot.lane.b32.xlu0 %v963_v39, %s4333_s25 }
0x1275   :  { %v853_v40 = vpop.permute.xlu1 %852 }
0x1276   :  { %855 = vst.msk [vmem:[#allocation3 + $0x8] sm:$0xff] %vm165_vm0, %v853_v40 }
0x1278   :  { %738 = vrot.lane.b32.xlu0 %v4602_v46, %s4333_s25  ;;  %v47_v46 = vld [vmem:[%s5834_s2 + $0x10] sm:$0xff] }
0x1279   :  { %v625_v41 = vpop.permute.xlu1 %624 }
0x127a   :  { %627 = vst.msk [vmem:[#allocation3 + $0x18] sm:$0xff] %vm165_vm0, %v625_v41 }
0x127b   :  { %v977_v1 = vld [vmem:[#allocation2 + $0x38] sm:$0xff] }
0x127c   :  { %510 = vrot.lane.b32.xlu0 %v4556_v61, %s4333_s25  ;;  %v48_v61 = vld [vmem:[%s5834_s2 + $0x18] sm:$0xff] }
0x127d   :  { %v397_v42 = vpop.permute.xlu1 %396  ;;  %v979_v49 = vld [vmem:[#allocation3 + $0x8] sm:$0xff] }
0x127e   :  { %399 = vst.msk [vmem:[#allocation3 + $0x28] sm:$0xff] %vm165_vm0, %v397_v42 }
0x1280   :  { %282 = vrot.lane.b32.xlu0 %v4508_v10, %s4333_s25  ;;  %v4195_v10 = vpack.c.bf16 %v48_v61, %v47_v46 }
0x1281   :  { %v169_v43 = vpop.permute.xlu1 %168  ;;  %v981_v52 = vld [vmem:[#allocation3 + $0x18] sm:$0xff] }
0x1282   :  { %171 = vst.msk [vmem:[#allocation3 + $0x38] sm:$0xff] %vm165_vm0, %v169_v43 }
0x1285   :  { %v983_v54 = vld [vmem:[#allocation3 + $0x28] sm:$0xff] }
0x1289   :  { %v985_v56 = vld [vmem:[#allocation3 + $0x38] sm:$0xff] }
0x12e6   :  { %v967_v44 = vpop.permute.xlu0 %966 }
0x12e7   :  { %969 = vst.msk [vmem:[#allocation3] sm:$0xff] %vm165_vm0, %v967_v44 }
0x12ea   :  { %v739_v45 = vpop.permute.xlu0 %738 }
0x12eb   :  { %741 = vst.msk [vmem:[#allocation3 + $0x10] sm:$0xff] %vm165_vm0, %v739_v45 }
0x12ee   :  { %v511_v48 = vpop.permute.xlu0 %510  ;;  %v978_v4 = vld [vmem:[#allocation3] sm:$0xff] }
0x12ef   :  { %513 = vst.msk [vmem:[#allocation3 + $0x20] sm:$0xff] %vm165_vm0, %v511_v48  ;;  %4023 = vmatprep.mubr.msk.f32.mxu0 %vm165_vm0, %v978_v4  ;;  %v4751_v48 = vsub.s32 7, %v4697_v13  ;;  %v4754_v4 = vsub.s32 6, %v4697_v13 }
0x12f0   :  { %4024 = vmatmul.mubr.msk.f32.vlgmr.msra.gmra.mrb[6].mxu0 %vm165_vm0, %v979_v49 }
0x12f1   :  { %4194 = vmatpush3.bf16.msra.mxu0 %v4191_v35 }
0x12f2   :  { %v283_v50 = vpop.permute.xlu0 %282  ;;  %v980_v51 = vld [vmem:[#allocation3 + $0x10] sm:$0xff]  ;;  %4196 = vmatprep.subr.bf16.mxu0 %v4195_v10 }
0x12f3   :  { %285 = vst.msk [vmem:[#allocation3 + $0x30] sm:$0xff] %vm165_vm0, %v283_v50  ;;  %4026 = vmatprep.mubr.msk.f32.mxu0 %vm165_vm0, %v980_v51 }
0x12f4   :  { %4027 = vmatmul.mubr.msk.f32.gmra.mrb[8].mxu0 %vm165_vm0, %v981_v52 }
0x12f5   :  { %4198 = vmatpush3.bf16.msra.mxu0 %v4195_v10 }
0x12f6   :  { %v982_v53 = vld [vmem:[#allocation3 + $0x20] sm:$0xff] }
0x12f7   :  { %4029 = vmatprep.mubr.msk.f32.mxu0 %vm165_vm0, %v982_v53 }
0x12f8   :  { %4030 = vmatmul.mubr.msk.f32.gmra.mrb[10].mxu0 %vm165_vm0, %v983_v54 }
0x12fa   :  { %v984_v55 = vld [vmem:[#allocation3 + $0x30] sm:$0xff] }
0x12fb   :  { %4032 = vmatprep.mubr.msk.f32.mxu0 %vm165_vm0, %v984_v55 }
0x12fc   :  { %4033 = vmatmul.mubr.msk.f32.gmra.mrb[12].mxu0 %vm165_vm0, %v985_v56 }
0x12fd   :  { %4043 = vmatprep.mubr.msk.f32.mxu0 %vm165_vm0, %v970_v57  ;;  %v4771_v57 = vld [vmem:[%s5837_s7] sm:$0xff] }
0x12fe   :  { %vm1583_vm2 = vcmp.ge.s32.totalorder %v4771_v57, 1 }
0x1300   :  { %4044 = vmatmul.mubr.msk.f32.vlgmr.msra.gmra.mrb[6].mxu0 %vm165_vm0, %v971_v58 }
0x1301   :  { %4046 = vmatprep.mubr.msk.f32.mxu0 %vm165_vm0, %v972_v59 }
0x1304   :  { %4047 = vmatmul.mubr.msk.f32.gmra.mrb[8].mxu0 %vm165_vm0, %v973_v60 }
0x1305   :  { %4049 = vmatprep.mubr.msk.f32.mxu0 %vm165_vm0, %v974_v62 }
0x1308   :  { %4050 = vmatmul.mubr.msk.f32.gmra.mrb[10].mxu0 %vm165_vm0, %v975_v63 }
0x1309   :  { %4052 = vmatprep.mubr.msk.f32.mxu0 %vm165_vm0, %v976_v0 }
0x130c   :  { %4053 = vmatmul.mubr.msk.f32.gmra.mrb[12].mxu0 %vm165_vm0, %v977_v1  ;;  %vm1601_vm0 = vcmask 1043459  }
0x13d3   :  { %v4045_v12 = vpop.f32.mrb[6].mxu0 }
0x13d4   :  { %v4699_v16 = vadd.f32 %v4045_v12, %v3988_v11  ;;  %v1205_v18 = vpop.f32.mrb[7].mxu0 }
0x13d5   :  { %v1250_v22 = vadd.f32 %v3988_v11, %v1205_v18 }
0x13d7   :  { %v4710_v26 = vadd.f32 %v3989_v19, %v1250_v22  ;;  %v4048_v27 = vpop.f32.mrb[8].mxu0  ;;  %v1584_v19 = vsel %vm1583_vm2, 1, %v5842_v2 }
0x13d8   :  { %v1253_v29 = vadd.f32 %v4048_v27, %v3988_v11  ;;  %v1215_v31 = vpop.f32.mrb[9].mxu0 }
0x13d9   :  { %v1252_v8 = vadd.f32 %v3988_v11, %v1215_v31  ;;  %v1278_v33 = vrot.slane %v4710_v26, %v4705_v23  ;;  %v1271_v3 = vrot.slane %v4710_v26, %v4708_v25  ;;  %v1292_v37 = vrot.slane %v4710_v26, %v4716_v32 }
0x13da   :  { %v2015_v14 = vcombine.high %v1253_v29, %v1253_v29  ;;  %v4726_v15 = vrot.slane %v1253_v29, %v4713_v28  ;;  %v1285_v42 = vrot.slane %v4710_v26, %v4723_v9  ;;  %v1306_v52 = vrot.slane %v4710_v26, %v4730_v38 }
0x13db   :  { %v1678_v20 = vcombine.high %v1252_v8, %v1252_v8  ;;  %v1685_v21 = vrot.slane %v1252_v8, %v4713_v28  ;;  %1280 = vbcast.lane.b32.xlu1 %v1278_v33, 256  ;;  %1273 = vbcast.lane.b32.xlu0 %v1271_v3, 256  ;;  %v4051_v47 = vpop.f32.mrb[10].mxu0  ;;  %v1299_v56 = vrot.slane %v4710_v26, %v4733_v30 }
0x13dc   :  { %v2029_v24 = vrot.slane %v2015_v14, %v4713_v28  ;;  %v4738_v34 = vrot.slane %v4726_v15, %v4713_v28  ;;  %v1255_v35 = vadd.f32 %v4051_v47, %v3988_v11  ;;  %v1225_v36 = vpop.f32.mrb[11].mxu0  ;;  %v1320_v7 = vrot.slane %v4710_v26, %v4751_v48 }
0x13dd   :  { %v1692_v39 = vrot.slane %v1678_v20, %v4713_v28  ;;  %v4744_v40 = vrot.slane %v1685_v21, %v4713_v28  ;;  %v1254_v41 = vadd.f32 %v3988_v11, %v1225_v36  ;;  %v1693_v12 = vcombine.high %v1685_v21, %v1685_v21 }
0x13de   :  { %v2689_v43 = vcombine.high %v1255_v35, %v1255_v35  ;;  %v2696_v44 = vrot.slane %v1255_v35, %v4713_v28  ;;  %v2030_v17 = vcombine.high %v4726_v15, %v4726_v15  ;;  %v2031_v27 = vcombine.high %v2029_v24, %v2029_v24 }
0x13df   :  { %v2352_v45 = vcombine.high %v1254_v41, %v1254_v41  ;;  %v2359_v46 = vrot.slane %v1254_v41, %v4713_v28  ;;  %1294 = vbcast.lane.b32.xlu1 %v1292_v37, 256  ;;  %1287 = vbcast.lane.b32.xlu0 %v1285_v42, 256  ;;  %v4054_v61 = vpop.f32.mrb[12].mxu0  ;;  %v1694_v18 = vcombine.high %v1692_v39, %v1692_v39 }
0x13e0   :  { %v2703_v10 = vrot.slane %v2689_v43, %v4713_v28  ;;  %v4758_v49 = vrot.slane %v2696_v44, %v4713_v28  ;;  %v1257_v50 = vadd.f32 %v4054_v61, %v3988_v11  ;;  %v1235_v51 = vpop.f32.mrb[13].mxu0  ;;  %v4792_v22 = vrot.slane %v1692_v39, %v4713_v28 }
0x13e1   :  { %v2366_v53 = vrot.slane %v2352_v45, %v4713_v28  ;;  %v4764_v54 = vrot.slane %v2359_v46, %v4713_v28  ;;  %v1256_v55 = vadd.f32 %v3988_v11, %v1235_v51  ;;  %v1313_v11 = vrot.slane %v4710_v26, %v4754_v4 }
0x13e2   :  { %v3363_v58 = vcombine.high %v1257_v50, %v1257_v50  ;;  %v3370_v59 = vrot.slane %v1257_v50, %v4713_v28  ;;  %v4795_v29 = vrot.slane %v1693_v12, %v4713_v28  ;;  %v2367_v31 = vcombine.high %v2359_v46, %v2359_v46 }
0x13e3   :  { %v3026_v60 = vcombine.high %v1256_v55, %v1256_v55  ;;  %v3033_v62 = vrot.slane %v1256_v55, %v4713_v28  ;;  %1308 = vbcast.lane.b32.xlu1 %v1306_v52, 256  ;;  %1301 = vbcast.lane.b32.xlu0 %v1299_v56, 256  ;;  %v4798_v8 = vrot.slane %v1694_v18, %v4713_v28 }
0x13e4   :  { %v3377_v63 = vrot.slane %v3363_v58, %v4713_v28  ;;  %v4777_v0 = vrot.slane %v3370_v59, %v4713_v28  ;;  %v4801_v33 = vrot.slane %v2030_v17, %v4713_v28  ;;  %v2368_v3 = vcombine.high %v2366_v53, %v2366_v53 }
0x13e5   :  { %v3040_v1 = vrot.slane %v3026_v60, %v4713_v28  ;;  %v4782_v6 = vrot.slane %v3033_v62, %v4713_v28  ;;  %v4804_v14 = vrot.slane %v2031_v27, %v4713_v28  ;;  %v2704_v15 = vcombine.high %v2696_v44, %v2696_v44  ;;  %v4855_v60 = vld [vmem:[%s5838_s4] sm:$0xff] }
0x13e6   :  { %5858 = vst [vmem:[#allocation4_spill] sm:$0xff] %v4777_v0  ;;  %v4807_v20 = vrot.slane %v2029_v24, %v4713_v28  ;;  %v4810_v21 = vrot.slane %v2367_v31, %v4713_v28  ;;  %v2705_v47 = vcombine.high %v2703_v10, %v2703_v10  ;;  %v4813_v35 = vrot.slane %v2368_v3, %v4713_v28 }
0x13e7   :  { %5859 = vst [vmem:[#allocation5_spill] sm:$0xff] %v4782_v6  ;;  %1322 = vbcast.lane.b32.xlu1 %v1320_v7, 256  ;;  %1315 = vbcast.lane.b32.xlu0 %v1313_v11, 256  ;;  %v4816_v36 = vrot.slane %v2366_v53, %v4713_v28  ;;  %v3041_v37 = vcombine.high %v3033_v62, %v3033_v62 }
0x13e8   :  { %v4819_v39 = vrot.slane %v2704_v15, %v4713_v28  ;;  %v4822_v41 = vrot.slane %v2705_v47, %v4713_v28  ;;  %v3042_v42 = vcombine.high %v3040_v1, %v3040_v1  ;;  %v4825_v24 = vrot.slane %v2703_v10, %v4713_v28 }
0x13e9   :  { %v4828_v43 = vrot.slane %v3041_v37, %v4713_v28  ;;  %v3378_v44 = vcombine.high %v3370_v59, %v3370_v59  ;;  %v3379_v45 = vcombine.high %v3377_v63, %v3377_v63  ;;  %v4834_v61 = vrot.slane %v3040_v1, %v4713_v28 }
0x13ea   :  { %v4831_v46 = vrot.slane %v3042_v42, %v4713_v28  ;;  %v4843_v10 = vrot.slane %v3377_v63, %v4713_v28  ;;  %v1340_v52 = vrot.slane %v4699_v16, %v4713_v28  ;;  %v1333_v53 = vcombine.high %v4699_v16, %v4699_v16 }
0x13eb   :  { %1586 = vperm.xlu0 %4228, %v1584_v19   ;;  %5860 = vst [vmem:[#allocation6_spill] sm:$0xff] %v4828_v43  ;;  %5862 = vst [vmem:[#allocation8_spill] sm:$0xff] %v4834_v61  ;;  %v4837_v50 = vrot.slane %v3378_v44, %v4713_v28  ;;  %v4840_v51 = vrot.slane %v3379_v45, %v4713_v28 }
0x13ec   :  { %5861 = vst [vmem:[#allocation7_spill] sm:$0xff] %v4831_v46  ;;  %5865 = vst [vmem:[#allocation11_spill] sm:$0xff] %v4843_v10  ;;  %v1348_v55 = vcombine.high %v1340_v52, %v1340_v52  ;;  %v1347_v56 = vrot.slane %v1333_v53, %v4713_v28  ;;  %v1356_v58 = vrot.slane %v1340_v52, %v4713_v28 }
0x13ed   :  { %5863 = vst [vmem:[#allocation9_spill] sm:$0xff] %v4837_v50  ;;  %5864 = vst [vmem:[#allocation10_spill] sm:$0xff] %v4840_v51 }
0x13ee   :  { %v1370_v59 = vrot.slane %v1348_v55, %v4713_v28  ;;  %v1349_v62 = vcombine.high %v1347_v56, %v1347_v56  ;;  %v1378_v11 = vcombine.high %v1356_v58, %v1356_v58  ;;  %v1385_v17 = vrot.slane %v1356_v58, %v4708_v25 }
0x13ef   :  { %v1363_v42 = vrot.slane %v1347_v56, %v4713_v28 }
0x13f0   :  { %v1380_v7 = vcombine.high %v1370_v59, %v1370_v59  ;;  %v1389_v12 = vrot.slane %v1370_v59, %v4708_v25  ;;  %v1393_v15 = vrot.slane %v1378_v11, %v4708_v25  ;;  %v1377_v37 = vrot.slane %v1349_v62, %v4713_v28 }
0x13f2   :  { %v1397_v31 = vrot.slane %v1380_v7, %v4708_v25  ;;  %v1405_v28 = vrot.slane %v1377_v37, %v4708_v25  ;;  %v1401_v7 = vrot.slane %v1363_v42, %v4708_v25 }
0x144d   :  { %v1281_v63 = vpop.permute.xlu1 %1280  ;;  %v1274_v1 = vpop.permute.xlu0 %1273 }
0x144e   :  { %v1325_v16 = vadd.f32 %v1281_v63, %v4855_v60  ;;  %v1324_v18 = vadd.f32 %v1274_v1, %v4855_v60 }
0x1450   :  { %v4861_v19 = vadd.f32 %v1389_v12, %v1325_v16  ;;  %v4863_v27 = vadd.f32 %v1385_v17, %v1324_v18 }
0x1451   :  { %v1295_v3 = vpop.permute.xlu1 %1294  ;;  %v1288_v47 = vpop.permute.xlu0 %1287 }
0x1452   :  { %v1438_v44 = vsel %vm1430_vm3, %v4861_v19, -inf  ;;  %v1431_v45 = vsel %vm1430_vm3, %v4863_v27, -inf  ;;  %v1327_v52 = vadd.f32 %v1295_v3, %v4855_v60  ;;  %v1326_v53 = vadd.f32 %v1288_v47, %v4855_v60 }
0x1453   :  { %v1439_v55 = vrot.slane %v1438_v44, 4  ;;  %v1432_v58 = vrot.slane %v1431_v45, 4 }
0x1454   :  { %v4875_v59 = vadd.f32 %v1397_v31, %v1327_v52  ;;  %v4877_v63 = vadd.f32 %v1393_v15, %v1326_v53  ;;  %v1381_v52 = vcombine.high %v1377_v37, %v1377_v37  ;;  %v1379_v53 = vcombine.high %v1363_v42, %v1363_v42 }
0x1455   :  { %v1440_v1 = vmax.f32 %v1438_v44, %v1439_v55  ;;  %v1433_v62 = vmax.f32 %v1431_v45, %v1432_v58  ;;  %v1309_v56 = vpop.permute.xlu1 %1308  ;;  %v1302_v11 = vpop.permute.xlu0 %1301 }
0x1456   :  { %v1452_v12 = vsel %vm1430_vm3, %v4875_v59, -inf  ;;  %v1445_v16 = vsel %vm1430_vm3, %v4877_v63, -inf  ;;  %v1329_v17 = vadd.f32 %v1309_v56, %v4855_v60  ;;  %v1328_v18 = vadd.f32 %v1302_v11, %v4855_v60 }
0x1457   :  { %v1441_v31 = vrot.slane %v1440_v1, 2  ;;  %v1434_v3 = vrot.slane %v1433_v62, 2  ;;  %v1453_v15 = vrot.slane %v1452_v12, 4  ;;  %v1446_v47 = vrot.slane %v1445_v16, 4 }
0x1458   :  { %v4887_v44 = vadd.f32 %v1405_v28, %v1329_v17  ;;  %v4889_v45 = vadd.f32 %v1401_v7, %v1328_v18 }
0x1459   :  { %v1442_v55 = vmax.f32 %v1440_v1, %v1441_v31  ;;  %v1435_v58 = vmax.f32 %v1433_v62, %v1434_v3  ;;  %v1454_v5 = vmax.f32 %v1452_v12, %v1453_v15  ;;  %v1447_v2 = vmax.f32 %v1445_v16, %v1446_v47  ;;  %v1323_v10 = vpop.permute.xlu1 %1322  ;;  %v1316_v51 = vpop.permute.xlu0 %1315 }
0x145a   :  { %v1466_v56 = vsel %vm1430_vm3, %v4887_v44, -inf  ;;  %v1459_v11 = vsel %vm1430_vm3, %v4889_v45, -inf  ;;  %v1331_v0 = vadd.f32 %v1323_v10, %v4855_v60  ;;  %v1330_v28 = vadd.f32 %v1316_v51, %v4855_v60 }
0x145b   :  { %v1443_v7 = vrot.slane %v1442_v55, 1  ;;  %v1436_v17 = vrot.slane %v1435_v58, 1  ;;  %v1455_v37 = vrot.slane %v1454_v5, 2  ;;  %v1448_v42 = vrot.slane %v1447_v2, 2 }
0x145c   :  { %v1467_v1 = vrot.slane %v1466_v56, 4  ;;  %v1460_v62 = vrot.slane %v1459_v11, 4  ;;  %v1413_v12 = vrot.slane %v1381_v52, %v4708_v25  ;;  %v1409_v16 = vrot.slane %v1379_v53, %v4708_v25 }
0x145d   :  { %v1444_v18 = vmax.f32 %v1442_v55, %v1443_v7  ;;  %v1437_v31 = vmax.f32 %v1435_v58, %v1436_v17  ;;  %v1456_v3 = vmax.f32 %v1454_v5, %v1455_v37  ;;  %v1449_v15 = vmax.f32 %v1447_v2, %v1448_v42 }
0x145e   :  { %v1468_v47 = vmax.f32 %v1466_v56, %v1467_v1  ;;  %v1461_v50 = vmax.f32 %v1459_v11, %v1460_v62  ;;  %v4899_v61 = vadd.f32 %v1413_v12, %v1331_v0  ;;  %v4903_v10 = vadd.f32 %v1409_v16, %v1330_v28 }
0x145f   :  { %vm1488_vm4 = vcmp.eq.f32.partialorder %v4861_v19, %v1444_v18  ;;  %vm1487_vm5 = vcmp.eq.f32.partialorder %v4863_v27, %v1437_v31  ;;  %v1457_v51 = vrot.slane %v1456_v3, 1  ;;  %v1450_v53 = vrot.slane %v1449_v15, 1 }
0x1460   :  { %v1496_v46 = vsel %vm1488_vm4, %v4697_v13, 8  ;;  %v1495_v52 = vsel %vm1487_vm5, %v4697_v13, 8  ;;  %v1469_v55 = vrot.slane %v1468_v47, 2  ;;  %v1462_v58 = vrot.slane %v1461_v50, 2 }
0x1461   :  { %v1513_v2 = vsel %vm1430_vm3, %v1496_v46, 2147483647  ;;  %v1503_v5 = vsel %vm1430_vm3, %v1495_v52, 2147483647  ;;  %v4909_v0 = vmax.f32 %v1456_v3, %v1457_v51  ;;  %v4911_v27 = vmax.f32 %v1449_v15, %v1450_v53 }
0x1462   :  { %v1514_v19 = vrot.slane %v1513_v2, 4  ;;  %v1504_v56 = vrot.slane %v1503_v5, 4  ;;  %v1480_v11 = vsel %vm1430_vm3, %v4899_v61, -inf  ;;  %v1470_v28 = vmax.f32 %v1468_v47, %v1469_v55 }
0x1463   :  { %vm1490_vm7 = vcmp.eq.f32.partialorder %v4875_v59, %v4909_v0  ;;  %v1463_v7 = vmax.f32 %v1461_v50, %v1462_v58  ;;  %v1473_v46 = vsel %vm1430_vm3, %v4903_v10, -inf  ;;  %vm1489_vm10 = vcmp.eq.f32.partialorder %v4877_v63, %v4911_v27 }
0x1464   :  { %vm1515_vm8 = vcmp.lt.s32.totalorder %v1513_v2, %v1514_v19  ;;  %vm1505_vm9 = vcmp.lt.s32.totalorder %v1503_v5, %v1504_v56  ;;  %v1498_v17 = vsel %vm1490_vm7, %v4697_v13, 8  ;;  %v1497_v62 = vsel %vm1489_vm10, %v4697_v13, 8 }
0x1465   :  { %v1516_v37 = vsel %vm1515_vm8, %v1513_v2, %v1514_v19  ;;  %v1506_v42 = vsel %vm1505_vm9, %v1503_v5, %v1504_v56  ;;  %v1533_v1 = vsel %vm1430_vm3, %v1498_v17, 2147483647  ;;  %v1523_v50 = vsel %vm1430_vm3, %v1497_v62, 2147483647 }
0x1466   :  { %v1517_v12 = vrot.slane %v1516_v37, 2  ;;  %v1507_v59 = vrot.slane %v1506_v42, 2  ;;  %v1534_v16 = vrot.slane %v1533_v1, 4  ;;  %v1524_v3 = vrot.slane %v1523_v50, 4 }
0x1467   :  { %v1471_v15 = vrot.slane %v1470_v28, 1  ;;  %v1464_v47 = vrot.slane %v1463_v7, 1  ;;  %v1481_v51 = vrot.slane %v1480_v11, 4  ;;  %v1474_v63 = vrot.slane %v1473_v46, 4 }
0x1468   :  { %vm1518_vm12 = vcmp.lt.s32.totalorder %v1516_v37, %v1517_v12  ;;  %vm1508_vm13 = vcmp.lt.s32.totalorder %v1506_v42, %v1507_v59  ;;  %vm1535_vm14 = vcmp.lt.s32.totalorder %v1533_v1, %v1534_v16  ;;  %vm1525_vm15 = vcmp.lt.s32.totalorder %v1523_v50, %v1524_v3 }
0x1469   :  { %v1519_v52 = vsel %vm1518_vm12, %v1516_v37, %v1517_v12  ;;  %v1509_v53 = vsel %vm1508_vm13, %v1506_v42, %v1507_v59  ;;  %v1536_v55 = vsel %vm1535_vm14, %v1533_v1, %v1534_v16  ;;  %v1526_v19 = vsel %vm1525_vm15, %v1523_v50, %v1524_v3 }
0x146a   :  { %v1520_v2 = vrot.slane %v1519_v52, 1  ;;  %v1510_v5 = vrot.slane %v1509_v53, 1  ;;  %v1537_v58 = vrot.slane %v1536_v55, 2  ;;  %v1598_v56 = vsel %vm1597_vm6, %v1444_v18, %v1437_v31 }
0x146b   :  { %v1527_v17 = vrot.slane %v1526_v19, 2  ;;  %v4926_v62 = vmax.f32 %v1470_v28, %v1471_v15  ;;  %v1465_v6 = vmax.f32 %v1463_v7, %v1464_v47  ;;  %vm1603_vm5 = vcmask 1044484  }
0x146c   :  { %vm1521_vm1 = vcmp.lt.s32.totalorder %v1519_v52, %v1520_v2  ;;  %vm1511_vm2 = vcmp.lt.s32.totalorder %v1509_v53, %v1510_v5  ;;  %vm1538_vm4 = vcmp.lt.s32.totalorder %v1536_v55, %v1537_v58  ;;  %v1482_v43 = vmax.f32 %v1480_v11, %v1481_v51 }
0x146d   :  { %v1522_v37 = vsel %vm1521_vm1, %v1519_v52, %v1520_v2  ;;  %v1512_v42 = vsel %vm1511_vm2, %v1509_v53, %v1510_v5  ;;  %v1539_v1 = vsel %vm1538_vm4, %v1536_v55, %v1537_v58  ;;  %vm1528_vm7 = vcmp.lt.s32.totalorder %v1526_v19, %v1527_v17 }
0x146e   :  { %v3888_v12 = vcvt.s32.f32 %v1522_v37  ;;  %v1540_v59 = vrot.slane %v1539_v1, 1  ;;  %v1529_v16 = vsel %vm1528_vm7, %v1526_v19, %v1527_v17  ;;  %v1475_v50 = vmax.f32 %v1473_v46, %v1474_v63 }
0x146f   :  { %v3887_v3 = vcvt.s32.f32 %v1512_v42  ;;  %v1530_v18 = vrot.slane %v1529_v16, 1  ;;  %vm1492_vm8 = vcmp.eq.f32.partialorder %v4887_v44, %v4926_v62  ;;  %vm1491_vm9 = vcmp.eq.f32.partialorder %v4889_v45, %v1465_v6 }
0x1470   :  { %vm1541_vm10 = vcmp.lt.s32.totalorder %v1539_v1, %v1540_v59  ;;  %v1500_v31 = vsel %vm1492_vm8, %v4697_v13, 8  ;;  %v1499_v11 = vsel %vm1491_vm9, %v4697_v13, 8  ;;  %v1483_v28 = vrot.slane %v1482_v43, 2 }
0x1471   :  { %v1542_v7 = vsel %vm1541_vm10, %v1539_v1, %v1540_v59  ;;  %vm1531_vm12 = vcmp.lt.s32.totalorder %v1529_v16, %v1530_v18  ;;  %v1553_v15 = vsel %vm1430_vm3, %v1500_v31, 2147483647  ;;  %v1543_v47 = vsel %vm1430_vm3, %v1499_v11, 2147483647 }
0x1472   :  { %v1532_v46 = vsel %vm1531_vm12, %v1529_v16, %v1530_v18  ;;  %v1600_v51 = vsel %vm1599_vm11, %v4911_v27, %v1598_v56  ;;  %v1554_v63 = vrot.slane %v1553_v15, 4  ;;  %v1544_v44 = vrot.slane %v1543_v47, 4 }
0x1473   :  { %v3890_v52 = vcvt.s32.f32 %v1542_v7  ;;  %v3889_v45 = vcvt.s32.f32 %v1532_v46  ;;  %v1484_v53 = vmax.f32 %v1482_v43, %v1483_v28  ;;  %v1476_v55 = vrot.slane %v1475_v50, 2 }
0x1474   :  { %vm1555_vm13 = vcmp.lt.s32.totalorder %v1553_v15, %v1554_v63  ;;  %vm1545_vm14 = vcmp.lt.s32.totalorder %v1543_v47, %v1544_v44  ;;  %vm1605_vm15 = vcmask 1045509   ;;  %v3903_v2 = vsel %vm1597_vm6, %v3888_v12, %v3887_v3  ;;  %v4943_v12 = vpop.permute.xlu0 %1586 }
0x1475   :  { %v1556_v5 = vsel %vm1555_vm13, %v1553_v15, %v1554_v63  ;;  %v1546_v58 = vsel %vm1545_vm14, %v1543_v47, %v1544_v44  ;;  %v1485_v19 = vrot.slane %v1484_v53, 1  ;;  %v1477_v17 = vmax.f32 %v1475_v50, %v1476_v55 }
0x1476   :  { %v1557_v37 = vrot.slane %v1556_v5, 2  ;;  %v1602_v42 = vsel %vm1601_vm0, %v4909_v0, %v1600_v51  ;;  %v1547_v27 = vrot.slane %v1546_v58, 2  ;;  %v3904_v56 = vsel %vm1599_vm11, %v3889_v45, %v3903_v2 }
0x1477   :  { %v1604_v1 = vsel %vm1603_vm5, %v1465_v6, %v1602_v42  ;;  %v1486_v43 = vmax.f32 %v1484_v53, %v1485_v19  ;;  %v1478_v59 = vrot.slane %v1477_v17, 1  ;;  %v3905_v16 = vsel %vm1601_vm0, %v3890_v52, %v3904_v56 }
0x1478   :  { %vm1558_vm1 = vcmp.lt.s32.totalorder %v1556_v5, %v1557_v37  ;;  %vm1548_vm2 = vcmp.lt.s32.totalorder %v1546_v58, %v1547_v27  ;;  %vm1607_vm4 = vcmask 1046534   ;;  %vm1609_vm7 = vcmask 1047559  }
0x1479   :  { %v1559_v50 = vsel %vm1558_vm1, %v1556_v5, %v1557_v37  ;;  %v1549_v3 = vsel %vm1548_vm2, %v1546_v58, %v1547_v27  ;;  %vm1494_vm8 = vcmp.eq.f32.partialorder %v4899_v61, %v1486_v43  ;;  %v1479_v0 = vmax.f32 %v1477_v17, %v1478_v59 }
0x147a   :  { %v1560_v18 = vrot.slane %v1559_v50, 1  ;;  %v1550_v31 = vrot.slane %v1549_v3, 1  ;;  %v1502_v11 = vsel %vm1494_vm8, %v4697_v13, 8  ;;  %v1606_v6 = vsel %vm1605_vm15, %v4926_v62, %v1604_v1 }
0x147b   :  { %v1573_v28 = vsel %vm1430_vm3, %v1502_v11, 2147483647  ;;  %vm1493_vm9 = vcmp.eq.f32.partialorder %v4903_v10, %v1479_v0  ;;  %v1608_v7 = vsel %vm1607_vm4, %v1479_v0, %v1606_v6  ;;  %vm5852_vm10 = vcmp.eq.s32.totalorder %v4943_v12, 1 }
0x147c   :  { %vm1561_vm12 = vcmp.lt.s32.totalorder %v1559_v50, %v1560_v18  ;;  %vm1551_vm13 = vcmp.lt.s32.totalorder %v1549_v3, %v1550_v31  ;;  %v1574_v15 = vrot.slane %v1573_v28, 4  ;;  %v1501_v61 = vsel %vm1493_vm9, %v4697_v13, 8 }
0x147d   :  { %v1552_v47 = vsel %vm1551_vm13, %v1549_v3, %v1550_v31  ;;  %v1563_v46 = vsel %vm1430_vm3, %v1501_v61, 2147483647  ;;  %v1610_v51 = vsel %vm1609_vm7, %v1486_v43, %v1608_v7  ;;  %v1562_v63 = vsel %vm1561_vm12, %v1559_v50, %v1560_v18 }
0x147e   :  { %v3891_v62 = vcvt.s32.f32 %v1552_v47  ;;  %vm1575_vm14 = vcmp.lt.s32.totalorder %v1573_v28, %v1574_v15  ;;  %v1564_v44 = vrot.slane %v1563_v46, 4  ;;  %v4959_v10 = vsel %vm5852_vm10, %v1610_v51, %v4710_v26 }
0x147f   :  { %v1576_v52 = vsel %vm1575_vm14, %v1573_v28, %v1574_v15  ;;  %v1630_v45 = vrot.slane %v4959_v10, %v4723_v9  ;;  %v1616_v53 = vrot.slane %v4959_v10, %v4708_v25  ;;  %v3892_v5 = vcvt.s32.f32 %v1562_v63 }
0x1480   :  { %v1577_v55 = vrot.slane %v1576_v52, 2  ;;  %vm1565_vm1 = vcmp.lt.s32.totalorder %v1563_v46, %v1564_v44  ;;  %v3906_v19 = vsel %vm1603_vm5, %v3891_v62, %v3905_v16  ;;  %v1644_v26 = vrot.slane %v4959_v10, %v4733_v30 }
0x1481   :  { %v1566_v2 = vsel %vm1565_vm1, %v1563_v46, %v1564_v44  ;;  %1632 = vbcast.lane.b32.xlu0 %v1630_v45, 256  ;;  %1618 = vbcast.lane.b32.xlu1 %v1616_v53, 256  ;;  %v1623_v17 = vrot.slane %v4959_v10, %v4705_v23  ;;  %v3907_v42 = vsel %vm1605_vm15, %v3892_v5, %v3906_v19  ;;  %vm1927_vm12 = vcmp.ge.s32.totalorder %v4771_v57, 2 }
0x1482   :  { %vm1578_vm2 = vcmp.lt.s32.totalorder %v1576_v52, %v1577_v55  ;;  %v1567_v58 = vrot.slane %v1566_v2, 2  ;;  %v1658_v43 = vrot.slane %v4959_v10, %v4754_v4  ;;  %v1637_v59 = vrot.slane %v4959_v10, %v4716_v32 }
0x1483   :  { %v1579_v37 = vsel %vm1578_vm2, %v1576_v52, %v1577_v55  ;;  %v5866_v0 = vmov 0   ;;  %v1651_v11 = vrot.slane %v4959_v10, %v4730_v38  ;;  %v1665_v57 = vrot.slane %v4959_v10, %v4751_v48 }
0x1484   :  { %vm1568_vm8 = vcmp.lt.s32.totalorder %v1566_v2, %v1567_v58  ;;  %v1580_v27 = vrot.slane %v1579_v37, 1  ;;  %v1928_v18 = vsel %vm1927_vm12, 1, %v5866_v0  ;;  %v1723_v7 = vcombine.high %v4744_v40, %v4744_v40 }
0x1485   :  { %v1569_v56 = vsel %vm1568_vm8, %v1566_v2, %v1567_v58  ;;  %1646 = vbcast.lane.b32.xlu0 %v1644_v26, 256  ;;  %1625 = vbcast.lane.b32.xlu1 %v1623_v17, 256  ;;  %v1730_v63 = vrot.slane %v4744_v40, %v4708_v25  ;;  %v1746_v45 = vrot.slane %v4792_v22, %v4708_v25 }
0x1486   :  { %v1570_v1 = vrot.slane %v1569_v56, 1  ;;  %vm1581_vm9 = vcmp.lt.s32.totalorder %v1579_v37, %v1580_v27  ;;  %v1738_v46 = vrot.slane %v1723_v7, %v4708_v25  ;;  %v1734_v55 = vrot.slane %v4795_v29, %v4708_v25 }
0x1487   :  { %v1582_v16 = vsel %vm1581_vm9, %v1579_v37, %v1580_v27  ;;  %v1724_v2 = vcombine.high %v4792_v22, %v4792_v22  ;;  %v1725_v5 = vcombine.high %v4795_v29, %v4795_v29 }
0x1488   :  { %vm1571_vm13 = vcmp.lt.s32.totalorder %v1569_v56, %v1570_v1  ;;  %v3894_v3 = vcvt.s32.f32 %v1582_v16 }
0x1489   :  { %1660 = vbcast.lane.b32.xlu0 %v1658_v43, 256  ;;  %1639 = vbcast.lane.b32.xlu1 %v1637_v59, 256  ;;  %v1572_v50 = vsel %vm1571_vm13, %v1569_v56, %v1570_v1  ;;  %v1754_v29 = vrot.slane %v1724_v2, %v4708_v25  ;;  %v1742_v59 = vrot.slane %v1725_v5, %v4708_v25 }
0x148a   :  { %v3893_v31 = vcvt.s32.f32 %v1572_v50 }
0x148c   :  { %v3908_v6 = vsel %vm1607_vm4, %v3893_v31, %v3907_v42 }
0x148d   :  { %1930 = vperm.xlu0 %4228, %v1928_v18   ;;  %1653 = vbcast.lane.b32.xlu1 %v1651_v11, 256  ;;  %v4981_v28 = vsel %vm1609_vm7, %v3894_v3, %v3908_v6 }
0x1491   :  { %1667 = vbcast.lane.b32.xlu1 %v1665_v57, 256 }
0x14f3   :  { %v1633_v15 = vpop.permute.xlu0 %1632  ;;  %v1619_v61 = vpop.permute.xlu1 %1618 }
0x14f4   :  { %v1671_v47 = vadd.f32 %v1633_v15, %v4855_v60  ;;  %v1669_v51 = vadd.f32 %v1619_v61, %v4855_v60 }
0x14f6   :  { %v4992_v62 = vadd.f32 %v1738_v46, %v1671_v47  ;;  %v4994_v44 = vadd.f32 %v1730_v63, %v1669_v51 }
0x14f7   :  { %v1647_v52 = vpop.permute.xlu0 %1646  ;;  %v1626_v53 = vpop.permute.xlu1 %1625 }
0x14f8   :  { %v1789_v40 = vsel %vm1430_vm3, %v4992_v62, -inf  ;;  %v1775_v58 = vsel %vm1430_vm3, %v4994_v44, -inf  ;;  %v1673_v19 = vadd.f32 %v1647_v52, %v4855_v60  ;;  %v1670_v26 = vadd.f32 %v1626_v53, %v4855_v60 }
0x14f9   :  { %v1790_v17 = vrot.slane %v1789_v40, 4  ;;  %v1776_v37 = vrot.slane %v1775_v58, 4 }
0x14fa   :  { %v5010_v42 = vadd.f32 %v1746_v45, %v1673_v19  ;;  %v5012_v27 = vadd.f32 %v1734_v55, %v1670_v26  ;;  %v1750_v55 = vrot.slane %v4798_v8, %v4708_v25 }
0x14fb   :  { %v1791_v22 = vmax.f32 %v1789_v40, %v1790_v17  ;;  %v1777_v56 = vmax.f32 %v1775_v58, %v1776_v37  ;;  %v1661_v1 = vpop.permute.xlu0 %1660  ;;  %v1640_v43 = vpop.permute.xlu1 %1639  ;;  %v1726_v37 = vcombine.high %v4798_v8, %v4798_v8 }
0x14fc   :  { %v1803_v16 = vsel %vm1430_vm3, %v5010_v42, -inf  ;;  %v1782_v50 = vsel %vm1430_vm3, %v5012_v27, -inf  ;;  %v1675_v3 = vadd.f32 %v1661_v1, %v4855_v60  ;;  %v1672_v18 = vadd.f32 %v1640_v43, %v4855_v60 }
0x14fd   :  { %v1792_v31 = vrot.slane %v1791_v22, 2  ;;  %v1778_v11 = vrot.slane %v1777_v56, 2  ;;  %v1804_v6 = vrot.slane %v1803_v16, 4  ;;  %v1783_v57 = vrot.slane %v1782_v50, 4 }
0x14fe   :  { %v5022_v7 = vadd.f32 %v1754_v29, %v1675_v3  ;;  %v5024_v15 = vadd.f32 %v1742_v59, %v1672_v18 }
0x14ff   :  { %v1793_v61 = vmax.f32 %v1791_v22, %v1792_v31  ;;  %v1779_v47 = vmax.f32 %v1777_v56, %v1778_v11  ;;  %v1805_v46 = vmax.f32 %v1803_v16, %v1804_v6  ;;  %v1784_v51 = vmax.f32 %v1782_v50, %v1783_v57  ;;  %v1654_v63 = vpop.permute.xlu1 %1653 }
0x1500   :  { %v1817_v52 = vsel %vm1430_vm3, %v5022_v7, -inf  ;;  %v1796_v45 = vsel %vm1430_vm3, %v5024_v15, -inf  ;;  %v1674_v53 = vadd.f32 %v1654_v63, %v4855_v60 }
0x1501   :  { %v1794_v2 = vrot.slane %v1793_v61, 1  ;;  %v1780_v5 = vrot.slane %v1779_v47, 1  ;;  %v1806_v40 = vrot.slane %v1805_v46, 2  ;;  %v1785_v58 = vrot.slane %v1784_v51, 2 }
0x1502   :  { %v1818_v19 = vrot.slane %v1817_v52, 4  ;;  %v1797_v26 = vrot.slane %v1796_v45, 4  ;;  %v5033_v17 = vadd.f32 %v1750_v55, %v1674_v53 }
0x1503   :  { %v1795_v22 = vmax.f32 %v1793_v61, %v1794_v2  ;;  %v1781_v56 = vmax.f32 %v1779_v47, %v1780_v5  ;;  %v1807_v1 = vmax.f32 %v1805_v46, %v1806_v40  ;;  %v1786_v29 = vmax.f32 %v1784_v51, %v1785_v58  ;;  %v1668_v43 = vpop.permute.xlu1 %1667 }
0x1504   :  { %v1819_v59 = vmax.f32 %v1817_v52, %v1818_v19  ;;  %v1798_v16 = vmax.f32 %v1796_v45, %v1797_v26  ;;  %v1810_v50 = vsel %vm1430_vm3, %v5033_v17, -inf  ;;  %v1676_v3 = vadd.f32 %v1668_v43, %v4855_v60 }
0x1505   :  { %vm1833_vm14 = vcmp.eq.f32.partialorder %v4992_v62, %v1795_v22  ;;  %vm1831_vm1 = vcmp.eq.f32.partialorder %v4994_v44, %v1781_v56  ;;  %v1808_v18 = vrot.slane %v1807_v1, 1  ;;  %v1787_v31 = vrot.slane %v1786_v29, 1 }
0x1506   :  { %v1841_v11 = vsel %vm1833_vm14, %v4697_v13, 8  ;;  %v1839_v6 = vsel %vm1831_vm1, %v4697_v13, 8  ;;  %v1820_v57 = vrot.slane %v1819_v59, 2  ;;  %v1799_v61 = vrot.slane %v1798_v16, 2 }
0x1507   :  { %v1867_v47 = vsel %vm1430_vm3, %v1841_v11, 2147483647  ;;  %v1847_v46 = vsel %vm1430_vm3, %v1839_v6, 2147483647  ;;  %v5046_v51 = vmax.f32 %v1807_v1, %v1808_v18  ;;  %v1788_v63 = vmax.f32 %v1786_v29, %v1787_v31 }
0x1508   :  { %v1868_v52 = vrot.slane %v1867_v47, 4  ;;  %v1848_v45 = vrot.slane %v1847_v46, 4  ;;  %v1821_v62 = vmax.f32 %v1819_v59, %v1820_v57  ;;  %v1800_v53 = vmax.f32 %v1798_v16, %v1799_v61 }
0x1509   :  { %vm1835_vm2 = vcmp.eq.f32.partialorder %v5010_v42, %v5046_v51  ;;  %vm1832_vm8 = vcmp.eq.f32.partialorder %v5012_v27, %v1788_v63  ;;  %v1941_v44 = vsel %vm1597_vm6, %v1788_v63, %v1781_v56  ;;  %v1811_v55 = vrot.slane %v1810_v50, 4 }
0x150a   :  { %vm1869_vm9 = vcmp.lt.s32.totalorder %v1867_v47, %v1868_v52  ;;  %vm1849_vm12 = vcmp.lt.s32.totalorder %v1847_v46, %v1848_v45  ;;  %v1843_v2 = vsel %vm1835_vm2, %v4697_v13, 8  ;;  %v1840_v5 = vsel %vm1832_vm8, %v4697_v13, 8 }
0x150b   :  { %v1870_v40 = vsel %vm1869_vm9, %v1867_v47, %v1868_v52  ;;  %v1850_v58 = vsel %vm1849_vm12, %v1847_v46, %v1848_v45  ;;  %v1887_v19 = vsel %vm1430_vm3, %v1843_v2, 2147483647  ;;  %v1857_v26 = vsel %vm1430_vm3, %v1840_v5, 2147483647 }
0x150c   :  { %v1871_v1 = vrot.slane %v1870_v40, 2  ;;  %v1851_v29 = vrot.slane %v1850_v58, 2  ;;  %v1888_v42 = vrot.slane %v1887_v19, 4  ;;  %v1858_v43 = vrot.slane %v1857_v26, 4 }
0x150d   :  { %v1822_v27 = vrot.slane %v1821_v62, 1  ;;  %v1801_v59 = vrot.slane %v1800_v53, 1  ;;  %v1942_v56 = vsel %vm1599_vm11, %v1795_v22, %v1941_v44  ;;  %v1812_v16 = vmax.f32 %v1810_v50, %v1811_v55 }
0x150e   :  { %vm1872_vm13 = vcmp.lt.s32.totalorder %v1870_v40, %v1871_v1  ;;  %vm1852_vm14 = vcmp.lt.s32.totalorder %v1850_v58, %v1851_v29  ;;  %vm1889_vm1 = vcmp.lt.s32.totalorder %v1887_v19, %v1888_v42  ;;  %vm1859_vm2 = vcmp.lt.s32.totalorder %v1857_v26, %v1858_v43 }
0x150f   :  { %v1873_v18 = vsel %vm1872_vm13, %v1870_v40, %v1871_v1  ;;  %v1853_v31 = vsel %vm1852_vm14, %v1850_v58, %v1851_v29  ;;  %v1890_v11 = vsel %vm1889_vm1, %v1887_v19, %v1888_v42  ;;  %v1860_v6 = vsel %vm1859_vm2, %v1857_v26, %v1858_v43 }
0x1510   :  { %v1874_v57 = vrot.slane %v1873_v18, 1  ;;  %v1854_v61 = vrot.slane %v1853_v31, 1  ;;  %v1891_v47 = vrot.slane %v1890_v11, 2  ;;  %v1861_v46 = vrot.slane %v1860_v6, 2 }
0x1511   :  { %v1823_v63 = vmax.f32 %v1821_v62, %v1822_v27  ;;  %v1802_v52 = vmax.f32 %v1800_v53, %v1801_v59  ;;  %v1813_v45 = vrot.slane %v1812_v16, 2  ;;  %v1758_v22 = vrot.slane %v1726_v37, %v4708_v25 }
0x1512   :  { %vm1875_vm8 = vcmp.lt.s32.totalorder %v1873_v18, %v1874_v57  ;;  %vm1855_vm9 = vcmp.lt.s32.totalorder %v1853_v31, %v1854_v61  ;;  %vm1862_vm12 = vcmp.lt.s32.totalorder %v1860_v6, %v1861_v46  ;;  %vm1892_vm10 = vcmp.lt.s32.totalorder %v1890_v11, %v1891_v47 }
0x1513   :  { %v1863_v50 = vsel %vm1862_vm12, %v1860_v6, %v1861_v46  ;;  %v1876_v44 = vsel %vm1875_vm8, %v1873_v18, %v1874_v57  ;;  %v1856_v55 = vsel %vm1855_vm9, %v1853_v31, %v1854_v61  ;;  %v5061_v5 = vadd.f32 %v1758_v22, %v1676_v3 }
0x1514   :  { %v1864_v2 = vrot.slane %v1863_v50, 1  ;;  %vm1837_vm13 = vcmp.eq.f32.partialorder %v5022_v7, %v1823_v63  ;;  %vm1834_vm14 = vcmp.eq.f32.partialorder %v5024_v15, %v1802_v52  ;;  %v1943_v62 = vsel %vm1601_vm0, %v1802_v52, %v1942_v56 }
0x1515   :  { %v1814_v53 = vmax.f32 %v1812_v16, %v1813_v45  ;;  %v1893_v40 = vsel %vm1892_vm10, %v1890_v11, %v1891_v47  ;;  %v1845_v58 = vsel %vm1837_vm13, %v4697_v13, 8  ;;  %v1842_v8 = vsel %vm1834_vm14, %v4697_v13, 8 }
0x1516   :  { %vm1865_vm1 = vcmp.lt.s32.totalorder %v1863_v50, %v1864_v2  ;;  %v3851_v37 = vcvt.s32.f32 %v1876_v44  ;;  %v1907_v26 = vsel %vm1430_vm3, %v1845_v58, 2147483647  ;;  %v1877_v3 = vsel %vm1430_vm3, %v1842_v8, 2147483647  ;;  %v5081_v8 = vpop.permute.xlu0 %1930 }
0x1517   :  { %v1866_v19 = vsel %vm1865_vm1, %v1863_v50, %v1864_v2  ;;  %v3849_v1 = vcvt.s32.f32 %v1856_v55  ;;  %v1908_v7 = vrot.slane %v1907_v26, 4  ;;  %v1878_v42 = vrot.slane %v1877_v3, 4 }
0x1518   :  { %v3850_v29 = vcvt.s32.f32 %v1866_v19  ;;  %v1894_v15 = vrot.slane %v1893_v40, 1  ;;  %v1815_v43 = vrot.slane %v1814_v53, 1  ;;  %v1824_v27 = vsel %vm1430_vm3, %v5061_v5, -inf }
0x1519   :  { %v1944_v59 = vsel %vm1603_vm5, %v5046_v51, %v1943_v62  ;;  %vm1909_vm10 = vcmp.lt.s32.totalorder %v1907_v26, %v1908_v7  ;;  %vm1879_vm2 = vcmp.lt.s32.totalorder %v1877_v3, %v1878_v42  ;;  %v1825_v56 = vrot.slane %v1824_v27, 4 }
0x151a   :  { %v3865_v16 = vsel %vm1597_vm6, %v3850_v29, %v3849_v1  ;;  %v1910_v18 = vsel %vm1909_vm10, %v1907_v26, %v1908_v7  ;;  %v1880_v31 = vsel %vm1879_vm2, %v1877_v3, %v1878_v42  ;;  %v1816_v11 = vmax.f32 %v1814_v53, %v1815_v43 }
0x151b   :  { %v3866_v6 = vsel %vm1599_vm11, %v3851_v37, %v3865_v16  ;;  %v1911_v57 = vrot.slane %v1910_v18, 2  ;;  %v1881_v61 = vrot.slane %v1880_v31, 2  ;;  %v1826_v47 = vmax.f32 %v1824_v27, %v1825_v56 }
0x151c   :  { %vm1895_vm8 = vcmp.lt.s32.totalorder %v1893_v40, %v1894_v15  ;;  %vm1836_vm9 = vcmp.eq.f32.partialorder %v5033_v17, %v1816_v11  ;;  %v1945_v46 = vsel %vm1605_vm15, %v1816_v11, %v1944_v59  ;;  %vm5853_vm10 = vcmp.eq.s32.totalorder %v5081_v8, 1 }
0x151d   :  { %vm1912_vm12 = vcmp.lt.s32.totalorder %v1910_v18, %v1911_v57  ;;  %vm1882_vm13 = vcmp.lt.s32.totalorder %v1880_v31, %v1881_v61  ;;  %v1844_v51 = vsel %vm1836_vm9, %v4697_v13, 8  ;;  %v1827_v52 = vrot.slane %v1826_v47, 2 }
0x151e   :  { %v1913_v45 = vsel %vm1912_vm12, %v1910_v18, %v1911_v57  ;;  %v1883_v22 = vsel %vm1882_vm13, %v1880_v31, %v1881_v61  ;;  %v1897_v50 = vsel %vm1430_vm3, %v1844_v51, 2147483647  ;;  %v1946_v44 = vsel %vm1607_vm4, %v1823_v63, %v1945_v46 }
0x151f   :  { %v1884_v55 = vrot.slane %v1883_v22, 1  ;;  %v1898_v2 = vrot.slane %v1897_v50, 4  ;;  %v1828_v62 = vmax.f32 %v1826_v47, %v1827_v52  ;;  %v1914_v53 = vrot.slane %v1913_v45, 1 }
0x1520   :  { %v1896_v58 = vsel %vm1895_vm8, %v1893_v40, %v1894_v15 }
0x1521   :  { %vm1885_vm14 = vcmp.lt.s32.totalorder %v1883_v22, %v1884_v55  ;;  %vm1899_vm1 = vcmp.lt.s32.totalorder %v1897_v50, %v1898_v2  ;;  %v1829_v17 = vrot.slane %v1828_v62, 1  ;;  %v3853_v29 = vcvt.s32.f32 %v1896_v58 }
0x1522   :  { %v1886_v37 = vsel %vm1885_vm14, %v1883_v22, %v1884_v55  ;;  %v1900_v19 = vsel %vm1899_vm1, %v1897_v50, %v1898_v2  ;;  %vm5084_vm2 = vcmp.lt.s32.totalorder %v1913_v45, %v1914_v53 }
0x1523   :  { %v3852_v26 = vcvt.s32.f32 %v1886_v37  ;;  %v1901_v3 = vrot.slane %v1900_v19, 2  ;;  %v1830_v1 = vmax.f32 %v1828_v62, %v1829_v17  ;;  %v1916_v31 = vsel %vm5084_vm2, %v1913_v45, %v1914_v53  ;;  %v5122_v62 = vld [vmem:[%s5837_s7] sm:$0xff] }
0x1524   :  { %v3855_v46 = vcvt.s32.f32 %v1916_v31  ;;  %vm2264_vm2 = vcmp.ge.s32.totalorder %v5122_v62, 3 }
0x1525   :  { %vm1902_vm9 = vcmp.lt.s32.totalorder %v1900_v19, %v1901_v3  ;;  %vm1838_vm8 = vcmp.eq.f32.partialorder %v5061_v5, %v1830_v1  ;;  %v1947_v40 = vsel %vm1609_vm7, %v1830_v1, %v1946_v44  ;;  %v3867_v7 = vsel %vm1601_vm0, %v3852_v26, %v3866_v6 }
0x1526   :  { %v1903_v42 = vsel %vm1902_vm9, %v1900_v19, %v1901_v3  ;;  %v1846_v15 = vsel %vm1838_vm8, %v4697_v13, 8  ;;  %v5095_v43 = vsel %vm5853_vm10, %v1947_v40, %v4959_v10  ;;  %v3868_v27 = vsel %vm1603_vm5, %v3853_v29, %v3867_v7 }
0x1527   :  { %v1904_v59 = vrot.slane %v1903_v42, 1  ;;  %v1917_v56 = vsel %vm1430_vm3, %v1846_v15, 2147483647  ;;  %v1960_v5 = vrot.slane %v5095_v43, %v4705_v23  ;;  %v1953_v16 = vrot.slane %v5095_v43, %v4708_v25 }
0x1528   :  { %v1918_v18 = vrot.slane %v1917_v56, 4  ;;  %v1974_v6 = vrot.slane %v5095_v43, %v4716_v32  ;;  %v1967_v57 = vrot.slane %v5095_v43, %v4723_v9  ;;  %v1988_v45 = vrot.slane %v5095_v43, %v4730_v38 }
0x1529   :  { %vm1905_vm12 = vcmp.lt.s32.totalorder %v1903_v42, %v1904_v59  ;;  %1962 = vbcast.lane.b32.xlu0 %v1960_v5, 256  ;;  %1955 = vbcast.lane.b32.xlu1 %v1953_v16, 256  ;;  %v1981_v22 = vrot.slane %v5095_v43, %v4733_v30  ;;  %v2002_v55 = vrot.slane %v5095_v43, %v4751_v48  ;;  %v2265_v17 = vsel %vm2264_vm2, 1, %v5866_v0 }
0x152a   :  { %vm1919_vm13 = vcmp.lt.s32.totalorder %v1917_v56, %v1918_v18  ;;  %v1906_v10 = vsel %vm1905_vm12, %v1903_v42, %v1904_v59  ;;  %v1995_v2 = vrot.slane %v5095_v43, %v4754_v4  ;;  %v2062_v3 = vcombine.high %v4801_v33, %v4801_v33 }
0x152b   :  { %v1920_v11 = vsel %vm1919_vm13, %v1917_v56, %v1918_v18  ;;  %v3854_v61 = vcvt.s32.f32 %v1906_v10  ;;  %v2060_v1 = vcombine.high %v4738_v34, %v4738_v34  ;;  %v2071_v29 = vrot.slane %v4801_v33, %v4708_v25 }
0x152c   :  { %v1921_v47 = vrot.slane %v1920_v11, 2  ;;  %v2067_v40 = vrot.slane %v4738_v34, %v4708_v25 }
0x152d   :  { %1976 = vbcast.lane.b32.xlu0 %v1974_v6, 256  ;;  %1969 = vbcast.lane.b32.xlu1 %v1967_v57, 256  ;;  %v3869_v51 = vsel %vm1605_vm15, %v3854_v61, %v3868_v27  ;;  %v2079_v27 = vrot.slane %v2062_v3, %v4708_v25  ;;  %v2075_v56 = vrot.slane %v2060_v1, %v4708_v25 }
0x152e   :  { %vm1922_vm14 = vcmp.lt.s32.totalorder %v1920_v11, %v1921_v47  ;;  %v3870_v52 = vsel %vm1607_vm4, %v3855_v46, %v3869_v51  ;;  %v2063_v57 = vcombine.high %v4804_v14, %v4804_v14  ;;  %v2061_v61 = vcombine.high %v4807_v20, %v4807_v20 }
0x152f   :  { %v1923_v50 = vsel %vm1922_vm14, %v1920_v11, %v1921_v47  ;;  %v2087_v51 = vrot.slane %v4804_v14, %v4708_v25 }
0x1530   :  { %v1924_v44 = vrot.slane %v1923_v50, 1  ;;  %v2091_v3 = vrot.slane %v2061_v61, %v4708_v25 }
0x1531   :  { %1990 = vbcast.lane.b32.xlu0 %v1988_v45, 256  ;;  %1983 = vbcast.lane.b32.xlu1 %v1981_v22, 256  ;;  %v2083_v45 = vrot.slane %v4807_v20, %v4708_v25  ;;  %v2095_v20 = vrot.slane %v2063_v57, %v4708_v25 }
0x1532   :  { %vm1925_vm1 = vcmp.lt.s32.totalorder %v1923_v50, %v1924_v44 }
0x1533   :  { %v1926_v53 = vsel %vm1925_vm1, %v1923_v50, %v1924_v44 }
0x1534   :  { %v3856_v58 = vcvt.s32.f32 %v1926_v53 }
0x1535   :  { %2004 = vbcast.lane.b32.xlu0 %v2002_v55, 256  ;;  %1997 = vbcast.lane.b32.xlu1 %v1995_v2, 256 }
0x1536   :  { %v5127_v37 = vsel %vm1609_vm7, %v3856_v58, %v3870_v52 }
0x1539   :  { %2267 = vperm.xlu1 %4229, %v2265_v17  }
0x159b   :  { %v1963_v19 = vpop.permute.xlu0 %1962  ;;  %v1956_v26 = vpop.permute.xlu1 %1955 }
0x159c   :  { %v2007_v63 = vadd.f32 %v1963_v19, %v4855_v60  ;;  %v2006_v7 = vadd.f32 %v1956_v26, %v4855_v60 }
0x159e   :  { %v5139_v42 = vadd.f32 %v2071_v29, %v2007_v63  ;;  %v5141_v15 = vadd.f32 %v2067_v40, %v2006_v7 }
0x159f   :  { %v1977_v59 = vpop.permute.xlu0 %1976  ;;  %v1970_v5 = vpop.permute.xlu1 %1969 }
0x15a0   :  { %v2119_v33 = vsel %vm1430_vm3, %v5139_v42, -inf  ;;  %v2112_v16 = vsel %vm1430_vm3, %v5141_v15, -inf  ;;  %v2009_v34 = vadd.f32 %v1977_v59, %v4855_v60  ;;  %v2008_v18 = vadd.f32 %v1970_v5, %v4855_v60 }
0x15a1   :  { %v2120_v31 = vrot.slane %v2119_v33, 4  ;;  %v2113_v10 = vrot.slane %v2112_v16, 4 }
0x15a2   :  { %v5151_v11 = vadd.f32 %v2079_v27, %v2009_v34  ;;  %v5153_v6 = vadd.f32 %v2075_v56, %v2008_v18  ;;  %v5182_v56 = vld [vmem:[%s5838_s4] sm:$0xff] }
0x15a3   :  { %v2121_v47 = vmax.f32 %v2119_v33, %v2120_v31  ;;  %v2114_v46 = vmax.f32 %v2112_v16, %v2113_v10  ;;  %v1991_v52 = vpop.permute.xlu0 %1990  ;;  %v1984_v22 = vpop.permute.xlu1 %1983 }
0x15a4   :  { %v2133_v50 = vsel %vm1430_vm3, %v5151_v11, -inf  ;;  %v2126_v44 = vsel %vm1430_vm3, %v5153_v6, -inf  ;;  %v2011_v55 = vadd.f32 %v1991_v52, %v4855_v60  ;;  %v2010_v2 = vadd.f32 %v1984_v22, %v4855_v60 }
0x15a5   :  { %v2122_v53 = vrot.slane %v2121_v47, 2  ;;  %v2115_v58 = vrot.slane %v2114_v46, 2  ;;  %v2134_v17 = vrot.slane %v2133_v50, 4  ;;  %v2127_v19 = vrot.slane %v2126_v44, 4 }
0x15a6   :  { %v5169_v14 = vadd.f32 %v2087_v51, %v2011_v55  ;;  %v5171_v26 = vadd.f32 %v2083_v45, %v2010_v2 }
0x15a7   :  { %v2123_v1 = vmax.f32 %v2121_v47, %v2122_v53  ;;  %v2116_v29 = vmax.f32 %v2114_v46, %v2115_v58  ;;  %v2135_v63 = vmax.f32 %v2133_v50, %v2134_v17  ;;  %v2128_v40 = vmax.f32 %v2126_v44, %v2127_v19  ;;  %v2005_v7 = vpop.permute.xlu0 %2004  ;;  %v1998_v27 = vpop.permute.xlu1 %1997 }
0x15a8   :  { %v2147_v60 = vsel %vm1430_vm3, %v5169_v14, -inf  ;;  %v2140_v59 = vsel %vm1430_vm3, %v5171_v26, -inf  ;;  %v2013_v5 = vadd.f32 %v5182_v56, %v2005_v7  ;;  %v2012_v33 = vadd.f32 %v5182_v56, %v1998_v27 }
0x15a9   :  { %v2124_v16 = vrot.slane %v2123_v1, 1  ;;  %v2117_v34 = vrot.slane %v2116_v29, 1  ;;  %v2136_v18 = vrot.slane %v2135_v63, 2  ;;  %v2129_v31 = vrot.slane %v2128_v40, 2 }
0x15aa   :  { %v2148_v10 = vrot.slane %v2147_v60, 4  ;;  %v2141_v57 = vrot.slane %v2140_v59, 4  ;;  %v5186_v61 = vadd.f32 %v2095_v20, %v2013_v5  ;;  %v5188_v47 = vadd.f32 %v2091_v3, %v2012_v33 }
0x15ab   :  { %v2125_v46 = vmax.f32 %v2123_v1, %v2124_v16  ;;  %v2118_v51 = vmax.f32 %v2116_v29, %v2117_v34  ;;  %v2137_v52 = vmax.f32 %v2135_v63, %v2136_v18  ;;  %v2130_v45 = vmax.f32 %v2128_v40, %v2129_v31 }
0x15ac   :  { %v2149_v22 = vmax.f32 %v2147_v60, %v2148_v10  ;;  %v2142_v50 = vmax.f32 %v2140_v59, %v2141_v57  ;;  %v2161_v44 = vsel %vm1430_vm3, %v5186_v61, -inf  ;;  %v2154_v55 = vsel %vm1430_vm3, %v5188_v47, -inf }
0x15ad   :  { %vm2169_vm9 = vcmp.eq.f32.partialorder %v5139_v42, %v2125_v46  ;;  %vm2168_vm8 = vcmp.eq.f32.partialorder %v5141_v15, %v2118_v51  ;;  %v2278_v2 = vsel %vm1597_vm6, %v2125_v46, %v2118_v51  ;;  %v2138_v53 = vrot.slane %v2137_v52, 1 }
0x15ae   :  { %v2177_v58 = vsel %vm2169_vm9, %v4697_v13, 8  ;;  %v2176_v17 = vsel %vm2168_vm8, %v4697_v13, 8  ;;  %v2131_v19 = vrot.slane %v2130_v45, 1  ;;  %v2150_v20 = vrot.slane %v2149_v22, 2 }
0x15af   :  { %v2194_v3 = vsel %vm1430_vm3, %v2177_v58, 2147483647  ;;  %v2184_v1 = vsel %vm1430_vm3, %v2176_v17, 2147483647  ;;  %v2139_v29 = vmax.f32 %v2137_v52, %v2138_v53  ;;  %v2143_v63 = vrot.slane %v2142_v50, 2 }
0x15b0   :  { %v2195_v40 = vrot.slane %v2194_v3, 4  ;;  %v2185_v7 = vrot.slane %v2184_v1, 4  ;;  %v2132_v42 = vmax.f32 %v2130_v45, %v2131_v19  ;;  %v2151_v27 = vmax.f32 %v2149_v22, %v2150_v20 }
0x15b1   :  { %vm2171_vm12 = vcmp.eq.f32.partialorder %v5151_v11, %v2139_v29  ;;  %v2144_v15 = vmax.f32 %v2142_v50, %v2143_v63  ;;  %v2162_v60 = vrot.slane %v2161_v44, 4  ;;  %v2155_v59 = vrot.slane %v2154_v55, 4 }
0x15b2   :  { %vm2196_vm13 = vcmp.lt.s32.totalorder %v2194_v3, %v2195_v40  ;;  %vm2186_vm14 = vcmp.lt.s32.totalorder %v2184_v1, %v2185_v7  ;;  %v2179_v5 = vsel %vm2171_vm12, %v4697_v13, 8  ;;  %vm2170_vm1 = vcmp.eq.f32.partialorder %v5153_v6, %v2132_v42 }
0x15b3   :  { %v2197_v33 = vsel %vm2196_vm13, %v2194_v3, %v2195_v40  ;;  %v2187_v16 = vsel %vm2186_vm14, %v2184_v1, %v2185_v7  ;;  %v2214_v34 = vsel %vm1430_vm3, %v2179_v5, 2147483647  ;;  %v2178_v18 = vsel %vm2170_vm1, %v4697_v13, 8 }
0x15b4   :  { %v2198_v31 = vrot.slane %v2197_v33, 2  ;;  %v2188_v10 = vrot.slane %v2187_v16, 2  ;;  %v2215_v57 = vrot.slane %v2214_v34, 4  ;;  %v2204_v11 = vsel %vm1430_vm3, %v2178_v18, 2147483647 }
0x15b5   :  { %v2205_v46 = vrot.slane %v2204_v11, 4  ;;  %v2279_v51 = vsel %vm1599_vm11, %v2132_v42, %v2278_v2  ;;  %v2152_v52 = vrot.slane %v2151_v27, 1  ;;  %v2145_v45 = vrot.slane %v2144_v15, 1 }
0x15b6   :  { %vm2199_vm2 = vcmp.lt.s32.totalorder %v2197_v33, %v2198_v31  ;;  %vm2189_vm9 = vcmp.lt.s32.totalorder %v2187_v16, %v2188_v10  ;;  %vm2216_vm8 = vcmp.lt.s32.totalorder %v2214_v34, %v2215_v57  ;;  %v2280_v6 = vsel %vm1601_vm0, %v2139_v29, %v2279_v51 }
0x15b7   :  { %v2200_v22 = vsel %vm2199_vm2, %v2197_v33, %v2198_v31  ;;  %v2190_v50 = vsel %vm2189_vm9, %v2187_v16, %v2188_v10  ;;  %v2217_v53 = vsel %vm2216_vm8, %v2214_v34, %v2215_v57  ;;  %vm2206_vm12 = vcmp.lt.s32.totalorder %v2204_v11, %v2205_v46 }
0x15b8   :  { %v2201_v58 = vrot.slane %v2200_v22, 1  ;;  %v2191_v17 = vrot.slane %v2190_v50, 1  ;;  %v2218_v19 = vrot.slane %v2217_v53, 2  ;;  %v2207_v20 = vsel %vm2206_vm12, %v2204_v11, %v2205_v46 }
0x15b9   :  { %v2208_v3 = vrot.slane %v2207_v20, 2  ;;  %v2153_v1 = vmax.f32 %v2151_v27, %v2152_v52  ;;  %v2146_v63 = vmax.f32 %v2144_v15, %v2145_v45  ;;  %v2163_v40 = vmax.f32 %v2161_v44, %v2162_v60 }
0x15ba   :  { %vm2202_vm13 = vcmp.lt.s32.totalorder %v2200_v22, %v2201_v58  ;;  %vm2192_vm14 = vcmp.lt.s32.totalorder %v2190_v50, %v2191_v17  ;;  %vm2219_vm1 = vcmp.lt.s32.totalorder %v2217_v53, %v2218_v19  ;;  %v2156_v2 = vmax.f32 %v2154_v55, %v2155_v59 }
0x15bb   :  { %v2203_v7 = vsel %vm2202_vm13, %v2200_v22, %v2201_v58  ;;  %v2193_v42 = vsel %vm2192_vm14, %v2190_v50, %v2191_v17  ;;  %v2220_v5 = vsel %vm2219_vm1, %v2217_v53, %v2218_v19  ;;  %vm2209_vm10 = vcmp.lt.s32.totalorder %v2207_v20, %v2208_v3 }
0x15bc   :  { %v3812_v29 = vcvt.s32.f32 %v2203_v7  ;;  %v3811_v33 = vcvt.s32.f32 %v2193_v42  ;;  %v2221_v16 = vrot.slane %v2220_v5, 1  ;;  %v2210_v34 = vsel %vm2209_vm10, %v2207_v20, %v2208_v3 }
0x15bd   :  { %v2211_v18 = vrot.slane %v2210_v34, 1  ;;  %vm2173_vm2 = vcmp.eq.f32.partialorder %v5169_v14, %v2153_v1  ;;  %vm2172_vm9 = vcmp.eq.f32.partialorder %v5171_v26, %v2146_v63  ;;  %v2281_v27 = vsel %vm1603_vm5, %v2146_v63, %v2280_v6 }
0x15be   :  { %vm2222_vm8 = vcmp.lt.s32.totalorder %v2220_v5, %v2221_v16  ;;  %v2181_v44 = vsel %vm2173_vm2, %v4697_v13, 8  ;;  %v2180_v55 = vsel %vm2172_vm9, %v4697_v13, 8  ;;  %v2164_v15 = vrot.slane %v2163_v40, 2 }
0x15bf   :  { %v2223_v60 = vsel %vm2222_vm8, %v2220_v5, %v2221_v16  ;;  %vm2212_vm12 = vcmp.lt.s32.totalorder %v2210_v34, %v2211_v18  ;;  %v2234_v59 = vsel %vm1430_vm3, %v2181_v44, 2147483647  ;;  %v2224_v31 = vsel %vm1430_vm3, %v2180_v55, 2147483647 }
0x15c0   :  { %v3814_v10 = vcvt.s32.f32 %v2223_v60  ;;  %v2213_v57 = vsel %vm2212_vm12, %v2210_v34, %v2211_v18  ;;  %v2235_v11 = vrot.slane %v2234_v59, 4  ;;  %v2225_v14 = vrot.slane %v2224_v31, 4 }
0x15c1   :  { %v3813_v46 = vcvt.s32.f32 %v2213_v57  ;;  %v2165_v26 = vmax.f32 %v2163_v40, %v2164_v15  ;;  %v2157_v51 = vrot.slane %v2156_v2, 2  ;;  %v2282_v52 = vsel %vm1605_vm15, %v2153_v1, %v2281_v27  ;;  %v5220_v40 = vpop.permute.xlu1 %2267 }
0x15c2   :  { %vm2236_vm10 = vcmp.lt.s32.totalorder %v2234_v59, %v2235_v11  ;;  %vm2226_vm13 = vcmp.lt.s32.totalorder %v2224_v31, %v2225_v14  ;;  %v3827_v45 = vsel %vm1597_vm6, %v3812_v29, %v3811_v33  ;;  %vm5854_vm8 = vcmp.eq.s32.totalorder %v5220_v40, 1 }
0x15c3   :  { %v2237_v6 = vsel %vm2236_vm10, %v2234_v59, %v2235_v11  ;;  %v2227_v22 = vsel %vm2226_vm13, %v2224_v31, %v2225_v14  ;;  %v2166_v50 = vrot.slane %v2165_v26, 1  ;;  %v2158_v53 = vmax.f32 %v2156_v2, %v2157_v51 }
0x15c4   :  { %v2238_v58 = vrot.slane %v2237_v6, 2  ;;  %v2228_v17 = vrot.slane %v2227_v22, 2  ;;  %v3828_v19 = vsel %vm1599_vm11, %v3813_v46, %v3827_v45 }
0x15c5   :  { %v2167_v20 = vmax.f32 %v2165_v26, %v2166_v50  ;;  %v2159_v3 = vrot.slane %v2158_v53, 1  ;;  %v3829_v63 = vsel %vm1601_vm0, %v3814_v10, %v3828_v19 }
0x15c6   :  { %vm2239_vm14 = vcmp.lt.s32.totalorder %v2237_v6, %v2238_v58  ;;  %vm2229_vm1 = vcmp.lt.s32.totalorder %v2227_v22, %v2228_v17 }
0x15c7   :  { %v2240_v1 = vsel %vm2239_vm14, %v2237_v6, %v2238_v58  ;;  %v2230_v7 = vsel %vm2229_vm1, %v2227_v22, %v2228_v17  ;;  %vm2175_vm2 = vcmp.eq.f32.partialorder %v5186_v61, %v2167_v20  ;;  %v2160_v42 = vmax.f32 %v2158_v53, %v2159_v3 }
0x15c8   :  { %v2241_v5 = vrot.slane %v2240_v1, 1  ;;  %v2231_v29 = vrot.slane %v2230_v7, 1  ;;  %v2183_v2 = vsel %vm2175_vm2, %v4697_v13, 8 }
0x15c9   :  { %v2254_v33 = vsel %vm1430_vm3, %v2183_v2, 2147483647  ;;  %vm2174_vm9 = vcmp.eq.f32.partialorder %v5188_v47, %v2160_v42  ;;  %v2283_v16 = vsel %vm1607_vm4, %v2160_v42, %v2282_v52 }
0x15ca   :  { %vm2242_vm12 = vcmp.lt.s32.totalorder %v2240_v1, %v2241_v5  ;;  %vm2232_vm10 = vcmp.lt.s32.totalorder %v2230_v7, %v2231_v29  ;;  %v2255_v34 = vrot.slane %v2254_v33, 4  ;;  %v2182_v18 = vsel %vm2174_vm9, %v4697_v13, 8 }
0x15cb   :  { %v2233_v27 = vsel %vm2232_vm10, %v2230_v7, %v2231_v29  ;;  %v2244_v61 = vsel %vm1430_vm3, %v2182_v18, 2147483647  ;;  %v2284_v44 = vsel %vm1609_vm7, %v2167_v20, %v2283_v16  ;;  %v2243_v55 = vsel %vm2242_vm12, %v2240_v1, %v2241_v5 }
0x15cc   :  { %v3815_v15 = vcvt.s32.f32 %v2233_v27  ;;  %vm2256_vm13 = vcmp.lt.s32.totalorder %v2254_v33, %v2255_v34  ;;  %v2245_v60 = vrot.slane %v2244_v61, 4  ;;  %v5234_v47 = vsel %vm5854_vm8, %v2284_v44, %v5095_v43 }
0x15cd   :  { %v2257_v59 = vsel %vm2256_vm13, %v2254_v33, %v2255_v34  ;;  %v2297_v31 = vrot.slane %v5234_v47, %v4705_v23  ;;  %v2290_v10 = vrot.slane %v5234_v47, %v4708_v25  ;;  %v3816_v14 = vcvt.s32.f32 %v2243_v55 }
0x15ce   :  { %v2258_v57 = vrot.slane %v2257_v59, 2  ;;  %vm2246_vm14 = vcmp.lt.s32.totalorder %v2244_v61, %v2245_v60  ;;  %v3830_v26 = vsel %vm1603_vm5, %v3815_v15, %v3829_v63  ;;  %v2311_v43 = vrot.slane %v5234_v47, %v4716_v32 }
0x15cf   :  { %v2247_v11 = vsel %vm2246_vm14, %v2244_v61, %v2245_v60  ;;  %2299 = vbcast.lane.b32.xlu1 %v2297_v31, 256  ;;  %2292 = vbcast.lane.b32.xlu0 %v2290_v10, 256  ;;  %v2304_v51 = vrot.slane %v5234_v47, %v4723_v9  ;;  %v3831_v45 = vsel %vm1605_vm15, %v3816_v14, %v3830_v26  ;;  %vm2601_vm10 = vcmp.ge.s32.totalorder %v5122_v62, 4 }
0x15d0   :  { %vm2259_vm1 = vcmp.lt.s32.totalorder %v2257_v59, %v2258_v57  ;;  %v2248_v46 = vrot.slane %v2247_v11, 2  ;;  %v2325_v53 = vrot.slane %v5234_v47, %v4730_v38  ;;  %v2318_v58 = vrot.slane %v5234_v47, %v4733_v30 }
0x15d1   :  { %v2260_v52 = vsel %vm2259_vm1, %v2257_v59, %v2258_v57  ;;  %v2339_v63 = vrot.slane %v5234_v47, %v4751_v48  ;;  %v2332_v1 = vrot.slane %v5234_v47, %v4754_v4  ;;  %v2602_v5 = vsel %vm2601_vm10, 1, %v5866_v0 }
0x15d2   :  { %vm2249_vm2 = vcmp.lt.s32.totalorder %v2247_v11, %v2248_v46  ;;  %v2261_v6 = vrot.slane %v2260_v52, 1  ;;  %v2399_v33 = vcombine.high %v4810_v21, %v4810_v21  ;;  %v2397_v16 = vcombine.high %v4764_v54, %v4764_v54 }
0x15d3   :  { %v2250_v22 = vsel %vm2249_vm2, %v2247_v11, %v2248_v46  ;;  %2313 = vbcast.lane.b32.xlu1 %v2311_v43, 256  ;;  %2306 = vbcast.lane.b32.xlu0 %v2304_v51, 256  ;;  %v2408_v18 = vrot.slane %v4810_v21, %v4708_v25  ;;  %v2404_v61 = vrot.slane %v4764_v54, %v4708_v25 }
0x15d4   :  { %v2251_v50 = vrot.slane %v2250_v22, 1  ;;  %vm2262_vm9 = vcmp.lt.s32.totalorder %v2260_v52, %v2261_v6  ;;  %v2416_v60 = vrot.slane %v2399_v33, %v4708_v25  ;;  %v2412_v31 = vrot.slane %v2397_v16, %v4708_v25 }
0x15d5   :  { %v2263_v17 = vsel %vm2262_vm9, %v2260_v52, %v2261_v6  ;;  %v2400_v43 = vcombine.high %v4813_v35, %v4813_v35  ;;  %v2398_v51 = vcombine.high %v4816_v36, %v4816_v36 }
0x15d6   :  { %vm2252_vm12 = vcmp.lt.s32.totalorder %v2250_v22, %v2251_v50  ;;  %v3818_v20 = vcvt.s32.f32 %v2263_v17 }
0x15d7   :  { %2327 = vbcast.lane.b32.xlu1 %v2325_v53, 256  ;;  %2320 = vbcast.lane.b32.xlu0 %v2318_v58, 256  ;;  %v2253_v19 = vsel %vm2252_vm12, %v2250_v22, %v2251_v50  ;;  %v2424_v22 = vrot.slane %v4813_v35, %v4708_v25  ;;  %v2420_v53 = vrot.slane %v4816_v36, %v4708_v25 }
0x15d8   :  { %v3817_v3 = vcvt.s32.f32 %v2253_v19  ;;  %v2432_v36 = vrot.slane %v2400_v43, %v4708_v25 }
0x15da   :  { %v3832_v7 = vsel %vm1607_vm4, %v3817_v3, %v3831_v45 }
0x15db   :  { %2341 = vbcast.lane.b32.xlu1 %v2339_v63, 256  ;;  %2334 = vbcast.lane.b32.xlu0 %v2332_v1, 256  ;;  %v5257_v42 = vsel %vm1609_vm7, %v3818_v20, %v3832_v7 }
0x15df   :  { %2604 = vperm.xlu0 %4228, %v2602_v5  }
0x1641   :  { %v2300_v29 = vpop.permute.xlu1 %2299  ;;  %v2293_v2 = vpop.permute.xlu0 %2292 }
0x1642   :  { %v2344_v34 = vadd.f32 %v5182_v56, %v2300_v29  ;;  %v2343_v27 = vadd.f32 %v5182_v56, %v2293_v2  ;;  %v2428_v29 = vrot.slane %v2398_v51, %v4708_v25 }
0x1644   :  { %v5270_v44 = vadd.f32 %v2408_v18, %v2344_v34  ;;  %v5272_v55 = vadd.f32 %v2404_v61, %v2343_v27 }
0x1645   :  { %v2314_v15 = vpop.permute.xlu1 %2313  ;;  %v2307_v59 = vpop.permute.xlu0 %2306 }
0x1646   :  { %v2456_v10 = vsel %vm1430_vm3, %v5270_v44, -inf  ;;  %v2449_v21 = vsel %vm1430_vm3, %v5272_v55, -inf  ;;  %v2346_v57 = vadd.f32 %v5182_v56, %v2314_v15  ;;  %v2345_v54 = vadd.f32 %v5182_v56, %v2307_v59 }
0x1647   :  { %v2457_v11 = vrot.slane %v2456_v10, 4  ;;  %v2450_v14 = vrot.slane %v2449_v21, 4 }
0x1648   :  { %v5282_v46 = vadd.f32 %v2416_v60, %v2346_v57  ;;  %v5284_v26 = vadd.f32 %v2412_v31, %v2345_v54 }
0x1649   :  { %v2458_v52 = vmax.f32 %v2456_v10, %v2457_v11  ;;  %v2451_v45 = vmax.f32 %v2449_v21, %v2450_v14  ;;  %v2328_v6 = vpop.permute.xlu1 %2327  ;;  %v2321_v50 = vpop.permute.xlu0 %2320 }
0x164a   :  { %v2470_v58 = vsel %vm1430_vm3, %v5282_v46, -inf  ;;  %v2463_v17 = vsel %vm1430_vm3, %v5284_v26, -inf  ;;  %v2348_v19 = vadd.f32 %v5182_v56, %v2328_v6  ;;  %v2347_v20 = vadd.f32 %v5182_v56, %v2321_v50 }
0x164b   :  { %v2459_v3 = vrot.slane %v2458_v52, 2  ;;  %v2452_v63 = vrot.slane %v2451_v45, 2  ;;  %v2471_v1 = vrot.slane %v2470_v58, 4  ;;  %v2464_v7 = vrot.slane %v2463_v17, 4 }
0x164c   :  { %v5300_v5 = vadd.f32 %v2424_v22, %v2348_v19  ;;  %v5302_v35 = vadd.f32 %v2420_v53, %v2347_v20 }
0x164d   :  { %v2460_v2 = vmax.f32 %v2458_v52, %v2459_v3  ;;  %v2453_v33 = vmax.f32 %v2451_v45, %v2452_v63  ;;  %v2472_v16 = vmax.f32 %v2470_v58, %v2471_v1  ;;  %v2465_v34 = vmax.f32 %v2463_v17, %v2464_v7  ;;  %v2342_v18 = vpop.permute.xlu1 %2341  ;;  %v2335_v27 = vpop.permute.xlu0 %2334 }
0x164e   :  { %v2484_v61 = vsel %vm1430_vm3, %v5300_v5, -inf  ;;  %v2477_v15 = vsel %vm1430_vm3, %v5302_v35, -inf  ;;  %v2350_v60 = vadd.f32 %v5182_v56, %v2342_v18  ;;  %v2349_v59 = vadd.f32 %v5182_v56, %v2335_v27 }
0x164f   :  { %v2461_v31 = vrot.slane %v2460_v2, 1  ;;  %v2454_v10 = vrot.slane %v2453_v33, 1  ;;  %v2473_v21 = vrot.slane %v2472_v16, 2  ;;  %v2466_v57 = vrot.slane %v2465_v34, 2 }
0x1650   :  { %v2485_v54 = vrot.slane %v2484_v61, 4  ;;  %v2478_v11 = vrot.slane %v2477_v15, 4  ;;  %v5312_v14 = vadd.f32 %v2432_v36, %v2350_v60  ;;  %v5314_v43 = vadd.f32 %v2428_v29, %v2349_v59 }
0x1651   :  { %v2462_v51 = vmax.f32 %v2460_v2, %v2461_v31  ;;  %v2455_v52 = vmax.f32 %v2453_v33, %v2454_v10  ;;  %v2474_v45 = vmax.f32 %v2472_v16, %v2473_v21  ;;  %v2467_v6 = vmax.f32 %v2465_v34, %v2466_v57 }
0x1652   :  { %v2486_v22 = vmax.f32 %v2484_v61, %v2485_v54  ;;  %v2479_v50 = vmax.f32 %v2477_v15, %v2478_v11  ;;  %v2498_v53 = vsel %vm1430_vm3, %v5312_v14, -inf  ;;  %v2491_v58 = vsel %vm1430_vm3, %v5314_v43, -inf }
0x1653   :  { %vm2506_vm13 = vcmp.eq.f32.partialorder %v5270_v44, %v2462_v51  ;;  %vm2505_vm14 = vcmp.eq.f32.partialorder %v5272_v55, %v2455_v52  ;;  %v2615_v17 = vsel %vm1597_vm6, %v2462_v51, %v2455_v52  ;;  %v2475_v19 = vrot.slane %v2474_v45, 1 }
0x1654   :  { %v2514_v20 = vsel %vm2506_vm13, %v4697_v13, 8  ;;  %v2513_v3 = vsel %vm2505_vm14, %v4697_v13, 8  ;;  %v2468_v63 = vrot.slane %v2467_v6, 1  ;;  %v2487_v1 = vrot.slane %v2486_v22, 2 }
0x1655   :  { %v2531_v7 = vsel %vm1430_vm3, %v2514_v20, 2147483647  ;;  %v2521_v36 = vsel %vm1430_vm3, %v2513_v3, 2147483647  ;;  %v2476_v29 = vmax.f32 %v2474_v45, %v2475_v19  ;;  %v2480_v2 = vrot.slane %v2479_v50, 2 }
0x1656   :  { %v2532_v33 = vrot.slane %v2531_v7, 4  ;;  %v2522_v16 = vrot.slane %v2521_v36, 4  ;;  %v2469_v44 = vmax.f32 %v2467_v6, %v2468_v63  ;;  %v2488_v34 = vmax.f32 %v2486_v22, %v2487_v1 }
0x1657   :  { %vm2508_vm1 = vcmp.eq.f32.partialorder %v5282_v46, %v2476_v29  ;;  %v2481_v55 = vmax.f32 %v2479_v50, %v2480_v2  ;;  %v2499_v18 = vrot.slane %v2498_v53, 4  ;;  %v2492_v27 = vrot.slane %v2491_v58, 4 }
0x1658   :  { %vm2533_vm2 = vcmp.lt.s32.totalorder %v2531_v7, %v2532_v33  ;;  %vm2523_vm9 = vcmp.lt.s32.totalorder %v2521_v36, %v2522_v16  ;;  %v2516_v61 = vsel %vm2508_vm1, %v4697_v13, 8  ;;  %vm2507_vm12 = vcmp.eq.f32.partialorder %v5284_v26, %v2469_v44 }
0x1659   :  { %v2534_v15 = vsel %vm2533_vm2, %v2531_v7, %v2532_v33  ;;  %v2524_v60 = vsel %vm2523_vm9, %v2521_v36, %v2522_v16  ;;  %v2551_v59 = vsel %vm1430_vm3, %v2516_v61, 2147483647  ;;  %v2515_v31 = vsel %vm2507_vm12, %v4697_v13, 8 }
0x165a   :  { %v2535_v10 = vrot.slane %v2534_v15, 2  ;;  %v2525_v21 = vrot.slane %v2524_v60, 2  ;;  %v2552_v57 = vrot.slane %v2551_v59, 4  ;;  %v2541_v46 = vsel %vm1430_vm3, %v2515_v31, 2147483647 }
0x165b   :  { %v2542_v54 = vrot.slane %v2541_v46, 4  ;;  %v2616_v11 = vsel %vm1599_vm11, %v2469_v44, %v2615_v17  ;;  %v2489_v51 = vrot.slane %v2488_v34, 1  ;;  %v2482_v52 = vrot.slane %v2481_v55, 1 }
0x165c   :  { %vm2536_vm10 = vcmp.lt.s32.totalorder %v2534_v15, %v2535_v10  ;;  %vm2526_vm13 = vcmp.lt.s32.totalorder %v2524_v60, %v2525_v21  ;;  %vm2553_vm14 = vcmp.lt.s32.totalorder %v2551_v59, %v2552_v57  ;;  %v2617_v26 = vsel %vm1601_vm0, %v2476_v29, %v2616_v11 }
0x165d   :  { %v2537_v45 = vsel %vm2536_vm10, %v2534_v15, %v2535_v10  ;;  %v2527_v6 = vsel %vm2526_vm13, %v2524_v60, %v2525_v21  ;;  %v2554_v22 = vsel %vm2553_vm14, %v2551_v59, %v2552_v57  ;;  %vm2543_vm1 = vcmp.lt.s32.totalorder %v2541_v46, %v2542_v54 }
0x165e   :  { %v2538_v50 = vrot.slane %v2537_v45, 1  ;;  %v2528_v19 = vrot.slane %v2527_v6, 1  ;;  %v2555_v20 = vrot.slane %v2554_v22, 2  ;;  %v2544_v3 = vsel %vm2543_vm1, %v2541_v46, %v2542_v54 }
0x165f   :  { %v2545_v63 = vrot.slane %v2544_v3, 2  ;;  %v2490_v1 = vmax.f32 %v2488_v34, %v2489_v51  ;;  %v2483_v7 = vmax.f32 %v2481_v55, %v2482_v52  ;;  %v2500_v36 = vmax.f32 %v2498_v53, %v2499_v18 }
0x1660   :  { %vm2539_vm2 = vcmp.lt.s32.totalorder %v2537_v45, %v2538_v50  ;;  %vm2529_vm9 = vcmp.lt.s32.totalorder %v2527_v6, %v2528_v19  ;;  %vm2556_vm12 = vcmp.lt.s32.totalorder %v2554_v22, %v2555_v20  ;;  %v2493_v17 = vmax.f32 %v2491_v58, %v2492_v27 }
0x1661   :  { %v2540_v2 = vsel %vm2539_vm2, %v2537_v45, %v2538_v50  ;;  %v2530_v33 = vsel %vm2529_vm9, %v2527_v6, %v2528_v19  ;;  %v2557_v16 = vsel %vm2556_vm12, %v2554_v22, %v2555_v20  ;;  %vm2546_vm8 = vcmp.lt.s32.totalorder %v2544_v3, %v2545_v63 }
0x1662   :  { %v3774_v29 = vcvt.s32.f32 %v2540_v2  ;;  %v3773_v44 = vcvt.s32.f32 %v2530_v33  ;;  %v2558_v61 = vrot.slane %v2557_v16, 1  ;;  %v2547_v15 = vsel %vm2546_vm8, %v2544_v3, %v2545_v63  ;;  %v5346_v63 = vpop.permute.xlu0 %2604 }
0x1663   :  { %v2548_v60 = vrot.slane %v2547_v15, 1  ;;  %vm2510_vm10 = vcmp.eq.f32.partialorder %v5300_v5, %v2490_v1  ;;  %vm2509_vm13 = vcmp.eq.f32.partialorder %v5302_v35, %v2483_v7  ;;  %v2618_v34 = vsel %vm1603_vm5, %v2483_v7, %v2617_v26 }
0x1664   :  { %vm2559_vm14 = vcmp.lt.s32.totalorder %v2557_v16, %v2558_v61  ;;  %v2518_v53 = vsel %vm2510_vm10, %v4697_v13, 8  ;;  %v2517_v58 = vsel %vm2509_vm13, %v4697_v13, 8  ;;  %v2501_v55 = vrot.slane %v2500_v36, 2 }
0x1665   :  { %v2560_v18 = vsel %vm2559_vm14, %v2557_v16, %v2558_v61  ;;  %vm2549_vm1 = vcmp.lt.s32.totalorder %v2547_v15, %v2548_v60  ;;  %v2571_v27 = vsel %vm1430_vm3, %v2518_v53, 2147483647  ;;  %v2561_v59 = vsel %vm1430_vm3, %v2517_v58, 2147483647 }
0x1666   :  { %v2550_v31 = vsel %vm2549_vm1, %v2547_v15, %v2548_v60  ;;  %v2572_v10 = vrot.slane %v2571_v27, 4  ;;  %v2562_v21 = vrot.slane %v2561_v59, 4  ;;  %v3776_v5 = vcvt.s32.f32 %v2560_v18 }
0x1667   :  { %v3775_v57 = vcvt.s32.f32 %v2550_v31  ;;  %v2502_v35 = vmax.f32 %v2500_v36, %v2501_v55  ;;  %v2494_v46 = vrot.slane %v2493_v17, 2  ;;  %v2619_v54 = vsel %vm1605_vm15, %v2490_v1, %v2618_v34 }
0x1668   :  { %vm2573_vm8 = vcmp.lt.s32.totalorder %v2571_v27, %v2572_v10  ;;  %vm2563_vm2 = vcmp.lt.s32.totalorder %v2561_v59, %v2562_v21  ;;  %v3789_v11 = vsel %vm1597_vm6, %v3774_v29, %v3773_v44  ;;  %vm5855_vm14 = vcmp.eq.s32.totalorder %v5346_v63, 1 }
0x1669   :  { %v2574_v51 = vsel %vm2573_vm8, %v2571_v27, %v2572_v10  ;;  %v2564_v52 = vsel %vm2563_vm2, %v2561_v59, %v2562_v21  ;;  %v2503_v26 = vrot.slane %v2502_v35, 1  ;;  %v2495_v45 = vmax.f32 %v2493_v17, %v2494_v46 }
0x166a   :  { %v2575_v6 = vrot.slane %v2574_v51, 2  ;;  %v2565_v22 = vrot.slane %v2564_v52, 2  ;;  %v3790_v50 = vsel %vm1599_vm11, %v3775_v57, %v3789_v11 }
0x166b   :  { %v2504_v19 = vmax.f32 %v2502_v35, %v2503_v26  ;;  %v2496_v20 = vrot.slane %v2495_v45, 1  ;;  %v3791_v3 = vsel %vm1601_vm0, %v3776_v5, %v3790_v50 }
0x166c   :  { %vm2576_vm9 = vcmp.lt.s32.totalorder %v2574_v51, %v2575_v6  ;;  %vm2566_vm12 = vcmp.lt.s32.totalorder %v2564_v52, %v2565_v22 }
0x166d   :  { %v2577_v7 = vsel %vm2576_vm9, %v2574_v51, %v2575_v6  ;;  %v2567_v1 = vsel %vm2566_vm12, %v2564_v52, %v2565_v22  ;;  %vm2512_vm10 = vcmp.eq.f32.partialorder %v5312_v14, %v2504_v19  ;;  %v2497_v36 = vmax.f32 %v2495_v45, %v2496_v20 }
0x166e   :  { %v2578_v2 = vrot.slane %v2577_v7, 1  ;;  %v2568_v33 = vrot.slane %v2567_v1, 1  ;;  %v2520_v17 = vsel %vm2512_vm10, %v4697_v13, 8 }
0x166f   :  { %v2591_v16 = vsel %vm1430_vm3, %v2520_v17, 2147483647  ;;  %vm2511_vm13 = vcmp.eq.f32.partialorder %v5314_v43, %v2497_v36  ;;  %v2620_v29 = vsel %vm1607_vm4, %v2497_v36, %v2619_v54  ;;  %v2734_v17 = vcombine.high %v4758_v49, %v4758_v49 }
0x1670   :  { %vm2579_vm1 = vcmp.lt.s32.totalorder %v2577_v7, %v2578_v2  ;;  %vm2569_vm8 = vcmp.lt.s32.totalorder %v2567_v1, %v2568_v33  ;;  %v2592_v44 = vrot.slane %v2591_v16, 4  ;;  %v2519_v61 = vsel %vm2511_vm13, %v4697_v13, 8 }
0x1671   :  { %v2570_v15 = vsel %vm2569_vm8, %v2567_v1, %v2568_v33  ;;  %v2581_v14 = vsel %vm1430_vm3, %v2519_v61, 2147483647  ;;  %v2621_v60 = vsel %vm1609_vm7, %v2504_v19, %v2620_v29  ;;  %v2580_v34 = vsel %vm2579_vm1, %v2577_v7, %v2578_v2 }
0x1672   :  { %v3777_v53 = vcvt.s32.f32 %v2570_v15  ;;  %vm2593_vm2 = vcmp.lt.s32.totalorder %v2591_v16, %v2592_v44  ;;  %v2582_v58 = vrot.slane %v2581_v14, 4  ;;  %v5360_v43 = vsel %vm5855_vm14, %v2621_v60, %v5234_v47 }
0x1673   :  { %v2594_v55 = vsel %vm2593_vm2, %v2591_v16, %v2592_v44  ;;  %v2634_v18 = vrot.slane %v5360_v43, %v4705_v23  ;;  %v2627_v27 = vrot.slane %v5360_v43, %v4708_v25  ;;  %v3778_v10 = vcvt.s32.f32 %v2580_v34 }
0x1674   :  { %v2595_v59 = vrot.slane %v2594_v55, 2  ;;  %vm2583_vm9 = vcmp.lt.s32.totalorder %v2581_v14, %v2582_v58  ;;  %v3792_v5 = vsel %vm1603_vm5, %v3777_v53, %v3791_v3  ;;  %v2648_v47 = vrot.slane %v5360_v43, %v4716_v32 }
0x1675   :  { %v2584_v31 = vsel %vm2583_vm9, %v2581_v14, %v2582_v58  ;;  %2636 = vbcast.lane.b32.xlu0 %v2634_v18, 256  ;;  %2629 = vbcast.lane.b32.xlu1 %v2627_v27, 256  ;;  %v2641_v57 = vrot.slane %v5360_v43, %v4723_v9  ;;  %v3793_v46 = vsel %vm1605_vm15, %v3778_v10, %v3792_v5  ;;  %vm2938_vm8 = vcmp.ge.s32.totalorder %v5122_v62, 5 }
0x1676   :  { %vm2596_vm12 = vcmp.lt.s32.totalorder %v2594_v55, %v2595_v59  ;;  %v2585_v21 = vrot.slane %v2584_v31, 2  ;;  %v2662_v52 = vrot.slane %v5360_v43, %v4730_v38  ;;  %v2655_v26 = vrot.slane %v5360_v43, %v4733_v30 }
0x1677   :  { %v2597_v35 = vsel %vm2596_vm12, %v2594_v55, %v2595_v59  ;;  %v2676_v19 = vrot.slane %v5360_v43, %v4751_v48  ;;  %v2669_v20 = vrot.slane %v5360_v43, %v4754_v4  ;;  %v2939_v1 = vsel %vm2938_vm8, 1, %v5866_v0 }
0x1678   :  { %vm2586_vm10 = vcmp.lt.s32.totalorder %v2584_v31, %v2585_v21  ;;  %v2598_v54 = vrot.slane %v2597_v35, 1  ;;  %v2736_v33 = vcombine.high %v4819_v39, %v4819_v39  ;;  %v2745_v62 = vrot.slane %v4819_v39, %v4708_v25 }
0x1679   :  { %v2587_v11 = vsel %vm2586_vm10, %v2584_v31, %v2585_v21  ;;  %2650 = vbcast.lane.b32.xlu0 %v2648_v47, 256  ;;  %2643 = vbcast.lane.b32.xlu1 %v2641_v57, 256  ;;  %v2741_v29 = vrot.slane %v4758_v49, %v4708_v25  ;;  %v2749_v34 = vrot.slane %v2734_v17, %v4708_v25 }
0x167a   :  { %v2588_v51 = vrot.slane %v2587_v11, 1  ;;  %vm2599_vm13 = vcmp.lt.s32.totalorder %v2597_v35, %v2598_v54  ;;  %v2753_v14 = vrot.slane %v2736_v33, %v4708_v25  ;;  %v2737_v10 = vcombine.high %v4822_v41, %v4822_v41 }
0x167b   :  { %v2600_v45 = vsel %vm2599_vm13, %v2597_v35, %v2598_v54  ;;  %v2735_v21 = vcombine.high %v4825_v24, %v4825_v24  ;;  %v2761_v57 = vrot.slane %v4822_v41, %v4708_v25 }
0x167c   :  { %vm2589_vm1 = vcmp.lt.s32.totalorder %v2587_v11, %v2588_v51  ;;  %v3780_v22 = vcvt.s32.f32 %v2600_v45 }
0x167d   :  { %2664 = vbcast.lane.b32.xlu0 %v2662_v52, 256  ;;  %2657 = vbcast.lane.b32.xlu1 %v2655_v26, 256  ;;  %v2590_v6 = vsel %vm2589_vm1, %v2587_v11, %v2588_v51 }
0x167e   :  { %v3779_v50 = vcvt.s32.f32 %v2590_v6 }
0x1680   :  { %v3794_v3 = vsel %vm1607_vm4, %v3779_v50, %v3793_v46  ;;  %v2757_v46 = vrot.slane %v4825_v24, %v4708_v25  ;;  %v2769_v24 = vrot.slane %v2737_v10, %v4708_v25 }
0x1681   :  { %2678 = vbcast.lane.b32.xlu0 %v2676_v19, 256  ;;  %2671 = vbcast.lane.b32.xlu1 %v2669_v20, 256  ;;  %v5383_v7 = vsel %vm1609_vm7, %v3780_v22, %v3794_v3  ;;  %v2765_v20 = vrot.slane %v2735_v21, %v4708_v25 }
0x1685   :  { %2941 = vperm.xlu1 %4229, %v2939_v1  }
0x16e7   :  { %v2637_v36 = vpop.permute.xlu0 %2636  ;;  %v2630_v2 = vpop.permute.xlu1 %2629 }
0x16e8   :  { %v2681_v16 = vadd.f32 %v5182_v56, %v2637_v36  ;;  %v2680_v44 = vadd.f32 %v5182_v56, %v2630_v2 }
0x16ea   :  { %v5396_v61 = vadd.f32 %v2745_v62, %v2681_v16  ;;  %v5398_v15 = vadd.f32 %v2741_v29, %v2680_v44 }
0x16eb   :  { %v2651_v60 = vpop.permute.xlu0 %2650  ;;  %v2644_v53 = vpop.permute.xlu1 %2643 }
0x16ec   :  { %v2793_v39 = vsel %vm1430_vm3, %v5396_v61, -inf  ;;  %v2786_v58 = vsel %vm1430_vm3, %v5398_v15, -inf  ;;  %v2683_v49 = vadd.f32 %v5182_v56, %v2651_v60  ;;  %v2682_v55 = vadd.f32 %v5182_v56, %v2644_v53 }
0x16ed   :  { %v2794_v18 = vrot.slane %v2793_v39, 4  ;;  %v2787_v27 = vrot.slane %v2786_v58, 4 }
0x16ee   :  { %v5408_v59 = vadd.f32 %v2753_v14, %v2683_v49  ;;  %v5410_v31 = vadd.f32 %v2749_v34, %v2682_v55 }
0x16ef   :  { %v2795_v5 = vmax.f32 %v2793_v39, %v2794_v18  ;;  %v2788_v47 = vmax.f32 %v2786_v58, %v2787_v27  ;;  %v2665_v35 = vpop.permute.xlu0 %2664  ;;  %v2658_v54 = vpop.permute.xlu1 %2657 }
0x16f0   :  { %v2807_v11 = vsel %vm1430_vm3, %v5408_v59, -inf  ;;  %v2800_v51 = vsel %vm1430_vm3, %v5410_v31, -inf  ;;  %v2685_v52 = vadd.f32 %v5182_v56, %v2665_v35  ;;  %v2684_v26 = vadd.f32 %v5182_v56, %v2658_v54 }
0x16f1   :  { %v2796_v45 = vrot.slane %v2795_v5, 2  ;;  %v2789_v6 = vrot.slane %v2788_v47, 2  ;;  %v2808_v22 = vrot.slane %v2807_v11, 4  ;;  %v2801_v50 = vrot.slane %v2800_v51, 4 }
0x16f2   :  { %v5426_v41 = vadd.f32 %v2761_v57, %v2685_v52  ;;  %v5428_v19 = vadd.f32 %v2757_v46, %v2684_v26 }
0x16f3   :  { %v2797_v3 = vmax.f32 %v2795_v5, %v2796_v45  ;;  %v2790_v1 = vmax.f32 %v2788_v47, %v2789_v6  ;;  %v2809_v36 = vmax.f32 %v2807_v11, %v2808_v22  ;;  %v2802_v2 = vmax.f32 %v2800_v51, %v2801_v50  ;;  %v2679_v33 = vpop.permute.xlu0 %2678  ;;  %v2672_v17 = vpop.permute.xlu1 %2671 }
0x16f4   :  { %v2821_v62 = vsel %vm1430_vm3, %v5426_v41, -inf  ;;  %v2814_v16 = vsel %vm1430_vm3, %v5428_v19, -inf  ;;  %v2687_v29 = vadd.f32 %v5182_v56, %v2679_v33  ;;  %v2686_v44 = vadd.f32 %v5182_v56, %v2672_v17 }
0x16f5   :  { %v2798_v14 = vrot.slane %v2797_v3, 1  ;;  %v2791_v60 = vrot.slane %v2790_v1, 1  ;;  %v2810_v34 = vrot.slane %v2809_v36, 2  ;;  %v2803_v53 = vrot.slane %v2802_v2, 2 }
0x16f6   :  { %v2822_v39 = vrot.slane %v2821_v62, 4  ;;  %v2815_v58 = vrot.slane %v2814_v16, 4  ;;  %v5438_v49 = vadd.f32 %v2769_v24, %v2687_v29  ;;  %v5440_v55 = vadd.f32 %v2765_v20, %v2686_v44 }
0x16f7   :  { %v2799_v18 = vmax.f32 %v2797_v3, %v2798_v14  ;;  %v2792_v27 = vmax.f32 %v2790_v1, %v2791_v60  ;;  %v2811_v10 = vmax.f32 %v2809_v36, %v2810_v34  ;;  %v2804_v21 = vmax.f32 %v2802_v2, %v2803_v53 }
0x16f8   :  { %v2823_v5 = vmax.f32 %v2821_v62, %v2822_v39  ;;  %v2816_v47 = vmax.f32 %v2814_v16, %v2815_v58  ;;  %v2835_v57 = vsel %vm1430_vm3, %v5438_v49, -inf  ;;  %v2828_v56 = vsel %vm1430_vm3, %v5440_v55, -inf }
0x16f9   :  { %vm2843_vm2 = vcmp.eq.f32.partialorder %v5396_v61, %v2799_v18  ;;  %vm2842_vm9 = vcmp.eq.f32.partialorder %v5398_v15, %v2792_v27  ;;  %v2952_v35 = vsel %vm1597_vm6, %v2799_v18, %v2792_v27  ;;  %v2812_v46 = vrot.slane %v2811_v10, 1 }
0x16fa   :  { %v2851_v54 = vsel %vm2843_vm2, %v4697_v13, 8  ;;  %v2850_v11 = vsel %vm2842_vm9, %v4697_v13, 8  ;;  %v2805_v51 = vrot.slane %v2804_v21, 1  ;;  %v2824_v52 = vrot.slane %v2823_v5, 2 }
0x16fb   :  { %v2868_v26 = vsel %vm1430_vm3, %v2851_v54, 2147483647  ;;  %v2858_v45 = vsel %vm1430_vm3, %v2850_v11, 2147483647  ;;  %v2813_v6 = vmax.f32 %v2811_v10, %v2812_v46  ;;  %v2817_v22 = vrot.slane %v2816_v47, 2 }
0x16fc   :  { %v2869_v50 = vrot.slane %v2868_v26, 4  ;;  %v2859_v24 = vrot.slane %v2858_v45, 4  ;;  %v2806_v61 = vmax.f32 %v2804_v21, %v2805_v51  ;;  %v2825_v20 = vmax.f32 %v2823_v5, %v2824_v52 }
0x16fd   :  { %vm2845_vm12 = vcmp.eq.f32.partialorder %v5408_v59, %v2813_v6  ;;  %v2818_v15 = vmax.f32 %v2816_v47, %v2817_v22  ;;  %v2836_v3 = vrot.slane %v2835_v57, 4  ;;  %v2829_v1 = vrot.slane %v2828_v56, 4 }
0x16fe   :  { %vm2870_vm10 = vcmp.lt.s32.totalorder %v2868_v26, %v2869_v50  ;;  %vm2860_vm13 = vcmp.lt.s32.totalorder %v2858_v45, %v2859_v24  ;;  %v2853_v36 = vsel %vm2845_vm12, %v4697_v13, 8  ;;  %vm2844_vm1 = vcmp.eq.f32.partialorder %v5410_v31, %v2806_v61 }
0x16ff   :  { %v2871_v2 = vsel %vm2870_vm10, %v2868_v26, %v2869_v50  ;;  %v2861_v33 = vsel %vm2860_vm13, %v2858_v45, %v2859_v24  ;;  %v2888_v17 = vsel %vm1430_vm3, %v2853_v36, 2147483647  ;;  %v2852_v62 = vsel %vm2844_vm1, %v4697_v13, 8 }
0x1700   :  { %v2872_v16 = vrot.slane %v2871_v2, 2  ;;  %v2862_v29 = vrot.slane %v2861_v33, 2  ;;  %v2889_v44 = vrot.slane %v2888_v17, 4  ;;  %v2878_v59 = vsel %vm1430_vm3, %v2852_v62, 2147483647 }
0x1701   :  { %v2879_v14 = vrot.slane %v2878_v59, 4  ;;  %v2953_v60 = vsel %vm1599_vm11, %v2806_v61, %v2952_v35  ;;  %v2826_v34 = vrot.slane %v2825_v20, 1  ;;  %v2819_v53 = vrot.slane %v2818_v15, 1 }
0x1702   :  { %vm2873_vm8 = vcmp.lt.s32.totalorder %v2871_v2, %v2872_v16  ;;  %vm2863_vm2 = vcmp.lt.s32.totalorder %v2861_v33, %v2862_v29  ;;  %vm2890_vm9 = vcmp.lt.s32.totalorder %v2888_v17, %v2889_v44  ;;  %v2954_v31 = vsel %vm1601_vm0, %v2813_v6, %v2953_v60 }
0x1703   :  { %v2874_v39 = vsel %vm2873_vm8, %v2871_v2, %v2872_v16  ;;  %v2864_v58 = vsel %vm2863_vm2, %v2861_v33, %v2862_v29  ;;  %v2891_v18 = vsel %vm2890_vm9, %v2888_v17, %v2889_v44  ;;  %vm2880_vm12 = vcmp.lt.s32.totalorder %v2878_v59, %v2879_v14 }
0x1704   :  { %v2875_v27 = vrot.slane %v2874_v39, 1  ;;  %v2865_v10 = vrot.slane %v2864_v58, 1  ;;  %v2892_v21 = vrot.slane %v2891_v18, 2  ;;  %v2881_v5 = vsel %vm2880_vm12, %v2878_v59, %v2879_v14 }
0x1705   :  { %v2882_v47 = vrot.slane %v2881_v5, 2  ;;  %v2827_v46 = vmax.f32 %v2825_v20, %v2826_v34  ;;  %v2820_v54 = vmax.f32 %v2818_v15, %v2819_v53  ;;  %v2837_v11 = vmax.f32 %v2835_v57, %v2836_v3 }
0x1706   :  { %vm2876_vm10 = vcmp.lt.s32.totalorder %v2874_v39, %v2875_v27  ;;  %vm2866_vm13 = vcmp.lt.s32.totalorder %v2864_v58, %v2865_v10  ;;  %vm2893_vm1 = vcmp.lt.s32.totalorder %v2891_v18, %v2892_v21  ;;  %v2830_v35 = vmax.f32 %v2828_v56, %v2829_v1 }
0x1707   :  { %v2877_v51 = vsel %vm2876_vm10, %v2874_v39, %v2875_v27  ;;  %v2867_v52 = vsel %vm2866_vm13, %v2864_v58, %v2865_v10  ;;  %v2894_v26 = vsel %vm2893_vm1, %v2891_v18, %v2892_v21  ;;  %vm2883_vm14 = vcmp.lt.s32.totalorder %v2881_v5, %v2882_v47  ;;  %v5472_v27 = vpop.permute.xlu1 %2941 }
0x1708   :  { %v3736_v45 = vcvt.s32.f32 %v2877_v51  ;;  %v3735_v6 = vcvt.s32.f32 %v2867_v52  ;;  %v2895_v22 = vrot.slane %v2894_v26, 1  ;;  %v2884_v50 = vsel %vm2883_vm14, %v2881_v5, %v2882_v47 }
0x1709   :  { %v2885_v24 = vrot.slane %v2884_v50, 1  ;;  %vm2847_vm8 = vcmp.eq.f32.partialorder %v5426_v41, %v2827_v46  ;;  %vm2846_vm2 = vcmp.eq.f32.partialorder %v5428_v19, %v2820_v54  ;;  %v2955_v61 = vsel %vm1603_vm5, %v2820_v54, %v2954_v31 }
0x170a   :  { %vm2896_vm9 = vcmp.lt.s32.totalorder %v2894_v26, %v2895_v22  ;;  %v2855_v57 = vsel %vm2847_vm8, %v4697_v13, 8  ;;  %v2854_v56 = vsel %vm2846_vm2, %v4697_v13, 8  ;;  %v2838_v20 = vrot.slane %v2837_v11, 2 }
0x170b   :  { %v2897_v15 = vsel %vm2896_vm9, %v2894_v26, %v2895_v22  ;;  %vm2886_vm12 = vcmp.lt.s32.totalorder %v2884_v50, %v2885_v24  ;;  %v2908_v3 = vsel %vm1430_vm3, %v2855_v57, 2147483647  ;;  %v2898_v1 = vsel %vm1430_vm3, %v2854_v56, 2147483647 }
0x170c   :  { %v3738_v36 = vcvt.s32.f32 %v2897_v15  ;;  %v2887_v2 = vsel %vm2886_vm12, %v2884_v50, %v2885_v24  ;;  %v2909_v33 = vrot.slane %v2908_v3, 4  ;;  %v2899_v41 = vrot.slane %v2898_v1, 4 }
0x170d   :  { %v3737_v17 = vcvt.s32.f32 %v2887_v2  ;;  %v2839_v19 = vmax.f32 %v2837_v11, %v2838_v20  ;;  %v2831_v62 = vrot.slane %v2830_v35, 2  ;;  %v2956_v16 = vsel %vm1605_vm15, %v2827_v46, %v2955_v61 }
0x170e   :  { %vm2910_vm14 = vcmp.lt.s32.totalorder %v2908_v3, %v2909_v33  ;;  %vm2900_vm10 = vcmp.lt.s32.totalorder %v2898_v1, %v2899_v41  ;;  %v3751_v29 = vsel %vm1597_vm6, %v3736_v45, %v3735_v6  ;;  %vm5856_vm9 = vcmp.eq.s32.totalorder %v5472_v27, 1 }
0x170f   :  { %v2911_v44 = vsel %vm2910_vm14, %v2908_v3, %v2909_v33  ;;  %v2901_v59 = vsel %vm2900_vm10, %v2898_v1, %v2899_v41  ;;  %v2840_v14 = vrot.slane %v2839_v19, 1  ;;  %v2832_v60 = vmax.f32 %v2830_v35, %v2831_v62 }
0x1710   :  { %v2912_v34 = vrot.slane %v2911_v44, 2  ;;  %v2902_v53 = vrot.slane %v2901_v59, 2  ;;  %v3752_v31 = vsel %vm1599_vm11, %v3737_v17, %v3751_v29 }
0x1711   :  { %v2841_v39 = vmax.f32 %v2839_v19, %v2840_v14  ;;  %v2833_v58 = vrot.slane %v2832_v60, 1  ;;  %v3753_v18 = vsel %vm1601_vm0, %v3738_v36, %v3752_v31 }
0x1712   :  { %vm2913_vm13 = vcmp.lt.s32.totalorder %v2911_v44, %v2912_v34  ;;  %vm2903_vm1 = vcmp.lt.s32.totalorder %v2901_v59, %v2902_v53 }
0x1713   :  { %v2914_v10 = vsel %vm2913_vm13, %v2911_v44, %v2912_v34  ;;  %v2904_v21 = vsel %vm2903_vm1, %v2901_v59, %v2902_v53  ;;  %vm2849_vm8 = vcmp.eq.f32.partialorder %v5438_v49, %v2841_v39  ;;  %v2834_v5 = vmax.f32 %v2832_v60, %v2833_v58  ;;  %v5509_v53 = vld [vmem:[%s5837_s7] sm:$0xff] }
0x1714   :  { %v2915_v47 = vrot.slane %v2914_v10, 1  ;;  %v2905_v46 = vrot.slane %v2904_v21, 1  ;;  %v2857_v54 = vsel %vm2849_vm8, %v4697_v13, 8 }
0x1715   :  { %v2928_v11 = vsel %vm1430_vm3, %v2857_v54, 2147483647  ;;  %vm2848_vm2 = vcmp.eq.f32.partialorder %v5440_v55, %v2834_v5  ;;  %v2957_v35 = vsel %vm1607_vm4, %v2834_v5, %v2956_v16  ;;  %v5524_v54 = vld [vmem:[%s5838_s4] sm:$0xff] }
0x1716   :  { %vm2916_vm12 = vcmp.lt.s32.totalorder %v2914_v10, %v2915_v47  ;;  %vm2906_vm14 = vcmp.lt.s32.totalorder %v2904_v21, %v2905_v46  ;;  %v2929_v51 = vrot.slane %v2928_v11, 4  ;;  %v2856_v52 = vsel %vm2848_vm2, %v4697_v13, 8 }
0x1717   :  { %v2907_v26 = vsel %vm2906_vm14, %v2904_v21, %v2905_v46  ;;  %v2918_v49 = vsel %vm1430_vm3, %v2856_v52, 2147483647  ;;  %v2958_v45 = vsel %vm1609_vm7, %v2841_v39, %v2957_v35  ;;  %v2917_v6 = vsel %vm2916_vm12, %v2914_v10, %v2915_v47  ;;  %v5869_v21 = vld [vmem:[#allocation6_spill] sm:$0xff]  ;;  %v5870_v47 = vld [vmem:[#allocation5_spill] sm:$0xff] }
0x1718   :  { %v3739_v22 = vcvt.s32.f32 %v2907_v26  ;;  %vm2930_vm10 = vcmp.lt.s32.totalorder %v2928_v11, %v2929_v51  ;;  %v2919_v50 = vrot.slane %v2918_v49, 4  ;;  %v5486_v55 = vsel %vm5856_vm9, %v2958_v45, %v5360_v43 }
0x1719   :  { %v2931_v24 = vsel %vm2930_vm10, %v2928_v11, %v2929_v51  ;;  %v2971_v61 = vrot.slane %v5486_v55, %v4705_v23  ;;  %v2964_v57 = vrot.slane %v5486_v55, %v4708_v25  ;;  %v3740_v15 = vcvt.s32.f32 %v2917_v6 }
0x171a   :  { %v2932_v56 = vrot.slane %v2931_v24, 2  ;;  %vm2920_vm13 = vcmp.lt.s32.totalorder %v2918_v49, %v2919_v50  ;;  %v3754_v1 = vsel %vm1603_vm5, %v3739_v22, %v3753_v18  ;;  %v2985_v43 = vrot.slane %v5486_v55, %v4716_v32 }
0x171b   :  { %v2921_v20 = vsel %vm2920_vm13, %v2918_v49, %v2919_v50  ;;  %2973 = vbcast.lane.b32.xlu1 %v2971_v61, 256  ;;  %2966 = vbcast.lane.b32.xlu0 %v2964_v57, 256  ;;  %v2978_v36 = vrot.slane %v5486_v55, %v4723_v9  ;;  %v3755_v33 = vsel %vm1605_vm15, %v3740_v15, %v3754_v1  ;;  %vm3275_vm14 = vcmp.ge.s32.totalorder %v5509_v53, 6 }
0x171c   :  { %vm2933_vm1 = vcmp.lt.s32.totalorder %v2931_v24, %v2932_v56  ;;  %v2922_v3 = vrot.slane %v2921_v20, 2  ;;  %v2999_v62 = vrot.slane %v5486_v55, %v4730_v38  ;;  %v2992_v16 = vrot.slane %v5486_v55, %v4733_v30 }
0x171d   :  { %v2934_v2 = vsel %vm2933_vm1, %v2931_v24, %v2932_v56  ;;  %v3013_v60 = vrot.slane %v5486_v55, %v4751_v48  ;;  %v3006_v34 = vrot.slane %v5486_v55, %v4754_v4  ;;  %v3276_v58 = vsel %vm3275_vm14, 1, %v5866_v0 }
0x171e   :  { %vm2923_vm8 = vcmp.lt.s32.totalorder %v2921_v20, %v2922_v3  ;;  %v2935_v41 = vrot.slane %v2934_v2, 1  ;;  %v3073_v5 = vcombine.high %v5869_v21, %v5869_v21  ;;  %v3071_v46 = vcombine.high %v5870_v47, %v5870_v47 }
0x171f   :  { %v2924_v17 = vsel %vm2923_vm8, %v2921_v20, %v2922_v3  ;;  %2987 = vbcast.lane.b32.xlu1 %v2985_v43, 256  ;;  %2980 = vbcast.lane.b32.xlu0 %v2978_v36, 256  ;;  %v3082_v35 = vrot.slane %v5869_v21, %v4708_v25  ;;  %v3078_v52 = vrot.slane %v5870_v47, %v4708_v25  ;;  %v5871_v43 = vld [vmem:[#allocation7_spill] sm:$0xff] }
0x1720   :  { %v2925_v19 = vrot.slane %v2924_v17, 1  ;;  %vm2936_vm2 = vcmp.lt.s32.totalorder %v2934_v2, %v2935_v41  ;;  %v3090_v6 = vrot.slane %v3073_v5, %v4708_v25  ;;  %v3086_v50 = vrot.slane %v3071_v46, %v4708_v25 }
0x1721   :  { %v2937_v29 = vsel %vm2936_vm2, %v2934_v2, %v2935_v41  ;;  %v3074_v36 = vcombine.high %v5871_v43, %v5871_v43  ;;  %v5872_v2 = vld [vmem:[#allocation8_spill] sm:$0xff] }
0x1722   :  { %vm2926_vm12 = vcmp.lt.s32.totalorder %v2924_v17, %v2925_v19  ;;  %v3742_v59 = vcvt.s32.f32 %v2937_v29  ;;  %v3094_v29 = vrot.slane %v5872_v2, %v4708_v25 }
0x1723   :  { %3001 = vbcast.lane.b32.xlu1 %v2999_v62, 256  ;;  %2994 = vbcast.lane.b32.xlu0 %v2992_v16, 256  ;;  %v2927_v44 = vsel %vm2926_vm12, %v2924_v17, %v2925_v19  ;;  %v3098_v62 = vrot.slane %v5871_v43, %v4708_v25  ;;  %v3106_v5 = vrot.slane %v3074_v36, %v4708_v25 }
0x1724   :  { %v3741_v14 = vcvt.s32.f32 %v2927_v44 }
0x1726   :  { %v3756_v31 = vsel %vm1607_vm4, %v3741_v14, %v3755_v33  ;;  %v3072_v33 = vcombine.high %v5872_v2, %v5872_v2 }
0x1727   :  { %3015 = vbcast.lane.b32.xlu1 %v3013_v60, 256  ;;  %3008 = vbcast.lane.b32.xlu0 %v3006_v34, 256  ;;  %v5514_v39 = vsel %vm1609_vm7, %v3742_v59, %v3756_v31 }
0x1728   :  { %v3102_v47 = vrot.slane %v3072_v33, %v4708_v25 }
0x172b   :  { %3278 = vperm.xlu0 %4228, %v3276_v58  }
0x178d   :  { %v2974_v18 = vpop.permute.xlu1 %2973  ;;  %v2967_v10 = vpop.permute.xlu0 %2966 }
0x178e   :  { %v3018_v11 = vadd.f32 %v5524_v54, %v2974_v18  ;;  %v3017_v51 = vadd.f32 %v5524_v54, %v2967_v10 }
0x1790   :  { %v5532_v26 = vadd.f32 %v3082_v35, %v3018_v11  ;;  %v5534_v49 = vadd.f32 %v3078_v52, %v3017_v51 }
0x1791   :  { %v2988_v45 = vpop.permute.xlu1 %2987  ;;  %v2981_v22 = vpop.permute.xlu0 %2980 }
0x1792   :  { %v3130_v24 = vsel %vm1430_vm3, %v5532_v26, -inf  ;;  %v3123_v61 = vsel %vm1430_vm3, %v5534_v49, -inf  ;;  %v3020_v57 = vadd.f32 %v5524_v54, %v2988_v45  ;;  %v3019_v56 = vadd.f32 %v5524_v54, %v2981_v22 }
0x1793   :  { %v3131_v20 = vrot.slane %v3130_v24, 4  ;;  %v3124_v15 = vrot.slane %v3123_v61, 4 }
0x1794   :  { %v5544_v3 = vadd.f32 %v3090_v6, %v3020_v57  ;;  %v5546_v1 = vadd.f32 %v3086_v50, %v3019_v56 }
0x1795   :  { %v3132_v41 = vmax.f32 %v3130_v24, %v3131_v20  ;;  %v3125_v17 = vmax.f32 %v3123_v61, %v3124_v15  ;;  %v3002_v19 = vpop.permute.xlu1 %3001  ;;  %v2995_v16 = vpop.permute.xlu0 %2994 }
0x1796   :  { %v3144_v44 = vsel %vm1430_vm3, %v5544_v3, -inf  ;;  %v3137_v59 = vsel %vm1430_vm3, %v5546_v1, -inf  ;;  %v3022_v14 = vadd.f32 %v5524_v54, %v3002_v19  ;;  %v3021_v60 = vadd.f32 %v5524_v54, %v2995_v16 }
0x1797   :  { %v3133_v34 = vrot.slane %v3132_v41, 2  ;;  %v3126_v31 = vrot.slane %v3125_v17, 2  ;;  %v3145_v58 = vrot.slane %v3144_v44, 4  ;;  %v3138_v18 = vrot.slane %v3137_v59, 4 }
0x1798   :  { %v5562_v10 = vadd.f32 %v3098_v62, %v3022_v14  ;;  %v5564_v21 = vadd.f32 %v3094_v29, %v3021_v60 }
0x1799   :  { %v3134_v46 = vmax.f32 %v3132_v41, %v3133_v34  ;;  %v3127_v11 = vmax.f32 %v3125_v17, %v3126_v31  ;;  %v3146_v35 = vmax.f32 %v3144_v44, %v3145_v58  ;;  %v3139_v51 = vmax.f32 %v3137_v59, %v3138_v18  ;;  %v3016_v52 = vpop.permute.xlu1 %3015  ;;  %v3009_v45 = vpop.permute.xlu0 %3008 }
0x179a   :  { %v3158_v6 = vsel %vm1430_vm3, %v5562_v10, -inf  ;;  %v3151_v22 = vsel %vm1430_vm3, %v5564_v21, -inf  ;;  %v3024_v50 = vadd.f32 %v5524_v54, %v3016_v52  ;;  %v3023_v24 = vadd.f32 %v5524_v54, %v3009_v45 }
0x179b   :  { %v3135_v61 = vrot.slane %v3134_v46, 1  ;;  %v3128_v57 = vrot.slane %v3127_v11, 1  ;;  %v3147_v56 = vrot.slane %v3146_v35, 2  ;;  %v3140_v20 = vrot.slane %v3139_v51, 2 }
0x179c   :  { %v3159_v15 = vrot.slane %v3158_v6, 4  ;;  %v3152_v43 = vrot.slane %v3151_v22, 4  ;;  %v5574_v36 = vadd.f32 %v3106_v5, %v3024_v50  ;;  %v5576_v2 = vadd.f32 %v3102_v47, %v3023_v24 }
0x179d   :  { %v3136_v33 = vmax.f32 %v3134_v46, %v3135_v61  ;;  %v3129_v41 = vmax.f32 %v3127_v11, %v3128_v57  ;;  %v3148_v17 = vmax.f32 %v3146_v35, %v3147_v56  ;;  %v3141_v19 = vmax.f32 %v3139_v51, %v3140_v20 }
0x179e   :  { %v3160_v62 = vmax.f32 %v3158_v6, %v3159_v15  ;;  %v3153_v16 = vmax.f32 %v3151_v22, %v3152_v43  ;;  %v3172_v29 = vsel %vm1430_vm3, %v5574_v36, -inf  ;;  %v3165_v44 = vsel %vm1430_vm3, %v5576_v2, -inf }
0x179f   :  { %vm3180_vm10 = vcmp.eq.f32.partialorder %v5532_v26, %v3136_v33  ;;  %vm3179_vm13 = vcmp.eq.f32.partialorder %v5534_v49, %v3129_v41  ;;  %v3289_v59 = vsel %vm1597_vm6, %v3136_v33, %v3129_v41  ;;  %v3149_v14 = vrot.slane %v3148_v17, 1 }
0x17a0   :  { %v3188_v60 = vsel %vm3180_vm10, %v4697_v13, 8  ;;  %v3187_v34 = vsel %vm3179_vm13, %v4697_v13, 8  ;;  %v3142_v31 = vrot.slane %v3141_v19, 1  ;;  %v3161_v58 = vrot.slane %v3160_v62, 2 }
0x17a1   :  { %v3205_v18 = vsel %vm1430_vm3, %v3188_v60, 2147483647  ;;  %v3195_v5 = vsel %vm1430_vm3, %v3187_v34, 2147483647  ;;  %v3150_v47 = vmax.f32 %v3148_v17, %v3149_v14  ;;  %v3154_v46 = vrot.slane %v3153_v16, 2 }
0x17a2   :  { %v3206_v11 = vrot.slane %v3205_v18, 4  ;;  %v3196_v35 = vrot.slane %v3195_v5, 4  ;;  %v3143_v26 = vmax.f32 %v3141_v19, %v3142_v31  ;;  %v3162_v51 = vmax.f32 %v3160_v62, %v3161_v58 }
0x17a3   :  { %vm3182_vm1 = vcmp.eq.f32.partialorder %v5544_v3, %v3150_v47  ;;  %v3155_v49 = vmax.f32 %v3153_v16, %v3154_v46  ;;  %v3173_v52 = vrot.slane %v3172_v29, 4  ;;  %v3166_v45 = vrot.slane %v3165_v44, 4 }
0x17a4   :  { %vm3207_vm8 = vcmp.lt.s32.totalorder %v3205_v18, %v3206_v11  ;;  %vm3197_vm2 = vcmp.lt.s32.totalorder %v3195_v5, %v3196_v35  ;;  %v3190_v6 = vsel %vm3182_vm1, %v4697_v13, 8  ;;  %vm3181_vm12 = vcmp.eq.f32.partialorder %v5546_v1, %v3143_v26 }
0x17a5   :  { %v3208_v22 = vsel %vm3207_vm8, %v3205_v18, %v3206_v11  ;;  %v3198_v50 = vsel %vm3197_vm2, %v3195_v5, %v3196_v35  ;;  %v3225_v24 = vsel %vm1430_vm3, %v3190_v6, 2147483647  ;;  %v3189_v61 = vsel %vm3181_vm12, %v4697_v13, 8 }
0x17a6   :  { %v3209_v57 = vrot.slane %v3208_v22, 2  ;;  %v3199_v56 = vrot.slane %v3198_v50, 2  ;;  %v3226_v20 = vrot.slane %v3225_v24, 4  ;;  %v3215_v3 = vsel %vm1430_vm3, %v3189_v61, 2147483647 }
0x17a7   :  { %v3216_v15 = vrot.slane %v3215_v3, 4  ;;  %v3290_v43 = vsel %vm1599_vm11, %v3143_v26, %v3289_v59  ;;  %v3163_v33 = vrot.slane %v3162_v51, 1  ;;  %v3156_v41 = vrot.slane %v3155_v49, 1 }
0x17a8   :  { %vm3210_vm14 = vcmp.lt.s32.totalorder %v3208_v22, %v3209_v57  ;;  %vm3200_vm10 = vcmp.lt.s32.totalorder %v3198_v50, %v3199_v56  ;;  %vm3227_vm13 = vcmp.lt.s32.totalorder %v3225_v24, %v3226_v20  ;;  %v3291_v1 = vsel %vm1601_vm0, %v3150_v47, %v3290_v43 }
0x17a9   :  { %v3211_v17 = vsel %vm3210_vm14, %v3208_v22, %v3209_v57  ;;  %v3201_v19 = vsel %vm3200_vm10, %v3198_v50, %v3199_v56  ;;  %v3228_v62 = vsel %vm3227_vm13, %v3225_v24, %v3226_v20  ;;  %vm3217_vm1 = vcmp.lt.s32.totalorder %v3215_v3, %v3216_v15 }
0x17aa   :  { %v3212_v16 = vrot.slane %v3211_v17, 1  ;;  %v3202_v14 = vrot.slane %v3201_v19, 1  ;;  %v3229_v60 = vrot.slane %v3228_v62, 2  ;;  %v3218_v34 = vsel %vm3217_vm1, %v3215_v3, %v3216_v15 }
0x17ab   :  { %v3219_v31 = vrot.slane %v3218_v34, 2  ;;  %v3164_v58 = vmax.f32 %v3162_v51, %v3163_v33  ;;  %v3157_v18 = vmax.f32 %v3155_v49, %v3156_v41  ;;  %v3174_v5 = vmax.f32 %v3172_v29, %v3173_v52 }
0x17ac   :  { %vm3213_vm8 = vcmp.lt.s32.totalorder %v3211_v17, %v3212_v16  ;;  %vm3203_vm2 = vcmp.lt.s32.totalorder %v3201_v19, %v3202_v14  ;;  %vm3230_vm12 = vcmp.lt.s32.totalorder %v3228_v62, %v3229_v60  ;;  %v3167_v59 = vmax.f32 %v3165_v44, %v3166_v45 }
0x17ad   :  { %v3214_v46 = vsel %vm3213_vm8, %v3211_v17, %v3212_v16  ;;  %v3204_v11 = vsel %vm3203_vm2, %v3201_v19, %v3202_v14  ;;  %v3231_v35 = vsel %vm3230_vm12, %v3228_v62, %v3229_v60  ;;  %vm3220_vm9 = vcmp.lt.s32.totalorder %v3218_v34, %v3219_v31 }
0x17ae   :  { %v3698_v47 = vcvt.s32.f32 %v3214_v46  ;;  %v3697_v26 = vcvt.s32.f32 %v3204_v11  ;;  %v3232_v6 = vrot.slane %v3231_v35, 1  ;;  %v3221_v22 = vsel %vm3220_vm9, %v3218_v34, %v3219_v31  ;;  %v5608_v31 = vpop.permute.xlu0 %3278 }
0x17af   :  { %v3222_v50 = vrot.slane %v3221_v22, 1  ;;  %vm3184_vm14 = vcmp.eq.f32.partialorder %v5562_v10, %v3164_v58  ;;  %vm3183_vm10 = vcmp.eq.f32.partialorder %v5564_v21, %v3157_v18  ;;  %v3292_v51 = vsel %vm1603_vm5, %v3157_v18, %v3291_v1 }
0x17b0   :  { %vm3233_vm13 = vcmp.lt.s32.totalorder %v3231_v35, %v3232_v6  ;;  %v3192_v29 = vsel %vm3184_vm14, %v4697_v13, 8  ;;  %v3191_v44 = vsel %vm3183_vm10, %v4697_v13, 8  ;;  %v3175_v49 = vrot.slane %v3174_v5, 2 }
0x17b1   :  { %v3234_v52 = vsel %vm3233_vm13, %v3231_v35, %v3232_v6  ;;  %vm3223_vm1 = vcmp.lt.s32.totalorder %v3221_v22, %v3222_v50  ;;  %v3245_v45 = vsel %vm1430_vm3, %v3192_v29, 2147483647  ;;  %v3235_v24 = vsel %vm1430_vm3, %v3191_v44, 2147483647 }
0x17b2   :  { %v3224_v61 = vsel %vm3223_vm1, %v3221_v22, %v3222_v50  ;;  %v3246_v57 = vrot.slane %v3245_v45, 4  ;;  %v3236_v56 = vrot.slane %v3235_v24, 4  ;;  %v3700_v10 = vcvt.s32.f32 %v3234_v52 }
0x17b3   :  { %v3699_v20 = vcvt.s32.f32 %v3224_v61  ;;  %v3176_v21 = vmax.f32 %v3174_v5, %v3175_v49  ;;  %v3168_v3 = vrot.slane %v3167_v59, 2  ;;  %v3293_v15 = vsel %vm1605_vm15, %v3164_v58, %v3292_v51 }
0x17b4   :  { %vm3247_vm9 = vcmp.lt.s32.totalorder %v3245_v45, %v3246_v57  ;;  %vm3237_vm8 = vcmp.lt.s32.totalorder %v3235_v24, %v3236_v56  ;;  %v3713_v43 = vsel %vm1597_vm6, %v3698_v47, %v3697_v26  ;;  %vm5857_vm13 = vcmp.eq.s32.totalorder %v5608_v31, 1 }
0x17b5   :  { %v3248_v33 = vsel %vm3247_vm9, %v3245_v45, %v3246_v57  ;;  %v3238_v41 = vsel %vm3237_vm8, %v3235_v24, %v3236_v56  ;;  %v3177_v1 = vrot.slane %v3176_v21, 1  ;;  %v3169_v17 = vmax.f32 %v3167_v59, %v3168_v3 }
0x17b6   :  { %v3249_v19 = vrot.slane %v3248_v33, 2  ;;  %v3239_v62 = vrot.slane %v3238_v41, 2  ;;  %v3714_v16 = vsel %vm1599_vm11, %v3699_v20, %v3713_v43 }
0x17b7   :  { %v3178_v14 = vmax.f32 %v3176_v21, %v3177_v1  ;;  %v3170_v60 = vrot.slane %v3169_v17, 1  ;;  %v3715_v34 = vsel %vm1601_vm0, %v3700_v10, %v3714_v16 }
0x17b8   :  { %vm3250_vm2 = vcmp.lt.s32.totalorder %v3248_v33, %v3249_v19  ;;  %vm3240_vm12 = vcmp.lt.s32.totalorder %v3238_v41, %v3239_v62 }
0x17b9   :  { %v3251_v18 = vsel %vm3250_vm2, %v3248_v33, %v3249_v19  ;;  %v3241_v58 = vsel %vm3240_vm12, %v3238_v41, %v3239_v62  ;;  %vm3186_vm14 = vcmp.eq.f32.partialorder %v5574_v36, %v3178_v14  ;;  %v3171_v5 = vmax.f32 %v3169_v17, %v3170_v60 }
0x17ba   :  { %v3252_v46 = vrot.slane %v3251_v18, 1  ;;  %v3242_v11 = vrot.slane %v3241_v58, 1  ;;  %v3194_v59 = vsel %vm3186_vm14, %v4697_v13, 8 }
0x17bb   :  { %v3265_v35 = vsel %vm1430_vm3, %v3194_v59, 2147483647  ;;  %vm3185_vm10 = vcmp.eq.f32.partialorder %v5576_v2, %v3171_v5  ;;  %v3294_v47 = vsel %vm1607_vm4, %v3171_v5, %v3293_v15 }
0x17bc   :  { %vm3253_vm1 = vcmp.lt.s32.totalorder %v3251_v18, %v3252_v46  ;;  %vm3243_vm9 = vcmp.lt.s32.totalorder %v3241_v58, %v3242_v11  ;;  %v3266_v26 = vrot.slane %v3265_v35, 4  ;;  %v3193_v6 = vsel %vm3185_vm10, %v4697_v13, 8 }
0x17bd   :  { %v3244_v22 = vsel %vm3243_vm9, %v3241_v58, %v3242_v11  ;;  %v3255_v36 = vsel %vm1430_vm3, %v3193_v6, 2147483647  ;;  %v3295_v50 = vsel %vm1609_vm7, %v3178_v14, %v3294_v47  ;;  %v3254_v51 = vsel %vm3253_vm1, %v3251_v18, %v3252_v46  ;;  %v5874_v18 = vld [vmem:[#allocation4_spill] sm:$0xff] }
0x17be   :  { %v3701_v29 = vcvt.s32.f32 %v3244_v22  ;;  %vm3267_vm8 = vcmp.lt.s32.totalorder %v3265_v35, %v3266_v26  ;;  %v3256_v44 = vrot.slane %v3255_v36, 4  ;;  %v5622_v2 = vsel %vm5857_vm13, %v3295_v50, %v5486_v55 }
0x17bf   :  { %v3268_v49 = vsel %vm3267_vm8, %v3265_v35, %v3266_v26  ;;  %v3308_v52 = vrot.slane %v5622_v2, %v4705_v23  ;;  %v3301_v45 = vrot.slane %v5622_v2, %v4708_v25  ;;  %v3702_v57 = vcvt.s32.f32 %v3254_v51 }
0x17c0   :  { %v3269_v24 = vrot.slane %v3268_v49, 2  ;;  %vm3257_vm2 = vcmp.lt.s32.totalorder %v3255_v36, %v3256_v44  ;;  %v3716_v10 = vsel %vm1603_vm5, %v3701_v29, %v3715_v34  ;;  %v3322_v55 = vrot.slane %v5622_v2, %v4716_v32  ;;  %v5873_v34 = vld [vmem:[#allocation9_spill] sm:$0xff] }
0x17c1   :  { %v3258_v61 = vsel %vm3257_vm2, %v3255_v36, %v3256_v44  ;;  %3310 = vbcast.lane.b32.xlu0 %v3308_v52, 256  ;;  %3303 = vbcast.lane.b32.xlu1 %v3301_v45, 256  ;;  %v3315_v20 = vrot.slane %v5622_v2, %v4723_v9  ;;  %v3717_v21 = vsel %vm1605_vm15, %v3702_v57, %v3716_v10  ;;  %vm3612_vm9 = vcmp.ge.s32.totalorder %v5509_v53, 7  ;;  %v5876_v57 = vld [vmem:[#allocation11_spill] sm:$0xff] }
0x17c2   :  { %vm3270_vm12 = vcmp.lt.s32.totalorder %v3268_v49, %v3269_v24  ;;  %v3259_v56 = vrot.slane %v3258_v61, 2  ;;  %v3336_v33 = vrot.slane %v5622_v2, %v4730_v38  ;;  %v3329_v41 = vrot.slane %v5622_v2, %v4733_v30 }
0x17c3   :  { %v3271_v23 = vsel %vm3270_vm12, %v3268_v49, %v3269_v24  ;;  %v3350_v19 = vrot.slane %v5622_v2, %v4751_v48  ;;  %v3343_v62 = vrot.slane %v5622_v2, %v4754_v4  ;;  %v3613_v16 = vsel %vm3612_vm9, 1, %v5866_v0  ;;  %v5875_v24 = vld [vmem:[#allocation10_spill] sm:$0xff] }
0x17c4   :  { %vm3260_vm14 = vcmp.lt.s32.totalorder %v3258_v61, %v3259_v56  ;;  %v3272_v3 = vrot.slane %v3271_v23, 1  ;;  %v3410_v48 = vcombine.high %v5873_v34, %v5873_v34  ;;  %v3408_v4 = vcombine.high %v5874_v18, %v5874_v18 }
0x17c5   :  { %v3261_v15 = vsel %vm3260_vm14, %v3258_v61, %v3259_v56  ;;  %3324 = vbcast.lane.b32.xlu0 %v3322_v55, 256  ;;  %3317 = vbcast.lane.b32.xlu1 %v3315_v20, 256  ;;  %v3419_v58 = vrot.slane %v5873_v34, %v4708_v25  ;;  %v3415_v46 = vrot.slane %v5874_v18, %v4708_v25 }
0x17c6   :  { %v3262_v43 = vrot.slane %v3261_v15, 1  ;;  %vm3273_vm10 = vcmp.lt.s32.totalorder %v3271_v23, %v3272_v3  ;;  %v3427_v47 = vrot.slane %v3410_v48, %v4708_v25  ;;  %v3423_v6 = vrot.slane %v3408_v4, %v4708_v25 }
0x17c7   :  { %v3274_v32 = vsel %vm3273_vm10, %v3271_v23, %v3272_v3  ;;  %v3411_v61 = vcombine.high %v5875_v24, %v5875_v24  ;;  %v3409_v56 = vcombine.high %v5876_v57, %v5876_v57  ;;  %v3435_v20 = vrot.slane %v5875_v24, %v4708_v25 }
0x17c8   :  { %vm3263_vm1 = vcmp.lt.s32.totalorder %v3261_v15, %v3262_v43  ;;  %v3704_v1 = vcvt.s32.f32 %v3274_v32 }
0x17c9   :  { %3338 = vbcast.lane.b32.xlu0 %v3336_v33, 256  ;;  %3331 = vbcast.lane.b32.xlu1 %v3329_v41, 256  ;;  %v3264_v9 = vsel %vm3263_vm1, %v3261_v15, %v3262_v43 }
0x17ca   :  { %v3703_v17 = vcvt.s32.f32 %v3264_v9 }
0x17cc   :  { %v3718_v38 = vsel %vm1607_vm4, %v3703_v17, %v3717_v21  ;;  %v3431_v21 = vrot.slane %v5876_v57, %v4708_v25 }
0x17cd   :  { %3352 = vbcast.lane.b32.xlu0 %v3350_v19, 256  ;;  %3345 = vbcast.lane.b32.xlu1 %v3343_v62, 256  ;;  %v5645_v30 = vsel %vm1609_vm7, %v3704_v1, %v3718_v38  ;;  %v3443_v38 = vrot.slane %v3411_v61, %v4708_v25 }
0x17d1   :  { %3615 = vperm.xlu1 %4229, %v3613_v16   ;;  %v3439_v16 = vrot.slane %v3409_v56, %v4708_v25 }
0x1833   :  { %v3311_v14 = vpop.permute.xlu0 %3310  ;;  %v3304_v60 = vpop.permute.xlu1 %3303 }
0x1834   :  { %v3355_v5 = vadd.f32 %v5524_v54, %v3311_v14  ;;  %v3354_v11 = vadd.f32 %v5524_v54, %v3304_v60 }
0x1836   :  { %v5658_v59 = vadd.f32 %v3419_v58, %v3355_v5  ;;  %v5660_v35 = vadd.f32 %v3415_v46, %v3354_v11 }
0x1837   :  { %v3325_v26 = vpop.permute.xlu0 %3324  ;;  %v3318_v22 = vpop.permute.xlu1 %3317 }
0x1838   :  { %v3467_v36 = vsel %vm1430_vm3, %v5658_v59, -inf  ;;  %v3460_v50 = vsel %vm1430_vm3, %v5660_v35, -inf  ;;  %v3357_v51 = vadd.f32 %v5524_v54, %v3325_v26  ;;  %v3356_v29 = vadd.f32 %v5524_v54, %v3318_v22 }
0x1839   :  { %v3468_v44 = vrot.slane %v3467_v36, 4  ;;  %v3461_v49 = vrot.slane %v3460_v50, 4 }
0x183a   :  { %v5670_v52 = vadd.f32 %v3427_v47, %v3357_v51  ;;  %v5672_v45 = vadd.f32 %v3423_v6, %v3356_v29 }
0x183b   :  { %v3469_v10 = vmax.f32 %v3467_v36, %v3468_v44  ;;  %v3462_v55 = vmax.f32 %v3460_v50, %v3461_v49  ;;  %v3339_v23 = vpop.permute.xlu0 %3338  ;;  %v3332_v3 = vpop.permute.xlu1 %3331 }
0x183c   :  { %v3481_v15 = vsel %vm1430_vm3, %v5670_v52, -inf  ;;  %v3474_v43 = vsel %vm1430_vm3, %v5672_v45, -inf  ;;  %v3359_v33 = vadd.f32 %v5524_v54, %v3339_v23  ;;  %v3358_v41 = vadd.f32 %v5524_v54, %v3332_v3 }
0x183d   :  { %v3470_v32 = vrot.slane %v3469_v10, 2  ;;  %v3463_v9 = vrot.slane %v3462_v55, 2  ;;  %v3482_v1 = vrot.slane %v3481_v15, 4  ;;  %v3475_v17 = vrot.slane %v3474_v43, 4 }
0x183e   :  { %v5688_v19 = vadd.f32 %v3435_v20, %v3359_v33  ;;  %v5690_v62 = vadd.f32 %v3431_v21, %v3358_v41 }
0x183f   :  { %v3471_v14 = vmax.f32 %v3469_v10, %v3470_v32  ;;  %v3464_v60 = vmax.f32 %v3462_v55, %v3463_v9  ;;  %v3483_v34 = vmax.f32 %v3481_v15, %v3482_v1  ;;  %v3476_v48 = vmax.f32 %v3474_v43, %v3475_v17  ;;  %v3353_v18 = vpop.permute.xlu0 %3352  ;;  %v3346_v4 = vpop.permute.xlu1 %3345 }
0x1840   :  { %v3495_v58 = vsel %vm1430_vm3, %v5688_v19, -inf  ;;  %v3488_v5 = vsel %vm1430_vm3, %v5690_v62, -inf  ;;  %v3361_v46 = vadd.f32 %v5524_v54, %v3353_v18  ;;  %v3360_v11 = vadd.f32 %v5524_v54, %v3346_v4 }
0x1841   :  { %v3472_v47 = vrot.slane %v3471_v14, 1  ;;  %v3465_v26 = vrot.slane %v3464_v60, 1  ;;  %v3484_v6 = vrot.slane %v3483_v34, 2  ;;  %v3477_v25 = vrot.slane %v3476_v48, 2 }
0x1842   :  { %v3496_v22 = vrot.slane %v3495_v58, 4  ;;  %v3489_v36 = vrot.slane %v3488_v5, 4  ;;  %v5700_v50 = vadd.f32 %v3443_v38, %v3361_v46  ;;  %v5702_v51 = vadd.f32 %v3439_v16, %v3360_v11 }
0x1843   :  { %v3473_v29 = vmax.f32 %v3471_v14, %v3472_v47  ;;  %v3466_v44 = vmax.f32 %v3464_v60, %v3465_v26  ;;  %v3485_v49 = vmax.f32 %v3483_v34, %v3484_v6  ;;  %v3478_v24 = vmax.f32 %v3476_v48, %v3477_v25 }
0x1844   :  { %v3497_v61 = vmax.f32 %v3495_v58, %v3496_v22  ;;  %v3490_v57 = vmax.f32 %v3488_v5, %v3489_v36  ;;  %v3509_v56 = vsel %vm1430_vm3, %v5700_v50, -inf  ;;  %v3502_v54 = vsel %vm1430_vm3, %v5702_v51, -inf }
0x1845   :  { %vm3517_vm8 = vcmp.eq.f32.partialorder %v5658_v59, %v3473_v29  ;;  %vm3516_vm2 = vcmp.eq.f32.partialorder %v5660_v35, %v3466_v44  ;;  %v3626_v10 = vsel %vm1597_vm6, %v3473_v29, %v3466_v44  ;;  %v3486_v55 = vrot.slane %v3485_v49, 1 }
0x1846   :  { %v3525_v20 = vsel %vm3517_vm8, %v4697_v13, 8  ;;  %v3524_v23 = vsel %vm3516_vm2, %v4697_v13, 8  ;;  %v3479_v21 = vrot.slane %v3478_v24, 1  ;;  %v3498_v3 = vrot.slane %v3497_v61, 2 }
0x1847   :  { %v3542_v15 = vsel %vm1430_vm3, %v3525_v20, 2147483647  ;;  %v3532_v43 = vsel %vm1430_vm3, %v3524_v23, 2147483647  ;;  %v3487_v33 = vmax.f32 %v3485_v49, %v3486_v55  ;;  %v3491_v41 = vrot.slane %v3490_v57, 2 }
0x1848   :  { %v3543_v32 = vrot.slane %v3542_v15, 4  ;;  %v3533_v9 = vrot.slane %v3532_v43, 4  ;;  %v3480_v59 = vmax.f32 %v3478_v24, %v3479_v21  ;;  %v3499_v1 = vmax.f32 %v3497_v61, %v3498_v3 }
0x1849   :  { %vm3519_vm12 = vcmp.eq.f32.partialorder %v5670_v52, %v3487_v33  ;;  %v3492_v35 = vmax.f32 %v3490_v57, %v3491_v41  ;;  %v3510_v17 = vrot.slane %v3509_v56, 4  ;;  %v3503_v38 = vrot.slane %v3502_v54, 4 }
0x184a   :  { %vm3544_vm14 = vcmp.lt.s32.totalorder %v3542_v15, %v3543_v32  ;;  %vm3534_vm10 = vcmp.lt.s32.totalorder %v3532_v43, %v3533_v9  ;;  %v3527_v16 = vsel %vm3519_vm12, %v4697_v13, 8  ;;  %vm3518_vm1 = vcmp.eq.f32.partialorder %v5672_v45, %v3480_v59 }
0x184b   :  { %v3545_v14 = vsel %vm3544_vm14, %v3542_v15, %v3543_v32  ;;  %v3535_v60 = vsel %vm3534_vm10, %v3532_v43, %v3533_v9  ;;  %v3562_v34 = vsel %vm1430_vm3, %v3527_v16, 2147483647  ;;  %v3526_v48 = vsel %vm3518_vm1, %v4697_v13, 8 }
0x184c   :  { %v3546_v18 = vrot.slane %v3545_v14, 2  ;;  %v3536_v4 = vrot.slane %v3535_v60, 2  ;;  %v3563_v58 = vrot.slane %v3562_v34, 4  ;;  %v3552_v52 = vsel %vm1430_vm3, %v3526_v48, 2147483647 }
0x184d   :  { %v3553_v5 = vrot.slane %v3552_v52, 4  ;;  %v3627_v46 = vsel %vm1599_vm11, %v3480_v59, %v3626_v10  ;;  %v3500_v11 = vrot.slane %v3499_v1, 1  ;;  %v3493_v47 = vrot.slane %v3492_v35, 1 }
0x184e   :  { %vm3547_vm9 = vcmp.lt.s32.totalorder %v3545_v14, %v3546_v18  ;;  %vm3537_vm8 = vcmp.lt.s32.totalorder %v3535_v60, %v3536_v4  ;;  %vm3564_vm2 = vcmp.lt.s32.totalorder %v3562_v34, %v3563_v58  ;;  %v3628_v45 = vsel %vm1601_vm0, %v3487_v33, %v3627_v46 }
0x184f   :  { %v3548_v26 = vsel %vm3547_vm9, %v3545_v14, %v3546_v18  ;;  %v3538_v6 = vsel %vm3537_vm8, %v3535_v60, %v3536_v4  ;;  %v3565_v25 = vsel %vm3564_vm2, %v3562_v34, %v3563_v58  ;;  %vm3554_vm12 = vcmp.lt.s32.totalorder %v3552_v52, %v3553_v5 }
0x1850   :  { %v3549_v22 = vrot.slane %v3548_v26, 1  ;;  %v3539_v36 = vrot.slane %v3538_v6, 1  ;;  %v3566_v29 = vrot.slane %v3565_v25, 2  ;;  %v3555_v44 = vsel %vm3554_vm12, %v3552_v52, %v3553_v5 }
0x1851   :  { %v3556_v49 = vrot.slane %v3555_v44, 2  ;;  %v3501_v24 = vmax.f32 %v3499_v1, %v3500_v11  ;;  %v3494_v61 = vmax.f32 %v3492_v35, %v3493_v47  ;;  %v3511_v57 = vmax.f32 %v3509_v56, %v3510_v17 }
0x1852   :  { %vm3550_vm14 = vcmp.lt.s32.totalorder %v3548_v26, %v3549_v22  ;;  %vm3540_vm10 = vcmp.lt.s32.totalorder %v3538_v6, %v3539_v36  ;;  %vm3567_vm1 = vcmp.lt.s32.totalorder %v3565_v25, %v3566_v29  ;;  %v3504_v10 = vmax.f32 %v3502_v54, %v3503_v38 }
0x1853   :  { %v3551_v55 = vsel %vm3550_vm14, %v3548_v26, %v3549_v22  ;;  %v3541_v20 = vsel %vm3540_vm10, %v3538_v6, %v3539_v36  ;;  %v3568_v23 = vsel %vm3567_vm1, %v3565_v25, %v3566_v29  ;;  %vm3557_vm13 = vcmp.lt.s32.totalorder %v3555_v44, %v3556_v49  ;;  %v5734_v26 = vpop.permute.xlu1 %3615 }
0x1854   :  { %v3660_v21 = vcvt.s32.f32 %v3551_v55  ;;  %v3659_v3 = vcvt.s32.f32 %v3541_v20  ;;  %v3569_v15 = vrot.slane %v3568_v23, 1  ;;  %v3558_v43 = vsel %vm3557_vm13, %v3555_v44, %v3556_v49 }
0x1855   :  { %v3559_v33 = vrot.slane %v3558_v43, 1  ;;  %vm3521_vm9 = vcmp.eq.f32.partialorder %v5688_v19, %v3501_v24  ;;  %vm3520_vm8 = vcmp.eq.f32.partialorder %v5690_v62, %v3494_v61  ;;  %v3629_v41 = vsel %vm1603_vm5, %v3494_v61, %v3628_v45 }
0x1856   :  { %vm3570_vm2 = vcmp.lt.s32.totalorder %v3568_v23, %v3569_v15  ;;  %v3529_v56 = vsel %vm3521_vm9, %v4697_v13, 8  ;;  %v3528_v54 = vsel %vm3520_vm8, %v4697_v13, 8  ;;  %v3512_v32 = vrot.slane %v3511_v57, 2 }
0x1857   :  { %v3571_v9 = vsel %vm3570_vm2, %v3568_v23, %v3569_v15  ;;  %vm3560_vm12 = vcmp.lt.s32.totalorder %v3558_v43, %v3559_v33  ;;  %v3582_v59 = vsel %vm1430_vm3, %v3529_v56, 2147483647  ;;  %v3572_v1 = vsel %vm1430_vm3, %v3528_v54, 2147483647 }
0x1858   :  { %v3662_v35 = vcvt.s32.f32 %v3571_v9  ;;  %v3561_v17 = vsel %vm3560_vm12, %v3558_v43, %v3559_v33  ;;  %v3583_v38 = vrot.slane %v3582_v59, 4  ;;  %v3573_v19 = vrot.slane %v3572_v1, 4 }
0x1859   :  { %v3661_v16 = vcvt.s32.f32 %v3561_v17  ;;  %v3513_v62 = vmax.f32 %v3511_v57, %v3512_v32  ;;  %v3505_v14 = vrot.slane %v3504_v10, 2  ;;  %v3630_v60 = vsel %vm1605_vm15, %v3501_v24, %v3629_v41 }
0x185a   :  { %vm3584_vm13 = vcmp.lt.s32.totalorder %v3582_v59, %v3583_v38  ;;  %vm3574_vm14 = vcmp.lt.s32.totalorder %v3572_v1, %v3573_v19  ;;  %v3675_v34 = vsel %vm1597_vm6, %v3660_v21, %v3659_v3 }
0x185b   :  { %v3585_v48 = vsel %vm3584_vm13, %v3582_v59, %v3583_v38  ;;  %v3575_v18 = vsel %vm3574_vm14, %v3572_v1, %v3573_v19  ;;  %v3514_v4 = vrot.slane %v3513_v62, 1  ;;  %v3506_v58 = vmax.f32 %v3504_v10, %v3505_v14 }
0x185c   :  { %v3586_v52 = vrot.slane %v3585_v48, 2  ;;  %v3576_v5 = vrot.slane %v3575_v18, 2  ;;  %v3676_v46 = vsel %vm1599_vm11, %v3661_v16, %v3675_v34 }
0x185d   :  { %v3515_v11 = vmax.f32 %v3513_v62, %v3514_v4  ;;  %v3507_v47 = vrot.slane %v3506_v58, 1  ;;  %v3677_v45 = vsel %vm1601_vm0, %v3662_v35, %v3676_v46  ;;  %vm3617_vm0 = vcmp.eq.s32.totalorder %v5734_v26, 1 }
0x185e   :  { %vm3587_vm10 = vcmp.lt.s32.totalorder %v3585_v48, %v3586_v52  ;;  %vm3577_vm1 = vcmp.lt.s32.totalorder %v3575_v18, %v3576_v5 }
0x185f   :  { %v3588_v6 = vsel %vm3587_vm10, %v3585_v48, %v3586_v52  ;;  %v3578_v25 = vsel %vm3577_vm1, %v3575_v18, %v3576_v5  ;;  %vm3523_vm6 = vcmp.eq.f32.partialorder %v5700_v50, %v3515_v11  ;;  %v3508_v22 = vmax.f32 %v3506_v58, %v3507_v47  ;;  %v3990_v50 = vld [vmem:[%s5839_s6] ss:$0 sm:$0xff] }
0x1860   :  { %v3589_v36 = vrot.slane %v3588_v6, 1  ;;  %v3579_v29 = vrot.slane %v3578_v25, 1  ;;  %v3531_v44 = vsel %vm3523_vm6, %v4697_v13, 8 }
0x1861   :  { %v3602_v49 = vsel %vm1430_vm3, %v3531_v44, 2147483647  ;;  %vm3522_vm11 = vcmp.eq.f32.partialorder %v5702_v51, %v3508_v22  ;;  %v3631_v24 = vsel %vm1607_vm4, %v3508_v22, %v3630_v60  ;;  %v5877_v60 = vlaneseq }
0x1862   :  { %vm3590_vm9 = vcmp.lt.s32.totalorder %v3588_v6, %v3589_v36  ;;  %vm3580_vm8 = vcmp.lt.s32.totalorder %v3578_v25, %v3579_v29  ;;  %v3603_v61 = vrot.slane %v3602_v49, 4  ;;  %v3530_v57 = vsel %vm3522_vm11, %v4697_v13, 8 }
0x1863   :  { %v3581_v10 = vsel %vm3580_vm8, %v3578_v25, %v3579_v29  ;;  %v3592_v55 = vsel %vm1430_vm3, %v3530_v57, 2147483647  ;;  %v3632_v20 = vsel %vm1609_vm7, %v3515_v11, %v3631_v24  ;;  %v3591_v23 = vsel %vm3590_vm9, %v3588_v6, %v3589_v36 }
0x1864   :  { %v3663_v51 = vcvt.s32.f32 %v3581_v10  ;;  %vm3604_vm2 = vcmp.lt.s32.totalorder %v3602_v49, %v3603_v61  ;;  %v3593_v21 = vrot.slane %v3592_v55, 4  ;;  %v3634_v3 = vsel %vm3617_vm0, %v3632_v20, %v5622_v2 }
0x1865   :  { %v3605_v15 = vsel %vm3604_vm2, %v3602_v49, %v3603_v61  ;;  %v3642_v43 = vadd.f32 %v3990_v50, %v3634_v3  ;;  %v3664_v13 = vcvt.s32.f32 %v3591_v23  ;;  %v5757_v34 = vand.u32 127, %v5877_v60 }
0x1866   :  { %v3606_v33 = vrot.slane %v3605_v15, 2  ;;  %vm3594_vm12 = vcmp.lt.s32.totalorder %v3592_v55, %v3593_v21  ;;  %v3678_v41 = vsel %vm1603_vm5, %v3663_v51, %v3677_v45  ;;  %vm5878_vm9 = vcmp.eq.s32.totalorder %v5608_v31, 1 }
0x1867   :  { %v3595_v56 = vsel %vm3594_vm12, %v3592_v55, %v3593_v21  ;;  %v3645_v54 = vsel %vm1430_vm3, %v3642_v43, -inf  ;;  %v3679_v32 = vsel %vm1605_vm15, %v3664_v13, %v3678_v41  ;;  %v3649_v48 = vcvt.s32.f32 %v5757_v34 }
0x1868   :  { %vm3607_vm13 = vcmp.lt.s32.totalorder %v3605_v15, %v3606_v33  ;;  %v3596_v9 = vrot.slane %v3595_v56, 2  ;;  %3646 = vmax.xlane.f32.xlu0 %v3645_v54  ;;  %vm3690_vm6 = vcmp.eq.s32.totalorder %v5757_v34, 6  ;;  %vm3726_vm12 = vcmp.gt.s32.totalorder %v5509_v53, 5 }
0x1869   :  { %v3608_v59 = vsel %vm3607_vm13, %v3605_v15, %v3606_v33  ;;  %vm3691_vm8 = vmand %vm3690_vm6, %vm5878_vm9  ;;  %vm5879_vm13 = vcmp.eq.s32.totalorder %v5472_v27, 1  ;;  %vm5883_vm9 = vcmp.eq.s32.totalorder %v5220_v40, 1 }
0x186a   :  { %vm3597_vm14 = vcmp.lt.s32.totalorder %v3595_v56, %v3596_v9  ;;  %v3609_v1 = vrot.slane %v3608_v59, 1 }
0x186b   :  { %v3598_v35 = vsel %vm3597_vm14, %v3595_v56, %v3596_v9 }
0x186c   :  { %v3599_v2 = vrot.slane %v3598_v35, 1  ;;  %vm3610_vm10 = vcmp.lt.s32.totalorder %v3608_v59, %v3609_v1 }
0x186d   :  { %v3611_v17 = vsel %vm3610_vm10, %v3608_v59, %v3609_v1 }
0x186e   :  { %vm3600_vm1 = vcmp.lt.s32.totalorder %v3598_v35, %v3599_v2  ;;  %v3666_v19 = vcvt.s32.f32 %v3611_v17 }
0x186f   :  { %v3601_v38 = vsel %vm3600_vm1, %v3598_v35, %v3599_v2  ;;  %vm3764_vm1 = vcmp.gt.s32.totalorder %v5509_v53, 4 }
0x1870   :  { %v3665_v16 = vcvt.s32.f32 %v3601_v38 }
0x1872   :  { %v3680_v62 = vsel %vm1607_vm4, %v3665_v16, %v3679_v32  ;;  %vm3688_vm4 = vcmp.gt.s32.totalorder %v5509_v53, 6  ;;  %v4330_v53 = vld [vmem:[%s5837_s7] sm:$0xff] }
0x1873   :  { %v3681_v14 = vsel %vm1609_vm7, %v3666_v19, %v3680_v62  ;;  %vm3655_vm7 = vcmp.eq.s32.totalorder %v5757_v34, 7  ;;  %vm3802_vm6 = vcmp.gt.s32.totalorder %v4330_v53, 3 }
0x1874   :  { %vm3656_vm11 = vmand %vm3655_vm7, %vm3617_vm0  ;;  %vm3728_vm0 = vcmp.eq.s32.totalorder %v5757_v34, 5 }
0x1875   :  { %vm5777_vm14 = vmand %vm3728_vm0, %vm5879_vm13  ;;  %vm3842_vm0 = vcmp.eq.s32.totalorder %v5757_v34, 2  ;;  %vm5886_vm13 = vcmp.eq.s32.totalorder %v5081_v8, 1 }
0x18f5   :  { %v3647_v18 = vpop.xlane.xlu0 %3646 }
0x18f6   :  { %vm3648_vm5 = vcmp.eq.f32.partialorder %v3642_v43, %v3647_v18 }
0x18f7   :  { %v3650_v4 = vsel %vm3648_vm5, %v3649_v48, 8.0  ;;  %vm3766_vm5 = vcmp.eq.s32.totalorder %v5757_v34, 4 }
0x18f8   :  { %v3651_v58 = vsel %vm1430_vm3, %v3650_v4, inf }
0x18f9   :  { %3652 = vmin.xlane.f32.xlu1 %v3651_v58 }
0x1986   :  { %v3653_v52 = vpop.xlane.xlu1 %3652 }
0x1987   :  { %v4207_v5 = vtrunc.f32 %v3653_v52 }
0x1989   :  { %v4208_v46 = vcvt.f32.s32 %v4207_v5 }
0x198b   :  { %vm3658_vm15 = vcmp.eq.s32.totalorder %v5757_v34, %v4208_v46  ;;  %v3657_v29 = vsel %vm3656_vm11, %v4208_v46, 4294967295  ;;  %vm3804_vm11 = vcmp.eq.s32.totalorder %v5757_v34, 3 }
0x198c   :  { %v3683_v11 = vsel %vm3658_vm15, %v3681_v14, 0.0  ;;  %vm5882_vm15 = vcmp.eq.s32.totalorder %v5346_v63, 1 }
0x198d   :  { %v3684_v47 = vsel %vm1430_vm3, %v3683_v11, 0.0 }
0x198e   :  { %3685 = vadd.xlane.f32.xlu0 %v3684_v47 }
0x1a1b   :  { %v3686_v45 = vpop.xlane.xlu0 %3685 }
0x1a1c   :  { %v4209_v6 = vtrunc.f32 %v3686_v45 }
0x1a1e   :  { %v4210_v25 = vcvt.f32.s32 %v4209_v6 }
0x1a20   :  { %v3689_v22 = vsel %vm3688_vm4, %v4210_v25, %v4208_v46  ;;  %vm3767_vm4 = vmand %vm3766_vm5, %vm5882_vm15  ;;  %vm3878_vm5 = vcmp.gt.s32.totalorder %v4330_v53, 1  ;;  %vm3880_vm15 = vcmp.eq.s32.totalorder %v5757_v34, 1 }
0x1a21   :  { %3693 = vperm.xlu0 %4228, %v3689_v22  }
0x1aa0   :  { %v3694_v36 = vpop.permute.xlu0 %3693 }
0x1aa1   :  { %v3695_v44 = vsel %vm3691_vm8, %v3694_v36, %v3657_v29  ;;  %vm3696_vm2 = vcmp.eq.s32.totalorder %v5757_v34, %v3694_v36  ;;  %vm5799_vm8 = vmand %vm3804_vm11, %vm5883_vm9  ;;  %vm3916_vm11 = vcmp.gt.s32.totalorder %v4330_v53, 0  ;;  %vm3918_vm9 = vcmp.eq.s32.totalorder %v5757_v34, 0 }
0x1aa2   :  { %v3721_v49 = vsel %vm3696_vm2, %v5645_v30, 0.0 }
0x1aa3   :  { %v3722_v24 = vsel %vm1430_vm3, %v3721_v49, 0.0 }
0x1aa4   :  { %3723 = vadd.xlane.f32.xlu1 %v3722_v24 }
0x1b31   :  { %v3724_v61 = vpop.xlane.xlu1 %3723 }
0x1b32   :  { %v4211_v57 = vtrunc.f32 %v3724_v61 }
0x1b34   :  { %v4212_v50 = vcvt.f32.s32 %v4211_v57 }
0x1b36   :  { %v3727_v26 = vsel %vm3726_vm12, %v4212_v50, %v3689_v22  ;;  %vm3840_vm12 = vcmp.gt.s32.totalorder %v4330_v53, 2 }
0x1b37   :  { %3731 = vperm.xlu1 %4229, %v3727_v26  }
0x1bb6   :  { %v3732_v10 = vpop.permute.xlu1 %3731 }
0x1bb7   :  { %v3733_v30 = vsel %vm5777_vm14, %v3732_v10, %v3695_v44  ;;  %vm3734_vm10 = vcmp.eq.s32.totalorder %v5757_v34, %v3732_v10  ;;  %vm3843_vm14 = vmand %vm3842_vm0, %vm5886_vm13 }
0x1bb8   :  { %v3759_v55 = vsel %vm3734_vm10, %v5514_v39, 0.0 }
0x1bb9   :  { %v3760_v20 = vsel %vm1430_vm3, %v3759_v55, 0.0 }
0x1bba   :  { %3761 = vadd.xlane.f32.xlu0 %v3760_v20 }
0x1c47   :  { %v3762_v23 = vpop.xlane.xlu0 %3761 }
0x1c48   :  { %v4213_v51 = vtrunc.f32 %v3762_v23 }
0x1c4a   :  { %v4214_v27 = vcvt.f32.s32 %v4213_v51 }
0x1c4c   :  { %v3765_v21 = vsel %vm3764_vm1, %v4214_v27, %v3727_v26  ;;  %vm3919_vm1 = vcmp.ge.s32.totalorder %v4330_v53, 0 }
0x1c4d   :  { %3769 = vperm.xlu1 %4229, %v3765_v21   ;;  %v3920_v19 = vsel %vm3919_vm1, 1, %v5866_v0 }
0x1ccc   :  { %v3770_v3 = vpop.permute.xlu1 %3769 }
0x1ccd   :  { %v3771_v15 = vsel %vm3767_vm4, %v3770_v3, %v3733_v30  ;;  %vm3772_vm7 = vcmp.eq.s32.totalorder %v5757_v34, %v3770_v3  ;;  %vm5887_vm4 = vcmp.eq.s32.totalorder %v4943_v12, 1 }
0x1cce   :  { %v3797_v39 = vsel %vm3772_vm7, %v5383_v7, 0.0  ;;  %vm5818_vm7 = vmand %vm3880_vm15, %vm5887_vm4 }
0x1ccf   :  { %v3798_v43 = vsel %vm1430_vm3, %v3797_v39, 0.0 }
0x1cd0   :  { %3799 = vadd.xlane.f32.xlu1 %v3798_v43 }
0x1d5d   :  { %v3800_v13 = vpop.xlane.xlu1 %3799 }
0x1d5e   :  { %v4215_v33 = vtrunc.f32 %v3800_v13 }
0x1d60   :  { %v4216_v41 = vcvt.f32.s32 %v4215_v33 }
0x1d62   :  { %v3803_v56 = vsel %vm3802_vm6, %v4216_v41, %v3765_v21 }
0x1d63   :  { %3807 = vperm.xlu0 %4228, %v3803_v56  }
0x1de2   :  { %v3808_v7 = vpop.permute.xlu0 %3807 }
0x1de3   :  { %v3809_v54 = vsel %vm5799_vm8, %v3808_v7, %v3771_v15  ;;  %vm3810_vm2 = vcmp.eq.s32.totalorder %v5757_v34, %v3808_v7 }
0x1de4   :  { %v3835_v32 = vsel %vm3810_vm2, %v5257_v42, 0.0 }
0x1de5   :  { %v3836_v9 = vsel %vm1430_vm3, %v3835_v32, 0.0 }
0x1de6   :  { %3837 = vadd.xlane.f32.xlu1 %v3836_v9 }
0x1e73   :  { %v3838_v59 = vpop.xlane.xlu1 %3837 }
0x1e74   :  { %v4217_v1 = vtrunc.f32 %v3838_v59 }
0x1e76   :  { %v4218_v35 = vcvt.f32.s32 %v4217_v1 }
0x1e78   :  { %v3841_v40 = vsel %vm3840_vm12, %v4218_v35, %v3803_v56 }
0x1e79   :  { %3845 = vperm.xlu1 %4229, %v3841_v40  }
0x1ef8   :  { %v3846_v2 = vpop.permute.xlu1 %3845 }
0x1ef9   :  { %v3847_v17 = vsel %vm3843_vm14, %v3846_v2, %v3809_v54  ;;  %vm3848_vm10 = vcmp.eq.s32.totalorder %v5757_v34, %v3846_v2 }
0x1efa   :  { %v3873_v42 = vsel %vm3848_vm10, %v5127_v37, 0.0 }
0x1efb   :  { %v3874_v38 = vsel %vm1430_vm3, %v3873_v42, 0.0 }
0x1efc   :  { %3875 = vadd.xlane.f32.xlu0 %v3874_v38 }
0x1f12   :  { %3922 = vperm.xlu0 %4228, %v3920_v19  }
0x1f89   :  { %v3876_v16 = vpop.xlane.xlu0 %3875 }
0x1f8a   :  { %v4219_v62 = vtrunc.f32 %v3876_v16 }
0x1f8c   :  { %v4220_v14 = vcvt.f32.s32 %v4219_v62 }
0x1f8e   :  { %v3879_v60 = vsel %vm3878_vm5, %v4220_v14, %v3841_v40 }
0x1f8f   :  { %3883 = vperm.xlu1 %4229, %v3879_v60  }
0x1f91   :  { %v3923_v5 = vpop.permute.xlu0 %3922 }
0x1f92   :  { %vm3924_vm8 = vcmp.eq.s32.totalorder %v3923_v5, 1 }
0x1f93   :  { %vm3925_vm2 = vmand %vm3918_vm9, %vm3924_vm8 }
0x200e   :  { %v3884_v37 = vpop.permute.xlu1 %3883 }
0x200f   :  { %v3885_v48 = vsel %vm5818_vm7, %v3884_v37, %v3847_v17  ;;  %vm3886_vm6 = vcmp.eq.s32.totalorder %v5757_v34, %v3884_v37 }
0x2010   :  { %v3911_v0 = vsel %vm3886_vm6, %v4981_v28, 0.0 }
0x2011   :  { %v3912_v18 = vsel %vm1430_vm3, %v3911_v0, 0.0 }
0x2012   :  { %3913 = vadd.xlane.f32.xlu1 %v3912_v18 }
0x209f   :  { %v3914_v4 = vpop.xlane.xlu1 %3913 }
0x20a0   :  { %v4221_v58 = vtrunc.f32 %v3914_v4 }
0x20a2   :  { %v4222_v52 = vcvt.f32.s32 %v4221_v58 }
0x20a4   :  { %v3917_v12 = vsel %vm3916_vm11, %v4222_v52, %v3879_v60 }
0x20a5   :  { %3927 = vperm.xlu1 %4229, %v3917_v12  }
0x2124   :  { %v3928_v46 = vpop.permute.xlu1 %3927 }
0x2125   :  { %v3929_v11 = vsel %vm3925_vm2, %v3928_v46, %v3885_v48 }
0x2126   :  { %3930 = vst.msk [vmem:[%s5840_s8] sm:$0xff] %vm1430_vm3, %v3929_v11 }

</bundles_post_ra>
